<compile_context>
chip_gen: v6e
topology: v6e:2x2x1
jax: 0.10.0
libtpu: 0.0.40
codegen_flags: <defaults>
</compile_context>

<pallas_src>
import functools
import math

import jax
import jax.numpy as jnp
from jax import lax
from jax.experimental import pallas as pl
from jax.experimental.pallas import tpu as pltpu


# ---------------------------------------------------------------------------
# device-aware constants & helpers
# ---------------------------------------------------------------------------

def _device_kind():
    try:
        return jax.devices()[0].device_kind.lower()
    except Exception:  # pragma: no cover
        return ""


_KIND = _device_kind()


def _vmem_limit_bytes():
    # Gen-gated VMEM cap: v5e/v6e have 128 MiB physical, v7x only 64 MiB.
    if "v5" in _KIND or "v6" in _KIND:
        return 100 * 1024 * 1024
    if "v7" in _KIND:
        return 48 * 1024 * 1024
    return 32 * 1024 * 1024            # conservative default for other gens


def _round_up(x, m):
    return ((x + m - 1) // m) * m


def _pad_and_tile(dim, max_tile=512):
    """Pad `dim` and pick a tile size; never falls back to 128 for large dims.

    dims <= max_tile -> single lane-aligned tile (padded to 128).
    dims >  max_tile -> padded to a multiple of 512, tiled with the largest of
    {512, 1024} (<= max_tile) that divides the padded size."""
    p = _round_up(dim, 128)
    if p <= max_tile:
        return p, p
    p = _round_up(dim, 512)
    t = 512
    while t * 2 <= max_tile and p % (t * 2) == 0:
        t *= 2
    return p, t


def _tile_for(padded_dim, max_tile):
    return _pad_and_tile(padded_dim, max_tile)[1]


def _pad2(x, rows, cols):
    r, c = x.shape
    return jnp.pad(x, ((0, rows - r), (0, cols - c)))


# ---------------------------------------------------------------------------
# Pallas kernels
# ---------------------------------------------------------------------------

def _linear_relu_kernel(x_ref, w_ref, b_ref, o_ref, acc_ref):
    # o = relu(x @ w + b)  (Encoder.ufc / Encoder.ifc + act)
    # bf16 MXU operands, f32 accumulation, f32 bias+relu epilogue.
    @pl.when(pl.program_id(2) == 0)
    def _():
        acc_ref[...] = jnp.zeros_like(acc_ref)

    acc_ref[...] += jnp.dot(x_ref[...], w_ref[...],
                            preferred_element_type=jnp.float32)

    @pl.when(pl.program_id(2) == pl.num_programs(2) - 1)
    def _():
        o_ref[...] = jnp.maximum(acc_ref[...] + b_ref[...], 0.0)


def _gcn_layer_kernel(scale_ref, adj_ref, f_ref, base_ref, din_ref, dio_ref,
                      emb_next_ref, base_out_ref, acc_ref):
    # One GCNLayer + fused Encoder residual, degree normalization factored out:
    #   f_ref     = node_f * D_out^{-1/2}          (pre-scaled, bf16)
    #   acc       = A @ f_ref                      (A exact 0/1 int8 -> bf16 cast)
    #   emb       = D_in^{-1/2} * acc              (reference GCNLayer output)
    #   base_out  = base + emb * scale             (residual, scale = 1/(layer+2))
    #   emb_next  = emb * D_out^{-1/2}             (pre-scaled input of next layer)
    # TODO(synk): feat_drop dropout (p=0.7) is identity in eval mode.
    @pl.when(pl.program_id(2) == 0)
    def _():
        acc_ref[...] = jnp.zeros_like(acc_ref)

    a = adj_ref[...].astype(jnp.bfloat16)   # free VPU cast under the HBM stall
    acc_ref[...] += jnp.dot(a, f_ref[...], preferred_element_type=jnp.float32)

    @pl.when(pl.program_id(2) == pl.num_programs(2) - 1)
    def _():
        acc = acc_ref[...]
        emb = acc * din_ref[...]
        emb_next_ref[...] = (acc * dio_ref[...]).astype(emb_next_ref.dtype)
        base_out_ref[...] = base_ref[...] + emb * scale_ref[0, 0]


def _decoder_kernel(u_ref, pos_ref, neg_ref, t_ref,
                    wz_ref, wt_ref, b1_ref, w2_ref, o_ref):
    # Fused Decoder (dec='hadamard') for both halves (pos/neg) and both T's:
    #   h = (z_i * z_j) @ Wz + T * Wt + b1 ; ELU ; logit = sum(h * w2_row)
    # z@Wz per (pos, neg) half is shared by the T_f and T_cf heads.
    # TODO(synk): nn.Dropout() in mlp_out is identity in eval mode.
    u = u_ref[...]
    wz = wz_ref[...]
    wt = wt_ref[...]          # (1, DH)  f32
    b1 = b1_ref[...]          # (1, DH)  f32
    w2 = w2_ref[...]          # (1, DH)  f32 (second linear as a lane row)
    t = t_ref[...]            # (te, 128): lanes 0..3 = [tf_pos, tf_neg, tcf_pos, tcf_neg]

    h_pos = jnp.dot(u * pos_ref[...], wz, preferred_element_type=jnp.float32) + b1
    h_neg = jnp.dot(u * neg_ref[...], wz, preferred_element_type=jnp.float32) + b1

    def head(h_base, t_col):
        h = h_base + t_col * wt
        # safe ELU(alpha=1): exp only on the non-positive branch
        h = jnp.where(h > 0.0, h, jnp.exp(jnp.minimum(h, 0.0)) - 1.0)
        return jnp.sum(h * w2, axis=-1, keepdims=True)     # (te, 1) lane reduce

    lf_pos = head(h_pos, t[:, 0:1])
    lf_neg = head(h_neg, t[:, 1:2])
    lcf_pos = head(h_pos, t[:, 2:3])
    lcf_neg = head(h_neg, t[:, 3:4])

    # Pack the four logit columns into a lane-dense (te, 128) slab.
    lane = lax.broadcasted_iota(jnp.int32, o_ref.shape, 1)
    out = jnp.where(lane == 0, lf_pos, 0.0)
    out = jnp.where(lane == 1, lf_neg, out)
    out = jnp.where(lane == 2, lcf_pos, out)
    out = jnp.where(lane == 3, lcf_neg, out)
    o_ref[...] = out


# ---------------------------------------------------------------------------
# pallas_call wrappers
# ---------------------------------------------------------------------------

def linear_relu(x, w, b):
    """relu(x @ w + b), tiled (bf16 operands / f32 acc). Returns padded (Mp, Hp)."""
    m, k = x.shape
    h = w.shape[1]
    Mp, tm = _pad_and_tile(m, max_tile=512)
    Kp, tk = _pad_and_tile(k, max_tile=512)
    Hp, tn = _pad_and_tile(h, max_tile=512)

    x_p = _pad2(x.astype(jnp.float32), Mp, Kp).astype(jnp.bfloat16)
    w_p = _pad2(w.astype(jnp.float32), Kp, Hp).astype(jnp.bfloat16)
    b_p = _pad2(b.astype(jnp.float32), 1, Hp)

    return pl.pallas_call(
        _linear_relu_kernel,
        out_shape=jax.ShapeDtypeStruct((Mp, Hp), jnp.float32),
        grid=(Mp // tm, Hp // tn, Kp // tk),
        in_specs=[
            pl.BlockSpec((tm, tk), lambda i, j, kk: (i, kk)),
            pl.BlockSpec((tk, tn), lambda i, j, kk: (kk, j)),
            pl.BlockSpec((1, tn), lambda i, j, kk: (0, j)),
        ],
        out_specs=pl.BlockSpec((tm, tn), lambda i, j, kk: (i, j)),
        scratch_shapes=[pltpu.VMEM((tm, tn), jnp.float32)],
        compiler_params=pltpu.CompilerParams(
            dimension_semantics=("parallel", "parallel", "arbitrary"),
            vmem_limit_bytes=_vmem_limit_bytes()),
    )(x_p, w_p, b_p)


def gcn_layers(adj_i8, f0_bf16, base0_f32, din, dio, layer_num):
    """Run layer_num GCN propagation steps (one shared compiled kernel)."""
    Np, Hp = base0_f32.shape
    tk = _tile_for(Np, max_tile=1024)
    tm = tk
    tn = _tile_for(Hp, max_tile=512)

    # v7x has 2 TensorCores: make sure the parallel i-axis has >= 2 tiles.
    if "v7" in _KIND and Np // tm < 2:
        half = tm // 2
        if half >= 128 and half % 128 == 0 and Np % half == 0:
            tm = half

    call = pl.pallas_call(
        _gcn_layer_kernel,
        out_shape=(jax.ShapeDtypeStruct((Np, Hp), jnp.bfloat16),   # next-layer input
                   jax.ShapeDtypeStruct((Np, Hp), jnp.float32)),   # residual base
        grid=(Np // tm, Hp // tn, Np // tk),
        in_specs=[
            pl.BlockSpec(memory_space=pltpu.MemorySpace.SMEM),     # scale (1,1)
            pl.BlockSpec((tm, tk), lambda i, j, kk: (i, kk)),      # adj int8 (exact 0/1)
            pl.BlockSpec((tk, tn), lambda i, j, kk: (kk, j)),      # pre-scaled node feats
            pl.BlockSpec((tm, tn), lambda i, j, kk: (i, j)),       # residual base (aliased)
            pl.BlockSpec((tm, 1), lambda i, j, kk: (i, 0)),        # D_in^{-1/2}
            pl.BlockSpec((tm, 1), lambda i, j, kk: (i, 0)),        # D_in^{-1/2}*D_out^{-1/2}
        ],
        out_specs=(pl.BlockSpec((tm, tn), lambda i, j, kk: (i, j)),
                   pl.BlockSpec((tm, tn), lambda i, j, kk: (i, j))),
        scratch_shapes=[pltpu.VMEM((tm, tn), jnp.float32)],
        input_output_aliases={3: 1},    # base written in place as base_out
        compiler_params=pltpu.CompilerParams(
            dimension_semantics=("parallel", "parallel", "arbitrary"),
            vmem_limit_bytes=_vmem_limit_bytes()),
    )

    node_f = f0_bf16
    base = base0_f32
    for layer in range(layer_num):
        scale = jnp.full((1, 1), 1.0 / (layer + 2), jnp.float32)
        node_f, base = call(scale, adj_i8, node_f, base, din, dio)
    return base


def decoder_forward(u, pos, neg, t_f, t_cf, wz, wt, b1, w2):
    """Fused hadamard decoder producing logits_f and logits_cf in one pass."""
    m, hid = u.shape
    dh = wz.shape[1]
    Mp, te = _pad_and_tile(m, max_tile=512)
    Hp, _ = _pad_and_tile(hid, max_tile=512)
    DHp, _ = _pad_and_tile(dh, max_tile=512)

    u_p = _pad2(u.astype(jnp.float32), Mp, Hp).astype(jnp.bfloat16)
    pos_p = _pad2(pos.astype(jnp.float32), Mp, Hp).astype(jnp.bfloat16)
    neg_p = _pad2(neg.astype(jnp.float32), Mp, Hp).astype(jnp.bfloat16)

    # T packed lane-dense: lanes 0..3 = [tf_pos, tf_neg, tcf_pos, tcf_neg]
    t_cols = jnp.stack([t_f[:m], t_f[m:2 * m], t_cf[:m], t_cf[m:2 * m]],
                       axis=1).astype(jnp.float32)
    t_all = _pad2(t_cols, Mp, 128)

    wz_p = _pad2(wz.astype(jnp.float32), Hp, DHp).astype(jnp.bfloat16)
    wt_p = _pad2(wt.astype(jnp.float32), 1, DHp)
    b1_p = _pad2(b1.astype(jnp.float32), 1, DHp)
    w2_p = _pad2(w2.astype(jnp.float32).T, 1, DHp)     # (dh,1) -> (1,DHp)

    out = pl.pallas_call(
        _decoder_kernel,
        out_shape=jax.ShapeDtypeStruct((Mp, 128), jnp.float32),
        grid=(Mp // te,),
        in_specs=[
            pl.BlockSpec((te, Hp), lambda i: (i, 0)),
            pl.BlockSpec((te, Hp), lambda i: (i, 0)),
            pl.BlockSpec((te, Hp), lambda i: (i, 0)),
            pl.BlockSpec((te, 128), lambda i: (i, 0)),
            pl.BlockSpec((Hp, DHp), lambda i: (0, 0)),   # weights stay resident
            pl.BlockSpec((1, DHp), lambda i: (0, 0)),
            pl.BlockSpec((1, DHp), lambda i: (0, 0)),
            pl.BlockSpec((1, DHp), lambda i: (0, 0)),
        ],
        out_specs=pl.BlockSpec((te, 128), lambda i: (i, 0)),
        compiler_params=pltpu.CompilerParams(
            dimension_semantics=("parallel",),
            vmem_limit_bytes=_vmem_limit_bytes()),
    )(u_p, pos_p, neg_p, t_all, wz_p, wt_p, b1_p, w2_p)

    logits_f = jnp.concatenate([out[:m, 0], out[:m, 1]], axis=0)
    logits_cf = jnp.concatenate([out[:m, 2], out[:m, 3]], axis=0)
    return logits_f, logits_cf


# ---------------------------------------------------------------------------
# Parameter init (deterministic, PyTorch-Linear-style uniform)
# ---------------------------------------------------------------------------

def _linear_params(key, fan_in, fan_out, bias=True):
    kw, kb = jax.random.split(key)
    bound = 1.0 / math.sqrt(fan_in)
    w = jax.random.uniform(kw, (fan_in, fan_out), jnp.float32, -bound, bound)
    if bias:
        b = jax.random.uniform(kb, (1, fan_out), jnp.float32, -bound, bound)
        return w, b
    return w, None


def init_msgcn_params(key, user_dim, item_dim, hid_dim, side_dim, dec_dim_h=64):
    ks = jax.random.split(key, 5)
    ufc_w, ufc_b = _linear_params(ks[0], user_dim, hid_dim)
    ifc_w, ifc_b = _linear_params(ks[1], item_dim, hid_dim)
    side_w, side_b = _linear_params(ks[2], side_dim, hid_dim)  # defined in __init__, unused in forward
    # Decoder mlp_out (dec='hadamard' -> dim_in = hid_dim + 1)
    w1, b1 = _linear_params(ks[3], hid_dim + 1, dec_dim_h)
    w2, _ = _linear_params(ks[4], dec_dim_h, 1, bias=False)
    return {
        "ufc_w": ufc_w, "ufc_b": ufc_b,
        "ifc_w": ifc_w, "ifc_b": ifc_b,
        "side_w": side_w, "side_b": side_b,
        "dec_wz": w1[:hid_dim, :],   # part of W1 acting on z_i * z_j
        "dec_wt": w1[hid_dim:, :],   # part of W1 acting on T  (shape (1, 64))
        "dec_b1": b1,
        "dec_w2": w2,
    }


# ---------------------------------------------------------------------------
# MSGCN forward
# ---------------------------------------------------------------------------

@functools.partial(jax.jit, static_argnames=("layer_num",))
def msgcn_forward(params, adj, user_features, item_features, item_side_feat,
                  user_id, pos_item_id, neg_item_id, t_f, t_cf, *, layer_num=2):
    U = user_features.shape[0]
    I = item_features.shape[0]
    N = U + I
    H = params["ufc_w"].shape[1]

    # Encoder (model_name='lightgcn', act='relu')
    u_emb_p = linear_relu(user_features, params["ufc_w"], params["ufc_b"])
    i_emb_p = linear_relu(item_features, params["ifc_w"], params["ifc_b"])
    Hp = u_emb_p.shape[1]

    Np, _ = _pad_and_tile(N, max_tile=1024)
    base0 = jnp.zeros((Np, Hp), jnp.float32)
    base0 = base0.at[:U].set(u_emb_p[:U])
    base0 = base0.at[U:N].set(i_emb_p[:I])

    # Degree normalization factored out of the adjacency: A stays exact 0/1
    # (int8 in HBM); D_out^{-1/2} is pre-applied to the node features and
    # D_in^{-1/2} is applied in the kernel epilogue.  clamp(min=1) matches the
    # reference GCNLayer's degs.clamp(min=1); padded rows/cols stay zero.
    # TODO(synk): dense adj is O(N^2) HBM traffic; for large sparse graphs use
    # an edge-list gather-accumulate (scalar-prefetch + manual DMA) instead.
    adj_p = _pad2(adj.astype(jnp.float32), Np, Np)
    out_deg = jnp.maximum(jnp.sum(adj_p, axis=0), 1.0)   # out-degree of src (col sum)
    in_deg = jnp.maximum(jnp.sum(adj_p, axis=1), 1.0)    # in-degree of dst (row sum)
    r_out = lax.rsqrt(out_deg)
    r_in = lax.rsqrt(in_deg)
    adj_i8 = adj_p.astype(jnp.int8)
    din = r_in[:, None]                                  # (Np, 1)
    dio = (r_in * r_out)[:, None]                        # (Np, 1)
    f0 = (base0 * r_out[:, None]).astype(jnp.bfloat16)   # layer-0 pre-scaled input

    base = gcn_layers(adj_i8, f0, base0, din, dio, layer_num)

    user_embed = base[:U, :H]
    item_embed = base[U:N, :H]
    if item_side_feat is not None:
        item_embed = item_embed + item_side_feat

    # TODO(synk): fuse these row gathers into the decoder with
    # PrefetchScalarGridSpec / manual DMA gather instead of XLA take.
    u = user_embed[user_id]
    pos = item_embed[pos_item_id]
    neg = item_embed[neg_item_id]

    logits_f, logits_cf = decoder_forward(
        u, pos, neg, t_f, t_cf,
        params["dec_wz"], params["dec_wt"], params["dec_b1"], params["dec_w2"])
    return user_embed, item_embed, logits_f, logits_cf


# ---------------------------------------------------------------------------
# Main
# ---------------------------------------------------------------------------

if __name__ == "__main__":
    num_users, num_items = 8, 8
    user_dim, item_dim, hid_dim, side_dim = 16, 16, 32, 16
    layer_num = 2
    n_edges = 8                      # number of sampled (user, pos, neg) triples
    n_nodes = num_users + num_items

    key = jax.random.PRNGKey(0)
    k_params, k_uf, k_if, k_side, k_tf, k_tcf = jax.random.split(key, 6)

    params = init_msgcn_params(k_params, user_dim, item_dim, hid_dim, side_dim)

    user_features = jax.random.normal(k_uf, (num_users, user_dim), jnp.float32)
    item_features = jax.random.normal(k_if, (num_items, item_dim), jnp.float32)
    item_side_feat = jax.random.normal(k_side, (num_items, hid_dim), jnp.float32)

    # Deterministic bipartite graph: each user connects to 3 items (both dirs).
    src_u = jnp.repeat(jnp.arange(num_users, dtype=jnp.int32), 3)
    offs = jnp.tile(jnp.arange(3, dtype=jnp.int32), num_users)
    dst_i = num_users + (src_u + offs) % num_items
    adj = jnp.zeros((n_nodes, n_nodes), jnp.float32)
    adj = adj.at[dst_i, src_u].set(1.0)   # edge u -> item   (adj[dst, src])
    adj = adj.at[src_u, dst_i].set(1.0)   # edge item -> u

    user_id = jnp.arange(n_edges, dtype=jnp.int32) % num_users
    pos_item_id = jnp.arange(n_edges, dtype=jnp.int32) % num_items
    neg_item_id = (jnp.arange(n_edges, dtype=jnp.int32) + 3) % num_items
    t_f = jax.random.normal(k_tf, (2 * n_edges,), jnp.float32)
    t_cf = jax.random.normal(k_tcf, (2 * n_edges,), jnp.float32)

    user_embed, item_embed, logits_f, logits_cf = msgcn_forward(
        params, adj, user_features, item_features, item_side_feat,
        user_id, pos_item_id, neg_item_id, t_f, t_cf, layer_num=layer_num)

    jax.block_until_ready((user_embed, item_embed, logits_f, logits_cf))
    assert user_embed.shape == (num_users, hid_dim)
    assert item_embed.shape == (num_items, hid_dim)
    assert logits_f.shape == (2 * n_edges,)
    assert logits_cf.shape == (2 * n_edges,)
    print("KERNEL_OK")
</pallas_src>

<mosaic_0001>
module attributes {stable_mosaic.version = 11 : i64} {
  func.func @_linear_relu_kernel(%arg0: i32, %arg1: i32, %arg2: i32, %arg3: memref<128x128xbf16, #tpu.memory_space<vmem>>, %arg4: memref<128x128xbf16, #tpu.memory_space<vmem>>, %arg5: memref<1x128xf32, #tpu.memory_space<vmem>>, %arg6: memref<128x128xf32, #tpu.memory_space<vmem>>, %arg7: memref<128x128xf32, #tpu.memory_space<vmem>>) attributes {dimension_semantics = [#tpu.dimension_semantics<parallel>, #tpu.dimension_semantics<parallel>, #tpu.dimension_semantics<arbitrary>], iteration_bounds = array<i64: 1, 1, 1>, scalar_prefetch = 0 : i64, scratch_operands = 1 : i64, tpu.core_type = #tpu.core_type<tc>, window_params = [{transform_indices = @transform_0, window_bounds = array<i64: 128, 128>}, {transform_indices = @transform_1, window_bounds = array<i64: 128, 128>}, {transform_indices = @transform_2, window_bounds = array<i64: 1, 128>}, {transform_indices = @transform_3, window_bounds = array<i64: 128, 128>}]} {
    %c0_i32 = arith.constant 0 : i32
    %0 = arith.cmpi eq, %arg2, %c0_i32 : i32
    %1 = arith.extui %0 : i1 to i32
    %c0_i32_0 = arith.constant 0 : i32
    %2 = arith.cmpi ne, %1, %c0_i32_0 : i32
    scf.if %2 {
      %cst_10 = arith.constant 0.000000e+00 : f32
      %12 = vector.broadcast %cst_10 : f32 to vector<128x128xf32>
      %c0_11 = arith.constant 0 : index
      %c0_12 = arith.constant 0 : index
      %13 = vector.load %arg7[%c0_11, %c0_12] : memref<128x128xf32, #tpu.memory_space<vmem>>, vector<128x128xf32>
      tpu.vector_store %arg7[%c0_11, %c0_12], %12 {strides = array<i32>} : memref<128x128xf32, #tpu.memory_space<vmem>>, vector<128x128xf32>,
    } else {
    }
    %c0 = arith.constant 0 : index
    %c0_1 = arith.constant 0 : index
    %3 = vector.load %arg7[%c0, %c0_1] : memref<128x128xf32, #tpu.memory_space<vmem>>, vector<128x128xf32>
    %c0_2 = arith.constant 0 : index
    %c0_3 = arith.constant 0 : index
    %4 = vector.load %arg3[%c0_2, %c0_3] : memref<128x128xbf16, #tpu.memory_space<vmem>>, vector<128x128xbf16>
    %c0_4 = arith.constant 0 : index
    %c0_5 = arith.constant 0 : index
    %5 = vector.load %arg4[%c0_4, %c0_5] : memref<128x128xbf16, #tpu.memory_space<vmem>>, vector<128x128xbf16>
    %cst = arith.constant dense<0.000000e+00> : vector<128x128xf32>
    %6 = tpu.matmul %4, %5, %cst {dimension_numbers = #tpu.dot_dimension_numbers<[1], [0], [0], [1], [0, 0, 1, 1], [], []>} : vector<128x128xbf16>, vector<128x128xbf16>, vector<128x128xf32> -> vector<128x128xf32>
    %7 = arith.addf %3, %6 : vector<128x128xf32>
    %c0_6 = arith.constant 0 : index
    %c0_7 = arith.constant 0 : index
    %8 = vector.load %arg7[%c0_6, %c0_7] : memref<128x128xf32, #tpu.memory_space<vmem>>, vector<128x128xf32>
    tpu.vector_store %arg7[%c0_6, %c0_7], %7 {strides = array<i32>} : memref<128x128xf32, #tpu.memory_space<vmem>>, vector<128x128xf32>,
    %c0_i32_8 = arith.constant 0 : i32
    %9 = arith.cmpi eq, %arg2, %c0_i32_8 : i32
    %10 = arith.extui %9 : i1 to i32
    %c0_i32_9 = arith.constant 0 : i32
    %11 = arith.cmpi ne, %10, %c0_i32_9 : i32
    scf.if %11 {
      %c0_10 = arith.constant 0 : index
      %c0_11 = arith.constant 0 : index
      %12 = vector.load %arg7[%c0_10, %c0_11] : memref<128x128xf32, #tpu.memory_space<vmem>>, vector<128x128xf32>
      %c0_12 = arith.constant 0 : index
      %c0_13 = arith.constant 0 : index
      %13 = vector.load %arg5[%c0_12, %c0_13] : memref<1x128xf32, #tpu.memory_space<vmem>>, vector<1x128xf32>
      %14 = vector.broadcast %13 : vector<1x128xf32> to vector<128x128xf32>
      %15 = arith.addf %12, %14 : vector<128x128xf32>
      %cst_14 = arith.constant 0.000000e+00 : f32
      %16 = vector.broadcast %cst_14 : f32 to vector<128x128xf32>
      %17 = arith.maximumf %15, %16 : vector<128x128xf32>
      %c0_15 = arith.constant 0 : index
      %c0_16 = arith.constant 0 : index
      %18 = vector.load %arg6[%c0_15, %c0_16] : memref<128x128xf32, #tpu.memory_space<vmem>>, vector<128x128xf32>
      tpu.vector_store %arg6[%c0_15, %c0_16], %17 {strides = array<i32>} : memref<128x128xf32, #tpu.memory_space<vmem>>, vector<128x128xf32>,
    } else {
    }
    return
  }
  func.func @transform_0(%arg0: i32, %arg1: i32, %arg2: i32) -> (i32, i32) {
    %c0_i32 = arith.constant 0 : i32
    return %arg0, %arg2 : i32, i32
  }
  func.func @transform_1(%arg0: i32, %arg1: i32, %arg2: i32) -> (i32, i32) {
    %c0_i32 = arith.constant 0 : i32
    return %arg2, %arg1 : i32, i32
  }
  func.func @transform_2(%arg0: i32, %arg1: i32, %arg2: i32) -> (i32, i32) {
    %c0_i32 = arith.constant 0 : i32
    %c0_i32_0 = arith.constant 0 : i32
    return %c0_i32, %arg1 : i32, i32
  }
  func.func @transform_3(%arg0: i32, %arg1: i32, %arg2: i32) -> (i32, i32) {
    %c0_i32 = arith.constant 0 : i32
    return %arg0, %arg1 : i32, i32
  }
}

module attributes {stable_mosaic.version = 11 : i64} {
  func.func @_gcn_layer_kernel(%arg0: i32, %arg1: i32, %arg2: i32, %arg3: memref<1x1xf32, #tpu.memory_space<smem>>, %arg4: memref<128x128xi8, #tpu.memory_space<vmem>>, %arg5: memref<128x128xbf16, #tpu.memory_space<vmem>>, %arg6: memref<128x128xf32, #tpu.memory_space<vmem>>, %arg7: memref<128x1xf32, #tpu.memory_space<vmem>>, %arg8: memref<128x1xf32, #tpu.memory_space<vmem>>, %arg9: memref<128x128xbf16, #tpu.memory_space<vmem>>, %arg10: memref<128x128xf32, #tpu.memory_space<vmem>>, %arg11: memref<128x128xf32, #tpu.memory_space<vmem>>) attributes {dimension_semantics = [#tpu.dimension_semantics<parallel>, #tpu.dimension_semantics<parallel>, #tpu.dimension_semantics<arbitrary>], iteration_bounds = array<i64: 1, 1, 1>, scalar_prefetch = 0 : i64, scratch_operands = 1 : i64, tpu.core_type = #tpu.core_type<tc>, window_params = [{transform_indices = @transform_0, window_bounds = array<i64: 1, 1>}, {transform_indices = @transform_1, window_bounds = array<i64: 128, 128>}, {transform_indices = @transform_2, window_bounds = array<i64: 128, 128>}, {transform_indices = @transform_3, window_bounds = array<i64: 128, 128>}, {transform_indices = @transform_4, window_bounds = array<i64: 128, 1>}, {transform_indices = @transform_5, window_bounds = array<i64: 128, 1>}, {transform_indices = @transform_6, window_bounds = array<i64: 128, 128>}, {transform_indices = @transform_7, window_bounds = array<i64: 128, 128>}]} {
    %c0_i32 = arith.constant 0 : i32
    %0 = arith.cmpi eq, %arg2, %c0_i32 : i32
    %1 = arith.extui %0 : i1 to i32
    %c0_i32_0 = arith.constant 0 : i32
    %2 = arith.cmpi ne, %1, %c0_i32_0 : i32
    scf.if %2 {
      %cst_10 = arith.constant 0.000000e+00 : f32
      %13 = vector.broadcast %cst_10 : f32 to vector<128x128xf32>
      %c0_11 = arith.constant 0 : index
      %c0_12 = arith.constant 0 : index
      %14 = vector.load %arg11[%c0_11, %c0_12] : memref<128x128xf32, #tpu.memory_space<vmem>>, vector<128x128xf32>
      tpu.vector_store %arg11[%c0_11, %c0_12], %13 {strides = array<i32>} : memref<128x128xf32, #tpu.memory_space<vmem>>, vector<128x128xf32>,
    } else {
    }
    %c0 = arith.constant 0 : index
    %c0_1 = arith.constant 0 : index
    %3 = vector.load %arg4[%c0, %c0_1] : memref<128x128xi8, #tpu.memory_space<vmem>>, vector<128x128xi8>
    %4 = arith.sitofp %3 : vector<128x128xi8> to vector<128x128xbf16>
    %c0_2 = arith.constant 0 : index
    %c0_3 = arith.constant 0 : index
    %5 = vector.load %arg11[%c0_2, %c0_3] : memref<128x128xf32, #tpu.memory_space<vmem>>, vector<128x128xf32>
    %c0_4 = arith.constant 0 : index
    %c0_5 = arith.constant 0 : index
    %6 = vector.load %arg5[%c0_4, %c0_5] : memref<128x128xbf16, #tpu.memory_space<vmem>>, vector<128x128xbf16>
    %cst = arith.constant dense<0.000000e+00> : vector<128x128xf32>
    %7 = tpu.matmul %4, %6, %cst {dimension_numbers = #tpu.dot_dimension_numbers<[1], [0], [0], [1], [0, 0, 1, 1], [], []>} : vector<128x128xbf16>, vector<128x128xbf16>, vector<128x128xf32> -> vector<128x128xf32>
    %8 = arith.addf %5, %7 : vector<128x128xf32>
    %c0_6 = arith.constant 0 : index
    %c0_7 = arith.constant 0 : index
    %9 = vector.load %arg11[%c0_6, %c0_7] : memref<128x128xf32, #tpu.memory_space<vmem>>, vector<128x128xf32>
    tpu.vector_store %arg11[%c0_6, %c0_7], %8 {strides = array<i32>} : memref<128x128xf32, #tpu.memory_space<vmem>>, vector<128x128xf32>,
    %c0_i32_8 = arith.constant 0 : i32
    %10 = arith.cmpi eq, %arg2, %c0_i32_8 : i32
    %11 = arith.extui %10 : i1 to i32
    %c0_i32_9 = arith.constant 0 : i32
    %12 = arith.cmpi ne, %11, %c0_i32_9 : i32
    scf.if %12 {
      %c0_10 = arith.constant 0 : index
      %c0_11 = arith.constant 0 : index
      %13 = vector.load %arg11[%c0_10, %c0_11] : memref<128x128xf32, #tpu.memory_space<vmem>>, vector<128x128xf32>
      %c0_12 = arith.constant 0 : index
      %c0_13 = arith.constant 0 : index
      %14 = vector.load %arg7[%c0_12, %c0_13] : memref<128x1xf32, #tpu.memory_space<vmem>>, vector<128x1xf32>
      %15 = vector.broadcast %14 : vector<128x1xf32> to vector<128x128xf32>
      %16 = arith.mulf %13, %15 : vector<128x128xf32>
      %c0_14 = arith.constant 0 : index
      %c0_15 = arith.constant 0 : index
      %17 = vector.load %arg8[%c0_14, %c0_15] : memref<128x1xf32, #tpu.memory_space<vmem>>, vector<128x1xf32>
      %18 = vector.broadcast %17 : vector<128x1xf32> to vector<128x128xf32>
      %19 = arith.mulf %13, %18 : vector<128x128xf32>
      %20 = arith.truncf %19 : vector<128x128xf32> to vector<128x128xbf16>
      %c0_16 = arith.constant 0 : index
      %c0_17 = arith.constant 0 : index
      %21 = vector.load %arg9[%c0_16, %c0_17] : memref<128x128xbf16, #tpu.memory_space<vmem>>, vector<128x128xbf16>
      tpu.vector_store %arg9[%c0_16, %c0_17], %20 {strides = array<i32>} : memref<128x128xbf16, #tpu.memory_space<vmem>>, vector<128x128xbf16>,
      %c0_18 = arith.constant 0 : index
      %c0_19 = arith.constant 0 : index
      %22 = vector.load %arg6[%c0_18, %c0_19] : memref<128x128xf32, #tpu.memory_space<vmem>>, vector<128x128xf32>
      %c0_20 = arith.constant 0 : index
      %c0_21 = arith.constant 0 : index
      %23 = memref.load %arg3[%c0_20, %c0_21] : memref<1x1xf32, #tpu.memory_space<smem>>
      %24 = vector.broadcast %23 : f32 to vector<128x128xf32>
      %25 = arith.mulf %16, %24 : vector<128x128xf32>
      %26 = arith.addf %22, %25 : vector<128x128xf32>
      %c0_22 = arith.constant 0 : index
      %c0_23 = arith.constant 0 : index
      %27 = vector.load %arg10[%c0_22, %c0_23] : memref<128x128xf32, #tpu.memory_space<vmem>>, vector<128x128xf32>
      tpu.vector_store %arg10[%c0_22, %c0_23], %26 {strides = array<i32>} : memref<128x128xf32, #tpu.memory_space<vmem>>, vector<128x128xf32>,
    } else {
    }
    return
  }
  func.func @transform_0(%arg0: i32, %arg1: i32, %arg2: i32) -> (i32, i32) {
    %c0_i32 = arith.constant 0 : i32
    %c0_i32_0 = arith.constant 0 : i32
    %c0_i32_1 = arith.constant 0 : i32
    return %c0_i32, %c0_i32_0 : i32, i32
  }
  func.func @transform_1(%arg0: i32, %arg1: i32, %arg2: i32) -> (i32, i32) {
    %c0_i32 = arith.constant 0 : i32
    return %arg0, %arg2 : i32, i32
  }
  func.func @transform_2(%arg0: i32, %arg1: i32, %arg2: i32) -> (i32, i32) {
    %c0_i32 = arith.constant 0 : i32
    return %arg2, %arg1 : i32, i32
  }
  func.func @transform_3(%arg0: i32, %arg1: i32, %arg2: i32) -> (i32, i32) {
    %c0_i32 = arith.constant 0 : i32
    return %arg0, %arg1 : i32, i32
  }
  func.func @transform_4(%arg0: i32, %arg1: i32, %arg2: i32) -> (i32, i32) {
    %c0_i32 = arith.constant 0 : i32
    %c0_i32_0 = arith.constant 0 : i32
    return %arg0, %c0_i32 : i32, i32
  }
  func.func @transform_5(%arg0: i32, %arg1: i32, %arg2: i32) -> (i32, i32) {
    %c0_i32 = arith.constant 0 : i32
    %c0_i32_0 = arith.constant 0 : i32
    return %arg0, %c0_i32 : i32, i32
  }
  func.func @transform_6(%arg0: i32, %arg1: i32, %arg2: i32) -> (i32, i32) {
    %c0_i32 = arith.constant 0 : i32
    return %arg0, %arg1 : i32, i32
  }
  func.func @transform_7(%arg0: i32, %arg1: i32, %arg2: i32) -> (i32, i32) {
    %c0_i32 = arith.constant 0 : i32
    return %arg0, %arg1 : i32, i32
  }
}

module attributes {stable_mosaic.version = 11 : i64} {
  func.func @_gcn_layer_kernel(%arg0: i32, %arg1: i32, %arg2: i32, %arg3: memref<1x1xf32, #tpu.memory_space<smem>>, %arg4: memref<128x128xi8, #tpu.memory_space<vmem>>, %arg5: memref<128x128xbf16, #tpu.memory_space<vmem>>, %arg6: memref<128x128xf32, #tpu.memory_space<vmem>>, %arg7: memref<128x1xf32, #tpu.memory_space<vmem>>, %arg8: memref<128x1xf32, #tpu.memory_space<vmem>>, %arg9: memref<128x128xbf16, #tpu.memory_space<vmem>>, %arg10: memref<128x128xf32, #tpu.memory_space<vmem>>, %arg11: memref<128x128xf32, #tpu.memory_space<vmem>>) attributes {dimension_semantics = [#tpu.dimension_semantics<parallel>, #tpu.dimension_semantics<parallel>, #tpu.dimension_semantics<arbitrary>], iteration_bounds = array<i64: 1, 1, 1>, scalar_prefetch = 0 : i64, scratch_operands = 1 : i64, tpu.core_type = #tpu.core_type<tc>, window_params = [{transform_indices = @transform_0, window_bounds = array<i64: 1, 1>}, {transform_indices = @transform_1, window_bounds = array<i64: 128, 128>}, {transform_indices = @transform_2, window_bounds = array<i64: 128, 128>}, {transform_indices = @transform_3, window_bounds = array<i64: 128, 128>}, {transform_indices = @transform_4, window_bounds = array<i64: 128, 1>}, {transform_indices = @transform_5, window_bounds = array<i64: 128, 1>}, {transform_indices = @transform_6, window_bounds = array<i64: 128, 128>}, {transform_indices = @transform_7, window_bounds = array<i64: 128, 128>}]} {
    %c0_i32 = arith.constant 0 : i32
    %0 = arith.cmpi eq, %arg2, %c0_i32 : i32
    %1 = arith.extui %0 : i1 to i32
    %c0_i32_0 = arith.constant 0 : i32
    %2 = arith.cmpi ne, %1, %c0_i32_0 : i32
    scf.if %2 {
      %cst_10 = arith.constant 0.000000e+00 : f32
      %13 = vector.broadcast %cst_10 : f32 to vector<128x128xf32>
      %c0_11 = arith.constant 0 : index
      %c0_12 = arith.constant 0 : index
      %14 = vector.load %arg11[%c0_11, %c0_12] : memref<128x128xf32, #tpu.memory_space<vmem>>, vector<128x128xf32>
      tpu.vector_store %arg11[%c0_11, %c0_12], %13 {strides = array<i32>} : memref<128x128xf32, #tpu.memory_space<vmem>>, vector<128x128xf32>,
    } else {
    }
    %c0 = arith.constant 0 : index
    %c0_1 = arith.constant 0 : index
    %3 = vector.load %arg4[%c0, %c0_1] : memref<128x128xi8, #tpu.memory_space<vmem>>, vector<128x128xi8>
    %4 = arith.sitofp %3 : vector<128x128xi8> to vector<128x128xbf16>
    %c0_2 = arith.constant 0 : index
    %c0_3 = arith.constant 0 : index
    %5 = vector.load %arg11[%c0_2, %c0_3] : memref<128x128xf32, #tpu.memory_space<vmem>>, vector<128x128xf32>
    %c0_4 = arith.constant 0 : index
    %c0_5 = arith.constant 0 : index
    %6 = vector.load %arg5[%c0_4, %c0_5] : memref<128x128xbf16, #tpu.memory_space<vmem>>, vector<128x128xbf16>
    %cst = arith.constant dense<0.000000e+00> : vector<128x128xf32>
    %7 = tpu.matmul %4, %6, %cst {dimension_numbers = #tpu.dot_dimension_numbers<[1], [0], [0], [1], [0, 0, 1, 1], [], []>} : vector<128x128xbf16>, vector<128x128xbf16>, vector<128x128xf32> -> vector<128x128xf32>
    %8 = arith.addf %5, %7 : vector<128x128xf32>
    %c0_6 = arith.constant 0 : index
    %c0_7 = arith.constant 0 : index
    %9 = vector.load %arg11[%c0_6, %c0_7] : memref<128x128xf32, #tpu.memory_space<vmem>>, vector<128x128xf32>
    tpu.vector_store %arg11[%c0_6, %c0_7], %8 {strides = array<i32>} : memref<128x128xf32, #tpu.memory_space<vmem>>, vector<128x128xf32>,
    %c0_i32_8 = arith.constant 0 : i32
    %10 = arith.cmpi eq, %arg2, %c0_i32_8 : i32
    %11 = arith.extui %10 : i1 to i32
    %c0_i32_9 = arith.constant 0 : i32
    %12 = arith.cmpi ne, %11, %c0_i32_9 : i32
    scf.if %12 {
      %c0_10 = arith.constant 0 : index
      %c0_11 = arith.constant 0 : index
      %13 = vector.load %arg11[%c0_10, %c0_11] : memref<128x128xf32, #tpu.memory_space<vmem>>, vector<128x128xf32>
      %c0_12 = arith.constant 0 : index
      %c0_13 = arith.constant 0 : index
      %14 = vector.load %arg7[%c0_12, %c0_13] : memref<128x1xf32, #tpu.memory_space<vmem>>, vector<128x1xf32>
      %15 = vector.broadcast %14 : vector<128x1xf32> to vector<128x128xf32>
      %16 = arith.mulf %13, %15 : vector<128x128xf32>
      %c0_14 = arith.constant 0 : index
      %c0_15 = arith.constant 0 : index
      %17 = vector.load %arg8[%c0_14, %c0_15] : memref<128x1xf32, #tpu.memory_space<vmem>>, vector<128x1xf32>
      %18 = vector.broadcast %17 : vector<128x1xf32> to vector<128x128xf32>
      %19 = arith.mulf %13, %18 : vector<128x128xf32>
      %20 = arith.truncf %19 : vector<128x128xf32> to vector<128x128xbf16>
      %c0_16 = arith.constant 0 : index
      %c0_17 = arith.constant 0 : index
      %21 = vector.load %arg9[%c0_16, %c0_17] : memref<128x128xbf16, #tpu.memory_space<vmem>>, vector<128x128xbf16>
      tpu.vector_store %arg9[%c0_16, %c0_17], %20 {strides = array<i32>} : memref<128x128xbf16, #tpu.memory_space<vmem>>, vector<128x128xbf16>,
      %c0_18 = arith.constant 0 : index
      %c0_19 = arith.constant 0 : index
      %22 = vector.load %arg6[%c0_18, %c0_19] : memref<128x128xf32, #tpu.memory_space<vmem>>, vector<128x128xf32>
      %c0_20 = arith.constant 0 : index
      %c0_21 = arith.constant 0 : index
      %23 = memref.load %arg3[%c0_20, %c0_21] : memref<1x1xf32, #tpu.memory_space<smem>>
      %24 = vector.broadcast %23 : f32 to vector<128x128xf32>
      %25 = arith.mulf %16, %24 : vector<128x128xf32>
      %26 = arith.addf %22, %25 : vector<128x128xf32>
      %c0_22 = arith.constant 0 : index
      %c0_23 = arith.constant 0 : index
      %27 = vector.load %arg10[%c0_22, %c0_23] : memref<128x128xf32, #tpu.memory_space<vmem>>, vector<128x128xf32>
      tpu.vector_store %arg10[%c0_22, %c0_23], %26 {strides = array<i32>} : memref<128x128xf32, #tpu.memory_space<vmem>>, vector<128x128xf32>,
    } else {
    }
    return
  }
  func.func @transform_0(%arg0: i32, %arg1: i32, %arg2: i32) -> (i32, i32) {
    %c0_i32 = arith.constant 0 : i32
    %c0_i32_0 = arith.constant 0 : i32
    %c0_i32_1 = arith.constant 0 : i32
    return %c0_i32, %c0_i32_0 : i32, i32
  }
  func.func @transform_1(%arg0: i32, %arg1: i32, %arg2: i32) -> (i32, i32) {
    %c0_i32 = arith.constant 0 : i32
    return %arg0, %arg2 : i32, i32
  }
  func.func @transform_2(%arg0: i32, %arg1: i32, %arg2: i32) -> (i32, i32) {
    %c0_i32 = arith.constant 0 : i32
    return %arg2, %arg1 : i32, i32
  }
  func.func @transform_3(%arg0: i32, %arg1: i32, %arg2: i32) -> (i32, i32) {
    %c0_i32 = arith.constant 0 : i32
    return %arg0, %arg1 : i32, i32
  }
  func.func @transform_4(%arg0: i32, %arg1: i32, %arg2: i32) -> (i32, i32) {
    %c0_i32 = arith.constant 0 : i32
    %c0_i32_0 = arith.constant 0 : i32
    return %arg0, %c0_i32 : i32, i32
  }
  func.func @transform_5(%arg0: i32, %arg1: i32, %arg2: i32) -> (i32, i32) {
    %c0_i32 = arith.constant 0 : i32
    %c0_i32_0 = arith.constant 0 : i32
    return %arg0, %c0_i32 : i32, i32
  }
  func.func @transform_6(%arg0: i32, %arg1: i32, %arg2: i32) -> (i32, i32) {
    %c0_i32 = arith.constant 0 : i32
    return %arg0, %arg1 : i32, i32
  }
  func.func @transform_7(%arg0: i32, %arg1: i32, %arg2: i32) -> (i32, i32) {
    %c0_i32 = arith.constant 0 : i32
    return %arg0, %arg1 : i32, i32
  }
}

module attributes {stable_mosaic.version = 11 : i64} {
  func.func @_decoder_kernel(%arg0: i32, %arg1: memref<128x128xbf16, #tpu.memory_space<vmem>>, %arg2: memref<128x128xbf16, #tpu.memory_space<vmem>>, %arg3: memref<128x128xbf16, #tpu.memory_space<vmem>>, %arg4: memref<128x128xf32, #tpu.memory_space<vmem>>, %arg5: memref<128x128xbf16, #tpu.memory_space<vmem>>, %arg6: memref<1x128xf32, #tpu.memory_space<vmem>>, %arg7: memref<1x128xf32, #tpu.memory_space<vmem>>, %arg8: memref<1x128xf32, #tpu.memory_space<vmem>>, %arg9: memref<128x128xf32, #tpu.memory_space<vmem>>) attributes {dimension_semantics = [#tpu.dimension_semantics<parallel>], iteration_bounds = array<i64: 1>, scalar_prefetch = 0 : i64, scratch_operands = 0 : i64, tpu.core_type = #tpu.core_type<tc>, window_params = [{transform_indices = @transform_0, window_bounds = array<i64: 128, 128>}, {transform_indices = @transform_1, window_bounds = array<i64: 128, 128>}, {transform_indices = @transform_2, window_bounds = array<i64: 128, 128>}, {transform_indices = @transform_3, window_bounds = array<i64: 128, 128>}, {pipeline_mode = #tpu.pipeline_mode<synchronous>, transform_indices = @transform_4, window_bounds = array<i64: 128, 128>}, {pipeline_mode = #tpu.pipeline_mode<synchronous>, transform_indices = @transform_5, window_bounds = array<i64: 1, 128>}, {pipeline_mode = #tpu.pipeline_mode<synchronous>, transform_indices = @transform_6, window_bounds = array<i64: 1, 128>}, {pipeline_mode = #tpu.pipeline_mode<synchronous>, transform_indices = @transform_7, window_bounds = array<i64: 1, 128>}, {transform_indices = @transform_8, window_bounds = array<i64: 128, 128>}]} {
    %c0 = arith.constant 0 : index
    %c0_0 = arith.constant 0 : index
    %0 = vector.load %arg1[%c0, %c0_0] : memref<128x128xbf16, #tpu.memory_space<vmem>>, vector<128x128xbf16>
    %c0_1 = arith.constant 0 : index
    %c0_2 = arith.constant 0 : index
    %1 = vector.load %arg5[%c0_1, %c0_2] : memref<128x128xbf16, #tpu.memory_space<vmem>>, vector<128x128xbf16>
    %c0_3 = arith.constant 0 : index
    %c0_4 = arith.constant 0 : index
    %2 = vector.load %arg6[%c0_3, %c0_4] : memref<1x128xf32, #tpu.memory_space<vmem>>, vector<1x128xf32>
    %c0_5 = arith.constant 0 : index
    %c0_6 = arith.constant 0 : index
    %3 = vector.load %arg7[%c0_5, %c0_6] : memref<1x128xf32, #tpu.memory_space<vmem>>, vector<1x128xf32>
    %c0_7 = arith.constant 0 : index
    %c0_8 = arith.constant 0 : index
    %4 = vector.load %arg8[%c0_7, %c0_8] : memref<1x128xf32, #tpu.memory_space<vmem>>, vector<1x128xf32>
    %c0_9 = arith.constant 0 : index
    %c0_10 = arith.constant 0 : index
    %5 = vector.load %arg4[%c0_9, %c0_10] : memref<128x128xf32, #tpu.memory_space<vmem>>, vector<128x128xf32>
    %c0_11 = arith.constant 0 : index
    %c0_12 = arith.constant 0 : index
    %6 = vector.load %arg2[%c0_11, %c0_12] : memref<128x128xbf16, #tpu.memory_space<vmem>>, vector<128x128xbf16>
    %7 = arith.mulf %0, %6 : vector<128x128xbf16>
    %cst = arith.constant dense<0.000000e+00> : vector<128x128xf32>
    %8 = tpu.matmul %7, %1, %cst {dimension_numbers = #tpu.dot_dimension_numbers<[1], [0], [0], [1], [0, 0, 1, 1], [], []>} : vector<128x128xbf16>, vector<128x128xbf16>, vector<128x128xf32> -> vector<128x128xf32>
    %9 = vector.broadcast %3 : vector<1x128xf32> to vector<128x128xf32>
    %10 = arith.addf %8, %9 : vector<128x128xf32>
    %c0_13 = arith.constant 0 : index
    %c0_14 = arith.constant 0 : index
    %11 = vector.load %arg3[%c0_13, %c0_14] : memref<128x128xbf16, #tpu.memory_space<vmem>>, vector<128x128xbf16>
    %12 = arith.mulf %0, %11 : vector<128x128xbf16>
    %cst_15 = arith.constant dense<0.000000e+00> : vector<128x128xf32>
    %13 = tpu.matmul %12, %1, %cst_15 {dimension_numbers = #tpu.dot_dimension_numbers<[1], [0], [0], [1], [0, 0, 1, 1], [], []>} : vector<128x128xbf16>, vector<128x128xbf16>, vector<128x128xf32> -> vector<128x128xf32>
    %14 = vector.broadcast %3 : vector<1x128xf32> to vector<128x128xf32>
    %15 = arith.addf %13, %14 : vector<128x128xf32>
    %16 = vector.extract_strided_slice %5 {offsets = [0, 0], sizes = [128, 1], strides = [1, 1]} : vector<128x128xf32> to vector<128x1xf32>
    %17 = vector.broadcast %16 : vector<128x1xf32> to vector<128x128xf32>
    %18 = vector.broadcast %2 : vector<1x128xf32> to vector<128x128xf32>
    %19 = arith.mulf %17, %18 : vector<128x128xf32>
    %20 = arith.addf %10, %19 : vector<128x128xf32>
    %cst_16 = arith.constant 0.000000e+00 : f32
    %21 = vector.broadcast %cst_16 : f32 to vector<128x128xf32>
    %22 = arith.cmpf ogt, %20, %21 : vector<128x128xf32>
    %cst_17 = arith.constant 0.000000e+00 : f32
    %23 = vector.broadcast %cst_17 : f32 to vector<128x128xf32>
    %24 = arith.minimumf %20, %23 : vector<128x128xf32>
    %25 = math.exp %24 : vector<128x128xf32>
    %cst_18 = arith.constant 1.000000e+00 : f32
    %26 = vector.broadcast %cst_18 : f32 to vector<128x128xf32>
    %27 = arith.subf %25, %26 : vector<128x128xf32>
    %28 = arith.select %22, %20, %27 : vector<128x128xi1>, vector<128x128xf32>
    %29 = vector.broadcast %4 : vector<1x128xf32> to vector<128x128xf32>
    %30 = arith.mulf %28, %29 : vector<128x128xf32>
    %cst_19 = arith.constant dense<0.000000e+00> : vector<128xf32>
    %31 = vector.multi_reduction <add>, %30, %cst_19 [1] : vector<128x128xf32> to vector<128xf32>
    %32 = vector.shape_cast %31 : vector<128xf32> to vector<128x1xf32>
    %33 = vector.extract_strided_slice %5 {offsets = [0, 1], sizes = [128, 1], strides = [1, 1]} : vector<128x128xf32> to vector<128x1xf32>
    %34 = vector.broadcast %33 : vector<128x1xf32> to vector<128x128xf32>
    %35 = vector.broadcast %2 : vector<1x128xf32> to vector<128x128xf32>
    %36 = arith.mulf %34, %35 : vector<128x128xf32>
    %37 = arith.addf %15, %36 : vector<128x128xf32>
    %cst_20 = arith.constant 0.000000e+00 : f32
    %38 = vector.broadcast %cst_20 : f32 to vector<128x128xf32>
    %39 = arith.cmpf ogt, %37, %38 : vector<128x128xf32>
    %cst_21 = arith.constant 0.000000e+00 : f32
    %40 = vector.broadcast %cst_21 : f32 to vector<128x128xf32>
    %41 = arith.minimumf %37, %40 : vector<128x128xf32>
    %42 = math.exp %41 : vector<128x128xf32>
    %cst_22 = arith.constant 1.000000e+00 : f32
    %43 = vector.broadcast %cst_22 : f32 to vector<128x128xf32>
    %44 = arith.subf %42, %43 : vector<128x128xf32>
    %45 = arith.select %39, %37, %44 : vector<128x128xi1>, vector<128x128xf32>
    %46 = vector.broadcast %4 : vector<1x128xf32> to vector<128x128xf32>
    %47 = arith.mulf %45, %46 : vector<128x128xf32>
    %cst_23 = arith.constant dense<0.000000e+00> : vector<128xf32>
    %48 = vector.multi_reduction <add>, %47, %cst_23 [1] : vector<128x128xf32> to vector<128xf32>
    %49 = vector.shape_cast %48 : vector<128xf32> to vector<128x1xf32>
    %50 = vector.extract_strided_slice %5 {offsets = [0, 2], sizes = [128, 1], strides = [1, 1]} : vector<128x128xf32> to vector<128x1xf32>
    %51 = vector.broadcast %50 : vector<128x1xf32> to vector<128x128xf32>
    %52 = vector.broadcast %2 : vector<1x128xf32> to vector<128x128xf32>
    %53 = arith.mulf %51, %52 : vector<128x128xf32>
    %54 = arith.addf %10, %53 : vector<128x128xf32>
    %cst_24 = arith.constant 0.000000e+00 : f32
    %55 = vector.broadcast %cst_24 : f32 to vector<128x128xf32>
    %56 = arith.cmpf ogt, %54, %55 : vector<128x128xf32>
    %cst_25 = arith.constant 0.000000e+00 : f32
    %57 = vector.broadcast %cst_25 : f32 to vector<128x128xf32>
    %58 = arith.minimumf %54, %57 : vector<128x128xf32>
    %59 = math.exp %58 : vector<128x128xf32>
    %cst_26 = arith.constant 1.000000e+00 : f32
    %60 = vector.broadcast %cst_26 : f32 to vector<128x128xf32>
    %61 = arith.subf %59, %60 : vector<128x128xf32>
    %62 = arith.select %56, %54, %61 : vector<128x128xi1>, vector<128x128xf32>
    %63 = vector.broadcast %4 : vector<1x128xf32> to vector<128x128xf32>
    %64 = arith.mulf %62, %63 : vector<128x128xf32>
    %cst_27 = arith.constant dense<0.000000e+00> : vector<128xf32>
    %65 = vector.multi_reduction <add>, %64, %cst_27 [1] : vector<128x128xf32> to vector<128xf32>
    %66 = vector.shape_cast %65 : vector<128xf32> to vector<128x1xf32>
    %67 = vector.extract_strided_slice %5 {offsets = [0, 3], sizes = [128, 1], strides = [1, 1]} : vector<128x128xf32> to vector<128x1xf32>
    %68 = vector.broadcast %67 : vector<128x1xf32> to vector<128x128xf32>
    %69 = vector.broadcast %2 : vector<1x128xf32> to vector<128x128xf32>
    %70 = arith.mulf %68, %69 : vector<128x128xf32>
    %71 = arith.addf %15, %70 : vector<128x128xf32>
    %cst_28 = arith.constant 0.000000e+00 : f32
    %72 = vector.broadcast %cst_28 : f32 to vector<128x128xf32>
    %73 = arith.cmpf ogt, %71, %72 : vector<128x128xf32>
    %cst_29 = arith.constant 0.000000e+00 : f32
    %74 = vector.broadcast %cst_29 : f32 to vector<128x128xf32>
    %75 = arith.minimumf %71, %74 : vector<128x128xf32>
    %76 = math.exp %75 : vector<128x128xf32>
    %cst_30 = arith.constant 1.000000e+00 : f32
    %77 = vector.broadcast %cst_30 : f32 to vector<128x128xf32>
    %78 = arith.subf %76, %77 : vector<128x128xf32>
    %79 = arith.select %73, %71, %78 : vector<128x128xi1>, vector<128x128xf32>
    %80 = vector.broadcast %4 : vector<1x128xf32> to vector<128x128xf32>
    %81 = arith.mulf %79, %80 : vector<128x128xf32>
    %cst_31 = arith.constant dense<0.000000e+00> : vector<128xf32>
    %82 = vector.multi_reduction <add>, %81, %cst_31 [1] : vector<128x128xf32> to vector<128xf32>
    %83 = vector.shape_cast %82 : vector<128xf32> to vector<128x1xf32>
    %84 = tpu.iota {dimensions = array<i32: 1>} : vector<128x128xi32>
    %c0_i32 = arith.constant 0 : i32
    %85 = vector.broadcast %c0_i32 : i32 to vector<128x128xi32>
    %86 = arith.cmpi eq, %84, %85 : vector<128x128xi32>
    %cst_32 = arith.constant 0.000000e+00 : f32
    %87 = vector.shape_cast %32 : vector<128x1xf32> to vector<128x1xf32>
    %88 = vector.broadcast %87 : vector<128x1xf32> to vector<128x128xf32>
    %89 = vector.broadcast %cst_32 : f32 to vector<128x128xf32>
    %90 = arith.select %86, %88, %89 : vector<128x128xi1>, vector<128x128xf32>
    %c1_i32 = arith.constant 1 : i32
    %91 = vector.broadcast %c1_i32 : i32 to vector<128x128xi32>
    %92 = arith.cmpi eq, %84, %91 : vector<128x128xi32>
    %93 = vector.shape_cast %49 : vector<128x1xf32> to vector<128x1xf32>
    %94 = vector.broadcast %93 : vector<128x1xf32> to vector<128x128xf32>
    %95 = arith.select %92, %94, %90 : vector<128x128xi1>, vector<128x128xf32>
    %c2_i32 = arith.constant 2 : i32
    %96 = vector.broadcast %c2_i32 : i32 to vector<128x128xi32>
    %97 = arith.cmpi eq, %84, %96 : vector<128x128xi32>
    %98 = vector.shape_cast %66 : vector<128x1xf32> to vector<128x1xf32>
    %99 = vector.broadcast %98 : vector<128x1xf32> to vector<128x128xf32>
    %100 = arith.select %97, %99, %95 : vector<128x128xi1>, vector<128x128xf32>
    %c3_i32 = arith.constant 3 : i32
    %101 = vector.broadcast %c3_i32 : i32 to vector<128x128xi32>
    %102 = arith.cmpi eq, %84, %101 : vector<128x128xi32>
    %103 = vector.shape_cast %83 : vector<128x1xf32> to vector<128x1xf32>
    %104 = vector.broadcast %103 : vector<128x1xf32> to vector<128x128xf32>
    %105 = arith.select %102, %104, %100 : vector<128x128xi1>, vector<128x128xf32>
    %c0_33 = arith.constant 0 : index
    %c0_34 = arith.constant 0 : index
    %106 = vector.load %arg9[%c0_33, %c0_34] : memref<128x128xf32, #tpu.memory_space<vmem>>, vector<128x128xf32>
    tpu.vector_store %arg9[%c0_33, %c0_34], %105 {strides = array<i32>} : memref<128x128xf32, #tpu.memory_space<vmem>>, vector<128x128xf32>,
    return
  }
  func.func @transform_0(%arg0: i32) -> (i32, i32) {
    %c0_i32 = arith.constant 0 : i32
    %c0_i32_0 = arith.constant 0 : i32
    return %arg0, %c0_i32 : i32, i32
  }
  func.func @transform_1(%arg0: i32) -> (i32, i32) {
    %c0_i32 = arith.constant 0 : i32
    %c0_i32_0 = arith.constant 0 : i32
    return %arg0, %c0_i32 : i32, i32
  }
  func.func @transform_2(%arg0: i32) -> (i32, i32) {
    %c0_i32 = arith.constant 0 : i32
    %c0_i32_0 = arith.constant 0 : i32
    return %arg0, %c0_i32 : i32, i32
  }
  func.func @transform_3(%arg0: i32) -> (i32, i32) {
    %c0_i32 = arith.constant 0 : i32
    %c0_i32_0 = arith.constant 0 : i32
    return %arg0, %c0_i32 : i32, i32
  }
  func.func @transform_4(%arg0: i32) -> (i32, i32) {
    %c0_i32 = arith.constant 0 : i32
    %c0_i32_0 = arith.constant 0 : i32
    %c0_i32_1 = arith.constant 0 : i32
    return %c0_i32, %c0_i32_0 : i32, i32
  }
  func.func @transform_5(%arg0: i32) -> (i32, i32) {
    %c0_i32 = arith.constant 0 : i32
    %c0_i32_0 = arith.constant 0 : i32
    %c0_i32_1 = arith.constant 0 : i32
    return %c0_i32, %c0_i32_0 : i32, i32
  }
  func.func @transform_6(%arg0: i32) -> (i32, i32) {
    %c0_i32 = arith.constant 0 : i32
    %c0_i32_0 = arith.constant 0 : i32
    %c0_i32_1 = arith.constant 0 : i32
    return %c0_i32, %c0_i32_0 : i32, i32
  }
  func.func @transform_7(%arg0: i32) -> (i32, i32) {
    %c0_i32 = arith.constant 0 : i32
    %c0_i32_0 = arith.constant 0 : i32
    %c0_i32_1 = arith.constant 0 : i32
    return %c0_i32, %c0_i32_0 : i32, i32
  }
  func.func @transform_8(%arg0: i32) -> (i32, i32) {
    %c0_i32 = arith.constant 0 : i32
    %c0_i32_0 = arith.constant 0 : i32
    return %arg0, %c0_i32 : i32, i32
  }
}

</mosaic_0001>

<bundles_post_ra>
// kernel: msgcn_forward.8
= control target key start
LH: loop header
LB: loop body
LE: loop exit
PB: predicated region body
PF: predicated region fallthrough
CT: control target
= control target key end

     0   :  { %v865_v2 = vmov 0   ;;  %s1212_s0 = inlined_call_operand.<no memory space> [shape: f32[1,1], index: 0, kind: input, shape index: {}]   ;;  %s1213_s1 = inlined_call_operand.vmem [shape: s8[128,128], index: 1, kind: input, shape index: {}]   ;;  %s1214_s2 = inlined_call_operand.vmem [shape: bf16[128,128], index: 2, kind: input, shape index: {}]   ;;  %s1215_s3 = inlined_call_operand.vmem [shape: f32[128,128], index: 3, kind: input, shape index: {}, may-alias: {3,7}]   ;;  %s1216_s4 = inlined_call_operand.vmem [shape: f32[128,1], index: 4, kind: input, shape index: {}]   ;;  %s1217_s5 = inlined_call_operand.vmem [shape: f32[128,1], index: 5, kind: input, shape index: {}]   ;;  %s1218_s6 = inlined_call_operand.hbm [shape: bf16[128,128], index: 6, kind: output, shape index: {0}]   ;;  %s1219_s7 = inlined_call_operand.vmem [shape: f32[128,128], index: 7, kind: output, shape index: {1}, may-alias: {3,7}]  }
   0x1   :  { %v290_v0 = vld [vmem:[%s1216_s4 + $0x10] sm:$0xff]  ;;  %v288_v1 = vld [vmem:[%s1216_s4] sm:$0xff]  ;;  %834 = vset.pattern.permute.xlu1 %v865_v2  ;;  %833 = vset.pattern.permute.xlu0 %v865_v2  ;;  %v835_v3 = vld [vmem:[%s1214_s2 + $0x38] sm:$0xff]  }
   0x2   :  { %316 = vperm.xlu1 %834, %v290_v0   ;;  %306 = vperm.xlu0 %833, %v288_v1   ;;  %v291_v4 = vld [vmem:[%s1216_s4 + $0x18] sm:$0xff]  ;;  %v289_v5 = vld [vmem:[%s1216_s4 + $0x8] sm:$0xff]  ;;  %v836_v6 = vld [vmem:[%s1214_s2 + $0x30] sm:$0xff]  }
   0x3   :  { %781 = vmatprep.subr.bf16.mxu0 %v835_v3  ;;  %813 = vmatprep.subr.bf16.mxu1 %v835_v3  ;;  %v837_v7 = vld [vmem:[%s1214_s2 + $0x28] sm:$0xff]   ;;  %v292_v9 = vld [vmem:[%s1216_s4 + $0x20] sm:$0xff]  ;;  %v295_v11 = vld [vmem:[%s1216_s4 + $0x38] sm:$0xff] }
   0x4   :  { %782 = vmatpush3.bf16.msra.mxu0 %v835_v3  ;;  %821 = vmatpush3.bf16.msra.mxu1 %v835_v3  ;;  %v293_v8 = vld [vmem:[%s1216_s4 + $0x28] sm:$0xff]  ;;  %v838_v10 = vld [vmem:[%s1214_s2 + $0x20] sm:$0xff]   ;;  %v294_v12 = vld [vmem:[%s1216_s4 + $0x30] sm:$0xff] }
   0x5   :  { %783 = vmatprep.subr.bf16.mxu0 %v836_v6  ;;  %814 = vmatprep.subr.bf16.mxu1 %v836_v6  ;;  %v839_v13 = vld [vmem:[%s1214_s2 + $0x18] sm:$0xff]   ;;  %v48_v14 = vld [vmem:[%s1213_s1] sm:$0xff]  ;;  %v50_v15 = vld [vmem:[%s1213_s1 + $0x10] sm:$0xff] }
   0x6   :  { %321 = vperm.xlu1 %834, %v291_v4   ;;  %311 = vperm.xlu0 %833, %v289_v5   ;;  %v297_v16 = vld [vmem:[%s1216_s4 + $0x48] sm:$0xff]  ;;  %v296_v17 = vld [vmem:[%s1216_s4 + $0x40] sm:$0xff]  ;;  %v52_v18 = vunpack.c.l.s8.bf16 %v48_v14  ;;  %v56_v19 = vunpack.c.l.s8.bf16 %v50_v15  ;;  %v840_v20 = vld [vmem:[%s1214_s2 + $0x10] sm:$0xff]  }
   0x7   :  { %v299_v21 = vld [vmem:[%s1216_s4 + $0x58] sm:$0xff]  ;;  %v298_v22 = vld [vmem:[%s1216_s4 + $0x50] sm:$0xff] }
   0x8   :  { %784 = vmatpush3.bf16.msra.mxu0 %v836_v6  ;;  %822 = vmatpush3.bf16.msra.mxu1 %v836_v6 }
   0x9   :  { %785 = vmatprep.subr.bf16.mxu0 %v837_v7  ;;  %815 = vmatprep.subr.bf16.mxu1 %v837_v7 }
   0xa   :  { %331 = vperm.xlu1 %834, %v293_v8   ;;  %326 = vperm.xlu0 %833, %v292_v9  }
   0xb   :  { %797 = vmatprep.mubr.bf16.mxu0 %v52_v18  ;;  %805 = vmatprep.mubr.bf16.mxu1 %v56_v19 }
   0xc   :  { %786 = vmatpush3.bf16.msra.mxu0 %v837_v7  ;;  %823 = vmatpush3.bf16.msra.mxu1 %v837_v7 }
   0xd   :  { %787 = vmatprep.subr.bf16.mxu0 %v838_v10  ;;  %816 = vmatprep.subr.bf16.mxu1 %v838_v10 }
   0xe   :  { %341 = vperm.xlu1 %834, %v295_v11   ;;  %336 = vperm.xlu0 %833, %v294_v12  }
  0x10   :  { %788 = vmatpush3.bf16.msra.mxu0 %v838_v10  ;;  %824 = vmatpush3.bf16.msra.mxu1 %v838_v10 }
  0x11   :  { %789 = vmatprep.subr.bf16.mxu0 %v839_v13  ;;  %817 = vmatprep.subr.bf16.mxu1 %v839_v13 }
  0x12   :  { %351 = vperm.xlu1 %834, %v297_v16   ;;  %346 = vperm.xlu0 %833, %v296_v17  }
  0x14   :  { %790 = vmatpush3.bf16.msra.mxu0 %v839_v13  ;;  %825 = vmatpush3.bf16.msra.mxu1 %v839_v13 }
  0x15   :  { %14 = vsyncpa [#allocation5], 0  ;;  %791 = vmatprep.subr.bf16.mxu0 %v840_v20  ;;  %818 = vmatprep.subr.bf16.mxu1 %v840_v20  ;;  %v841_v23 = vld [vmem:[%s1214_s2 + $0x8] sm:$0xff]   ;;  %v300_v25 = vld [vmem:[%s1216_s4 + $0x60] sm:$0xff]  ;;  %v53_v33 = vunpack.c.h.s8.bf16 %v48_v14  ;;  %v57_v34 = vunpack.c.h.s8.bf16 %v50_v15  ;;  %v1072_v17 = vstv %s1212_s0  ;;  %s866_s9 = smov [#allocation4]  }
  0x16   :  { %361 = vperm.xlu1 %834, %v299_v21   ;;  %356 = vperm.xlu0 %833, %v298_v22   ;;  %v301_v24 = vld [vmem:[%s1216_s4 + $0x68] sm:$0xff]  ;;  %v842_v26 = vld [vmem:[%s1214_s2] sm:$0xff]   ;;  %v303_v27 = vld [vmem:[%s1216_s4 + $0x78] sm:$0xff]  ;;  %s663_s2 = sshll.u32 %s866_s9, 4  ;;  %s664_s2 = int_to_ptr.vmem [resolvable:$true] %s663_s2 }
  0x17   :  { %v302_v28 = vld [vmem:[%s1216_s4 + $0x70] sm:$0xff]  ;;  %v49_v29 = vld [vmem:[%s1213_s1 + $0x8] sm:$0xff]  ;;  %v51_v30 = vld [vmem:[%s1213_s1 + $0x18] sm:$0xff]  ;;  %p848_p1 = scmp.lt.s32.totalorder %s664_s2, %s664_s2 }
  0x18   :  { %792 = vmatpush3.bf16.msra.mxu0 %v840_v20  ;;  %826 = vmatpush3.bf16.msra.mxu1 %v840_v20  ;;  %v401_v31 = vld [vmem:[%s1217_s5 + $0x8] sm:$0xff]  ;;  %v400_v32 = vld [vmem:[%s1217_s5] sm:$0xff]  ;;  %v54_v35 = vunpack.c.l.s8.bf16 %v49_v29  ;;  %v58_v36 = vunpack.c.l.s8.bf16 %v51_v30  ;;  %v403_v37 = vld [vmem:[%s1217_s5 + $0x18] sm:$0xff]  ;;  %v55_v41 = vunpack.c.h.s8.bf16 %v49_v29  ;;  %v59_v42 = vunpack.c.h.s8.bf16 %v51_v30 }
  0x19   :  { %793 = vmatprep.subr.bf16.mxu0 %v841_v23  ;;  %819 = vmatprep.subr.bf16.mxu1 %v841_v23  ;;  %v402_v38 = vld [vmem:[%s1217_s5 + $0x10] sm:$0xff]  ;;  %v405_v39 = vld [vmem:[%s1217_s5 + $0x28] sm:$0xff]  ;;  %v404_v40 = vld [vmem:[%s1217_s5 + $0x20] sm:$0xff] }
  0x1a   :  { %371 = vperm.xlu1 %834, %v301_v24   ;;  %366 = vperm.xlu0 %833, %v300_v25   ;;  %v407_v43 = vld [vmem:[%s1217_s5 + $0x38] sm:$0xff]  ;;  %v406_v44 = vld [vmem:[%s1217_s5 + $0x30] sm:$0xff]  ;;  %v409_v45 = vld [vmem:[%s1217_s5 + $0x48] sm:$0xff] }
  0x1b   :  { %v408_v46 = vld [vmem:[%s1217_s5 + $0x40] sm:$0xff]  ;;  %v411_v47 = vld [vmem:[%s1217_s5 + $0x58] sm:$0xff]  ;;  %v410_v48 = vld [vmem:[%s1217_s5 + $0x50] sm:$0xff] }
  0x1c   :  { %794 = vmatpush3.bf16.msra.mxu0 %v841_v23  ;;  %827 = vmatpush3.bf16.msra.mxu1 %v841_v23  ;;  %v413_v49 = vld [vmem:[%s1217_s5 + $0x68] sm:$0xff]  ;;  %v412_v50 = vld [vmem:[%s1217_s5 + $0x60] sm:$0xff]  ;;  %v415_v51 = vld [vmem:[%s1217_s5 + $0x78] sm:$0xff] }
  0x1d   :  { %795 = vmatprep.subr.bf16.mxu0 %v842_v26  ;;  %820 = vmatprep.subr.bf16.mxu1 %v842_v26  ;;  %v414_v52 = vld [vmem:[%s1217_s5 + $0x70] sm:$0xff] }
  0x1e   :  { %381 = vperm.xlu1 %834, %v303_v27   ;;  %376 = vperm.xlu0 %833, %v302_v28   ;;  %v594_v22 = vld [vmem:[%s1215_s3 + $0x10] sm:$0xff] }
  0x1f   :  { %v602_v23 = vld [vmem:[%s1215_s3 + $0x50] sm:$0xff] }
  0x20   :  { %796 = vmatpush3.bf16.msra.mxu0 %v842_v26  ;;  %828 = vmatpush3.bf16.msra.mxu1 %v842_v26 }
  0x22   :  { %423 = vperm.xlu1 %834, %v401_v31   ;;  %418 = vperm.xlu0 %833, %v400_v32  }
  0x23   :  { %798 = vmatmul.mubr.bf16.vlgmr.msra.gmra.mxu0 %v53_v33  ;;  %806 = vmatmul.mubr.bf16.vlgmr.msra.gmra.mxu1 %v57_v34  ;;  %v592_v33 = vld [vmem:[%s1215_s3] sm:$0xff] }
  0x24   :  { %801 = vmatprep.mubr.bf16.mxu0 %v54_v35  ;;  %809 = vmatprep.mubr.bf16.mxu1 %v58_v36 }
  0x26   :  { %433 = vperm.xlu1 %834, %v403_v37   ;;  %428 = vperm.xlu0 %833, %v402_v38  }
  0x2a   :  { %443 = vperm.xlu1 %834, %v405_v39   ;;  %438 = vperm.xlu0 %833, %v404_v40  }
  0x2b   :  { %802 = vmatmul.mubr.bf16.gmra.mxu0 %v55_v41  ;;  %810 = vmatmul.mubr.bf16.gmra.mxu1 %v59_v42  ;;  %v600_v41 = vld [vmem:[%s1215_s3 + $0x40] sm:$0xff] }
  0x2e   :  { %453 = vperm.xlu1 %834, %v407_v43   ;;  %448 = vperm.xlu0 %833, %v406_v44  }
  0x32   :  { %463 = vperm.xlu1 %834, %v409_v45   ;;  %458 = vperm.xlu0 %833, %v408_v46   ;;  %v595_v45 = vld [vmem:[%s1215_s3 + $0x18] sm:$0xff] }
  0x36   :  { %473 = vperm.xlu1 %834, %v411_v47   ;;  %468 = vperm.xlu0 %833, %v410_v48  }
  0x3a   :  { %483 = vperm.xlu1 %834, %v413_v49   ;;  %478 = vperm.xlu0 %833, %v412_v50  }
  0x3e   :  { %493 = vperm.xlu1 %834, %v415_v51   ;;  %488 = vperm.xlu0 %833, %v414_v52  }
  0x7d   :  { %v307_v53 = vpop.permute.xlu0 %306  ;;  %v317_v54 = vpop.permute.xlu1 %316 }
  0x81   :  { %v1041_v55 = vpop.permute.xlu0 %311  ;;  %v322_v56 = vpop.permute.xlu1 %321 }
  0x85   :  { %v1043_v57 = vpop.permute.xlu0 %326  ;;  %v1045_v58 = vpop.permute.xlu1 %331 }
  0x89   :  { %v1047_v59 = vpop.permute.xlu0 %336  ;;  %v1049_v60 = vpop.permute.xlu1 %341 }
  0x8d   :  { %v347_v61 = vpop.permute.xlu0 %346  ;;  %v1051_v62 = vpop.permute.xlu1 %351 }
  0x91   :  { %v357_v63 = vpop.permute.xlu0 %356  ;;  %v362_v0 = vpop.permute.xlu1 %361 }
  0x95   :  { %v1053_v1 = vpop.permute.xlu0 %366  ;;  %v1055_v2 = vpop.permute.xlu1 %371 }
  0x99   :  { %v1057_v3 = vpop.permute.xlu0 %376  ;;  %v1059_v4 = vpop.permute.xlu1 %381 }
  0x9d   :  { %v419_v5 = vpop.permute.xlu0 %418  ;;  %v424_v6 = vpop.permute.xlu1 %423 }
  0xa1   :  { %v429_v7 = vpop.permute.xlu0 %428  ;;  %v434_v8 = vpop.permute.xlu1 %433 }
  0xa5   :  { %v1061_v9 = vpop.permute.xlu0 %438  ;;  %v1063_v10 = vpop.permute.xlu1 %443 }
  0xa9   :  { %v1065_v11 = vpop.permute.xlu0 %448  ;;  %v1067_v12 = vpop.permute.xlu1 %453 }
  0xad   :  { %v459_v13 = vpop.permute.xlu0 %458  ;;  %v464_v14 = vpop.permute.xlu1 %463 }
  0xb1   :  { %v469_v15 = vpop.permute.xlu0 %468  ;;  %v474_v19 = vpop.permute.xlu1 %473 }
  0xb5   :  { %v1080_v26 = vpop.permute.xlu0 %478  ;;  %v1097_v50 = vpop.permute.xlu1 %483 }
  0xe3   :  { %v799_v16 = vpop.f32.mrf.mxu0  ;;  %v807_v18 = vpop.f32.mrf.mxu1 }
  0xe4   :  { %v386_v20 = vmul.f32 %v799_v16, %v317_v54  ;;  %v394_v21 = vmul.f32 %v807_v18, %v357_v63  ;;  %v498_v27 = vmul.f32 %v799_v16, %v429_v7  ;;  %v506_v31 = vmul.f32 %v807_v18, %v469_v15  ;;  %v489_v15 = vpop.permute.xlu0 %488 }
  0xe5   :  { %v174_v24 = vpop.f32.mrf.mxu0  ;;  %v206_v25 = vpop.f32.mrf.mxu1 }
  0xe6   :  { %v612_v28 = vmul.f32 %v1072_v17, %v386_v20  ;;  %v620_v29 = vmul.f32 %v1072_v17, %v394_v21  ;;  %v384_v30 = vmul.f32 %v307_v53, %v174_v24  ;;  %v496_v32 = vmul.f32 %v419_v5, %v174_v24 }
  0xe7   :  { %v392_v34 = vmul.f32 %v347_v61, %v206_v25  ;;  %v1087_v35 = vmul.f32 %v459_v13, %v206_v25  ;;  %v800_v36 = vpop.f32.mrf.mxu0  ;;  %v808_v37 = vpop.f32.mrf.mxu1 }
  0xe8   :  { %v628_v38 = vadd.f32 %v612_v28, %v594_v22  ;;  %v636_v39 = vadd.f32 %v620_v29, %v602_v23  ;;  %v610_v40 = vmul.f32 %v1072_v17, %v384_v30  ;;  %v387_v42 = vmul.f32 %v800_v36, %v322_v56 }
  0xe9   :  { %v618_v43 = vmul.f32 %v1072_v17, %v392_v34  ;;  %v499_v44 = vmul.f32 %v800_v36, %v434_v8  ;;  %v395_v46 = vmul.f32 %v808_v37, %v362_v0  ;;  %v507_v47 = vmul.f32 %v808_v37, %v474_v19  ;;  %v177_v48 = vpop.f32.mrf.mxu0  ;;  %v209_v49 = vpop.f32.mrf.mxu1 }
  0xea   :  { %644 = vst [vmem:[%s1219_s7 + $0x10] sm:$0xff] %v628_v38  ;;  %652 = vst [vmem:[%s1219_s7 + $0x50] sm:$0xff] %v636_v39  ;;  %v626_v51 = vadd.f32 %v610_v40, %v592_v33  ;;  %v613_v52 = vmul.f32 %v1072_v17, %v387_v42  ;;  %v385_v54 = vmul.f32 %v1041_v55, %v177_v48 }
  0xeb   :  { %v497_v56 = vmul.f32 %v424_v6, %v177_v48  ;;  %v634_v61 = vadd.f32 %v618_v43, %v600_v41  ;;  %v726_v63 = vpack.c.bf16 %v499_v44, %v498_v27  ;;  %v746_v0 = vpack.c.bf16 %v507_v47, %v506_v31  ;;  %v803_v8 = vpop.f32.mrf.mxu0  ;;  %v811_v13 = vpop.f32.mrf.mxu1 }
  0xec   :  { %v621_v5 = vmul.f32 %v1072_v17, %v395_v46  ;;  %v629_v16 = vadd.f32 %v613_v52, %v595_v45  ;;  %v611_v55 = vmul.f32 %v1072_v17, %v385_v54  ;;  %v393_v6 = vmul.f32 %v1051_v62, %v209_v49 }
  0xed   :  { %v721_v18 = vpack.c.bf16 %v497_v56, %v496_v32  ;;  %758 = vst [vmem:[#allocation4 + $0x8] sm:$0xff] %v726_v63   ;;  %762 = vst [vmem:[#allocation4 + $0x28] sm:$0xff] %v746_v0   ;;  %v505_v20 = vmul.f32 %v464_v14, %v209_v49  ;;  %v390_v22 = vmul.f32 %v803_v8, %v1047_v59  ;;  %v190_v24 = vpop.f32.mrf.mxu0  ;;  %v222_v25 = vpop.f32.mrf.mxu1 }
  0xee   :  { %v502_v23 = vmul.f32 %v803_v8, %v1065_v11  ;;  %v619_v27 = vmul.f32 %v1072_v17, %v393_v6  ;;  %v398_v28 = vmul.f32 %v811_v13, %v1057_v3  ;;  %v510_v29 = vmul.f32 %v811_v13, %v489_v15 }
  0xef   :  { %722 = vst [vmem:[#allocation4] sm:$0xff] %v721_v18   ;;  %v741_v59 = vpack.c.bf16 %v505_v20, %v1087_v35  ;;  %v616_v11 = vmul.f32 %v1072_v17, %v390_v22  ;;  %v388_v31 = vmul.f32 %v1043_v57, %v190_v24  ;;  %v500_v32 = vmul.f32 %v1061_v9, %v190_v24  ;;  %v804_v33 = vpop.f32.mrf.mxu0  ;;  %v812_v34 = vpop.f32.mrf.mxu1 }
  0xf0   :  { %v624_v36 = vmul.f32 %v1072_v17, %v398_v28  ;;  %v396_v37 = vmul.f32 %v1053_v1, %v222_v25  ;;  %v508_v38 = vmul.f32 %v1080_v26, %v222_v25  ;;  %v494_v57 = vpop.permute.xlu1 %493  ;;  %v391_v41 = vmul.f32 %v804_v33, %v1049_v60 }
  0xf1   :  { %v603_v53 = vld [vmem:[%s1215_s3 + $0x58] sm:$0xff]  ;;  %v593_v7 = vld [vmem:[%s1215_s3 + $0x8] sm:$0xff]  ;;  %761 = vst [vmem:[#allocation4 + $0x20] sm:$0xff] %v741_v59   ;;  %v614_v39 = vmul.f32 %v1072_v17, %v388_v31  ;;  %v503_v42 = vmul.f32 %v804_v33, %v1067_v12  ;;  %v193_v43 = vpop.f32.mrf.mxu0  ;;  %v399_v45 = vmul.f32 %v812_v34, %v1059_v4  ;;  %v511_v46 = vmul.f32 %v812_v34, %v494_v57  ;;  %v225_v47 = vpop.f32.mrf.mxu1 }
  0xf2   :  { %642 = vst [vmem:[%s1219_s7] sm:$0xff] %v626_v51  ;;  %650 = vst [vmem:[%s1219_s7 + $0x40] sm:$0xff] %v634_v61  ;;  %v637_v19 = vadd.f32 %v621_v5, %v603_v53  ;;  %v627_v62 = vadd.f32 %v611_v55, %v593_v7  ;;  %v622_v26 = vmul.f32 %v1072_v17, %v396_v37 }
  0xf3   :  { %v736_v12 = vpack.c.bf16 %v503_v42, %v502_v23  ;;  %v617_v48 = vmul.f32 %v1072_v17, %v391_v41  ;;  %v389_v51 = vmul.f32 %v1045_v58, %v193_v43  ;;  %v756_v52 = vpack.c.bf16 %v511_v46, %v510_v29 }
  0xf4   :  { %v625_v53 = vmul.f32 %v1072_v17, %v399_v45  ;;  %v501_v54 = vmul.f32 %v1063_v10, %v193_v43  ;;  %v397_v63 = vmul.f32 %v1055_v2, %v225_v47  ;;  %v509_v0 = vmul.f32 %v1097_v50, %v225_v47 }
  0xf5   :  { %760 = vst [vmem:[#allocation4 + $0x18] sm:$0xff] %v736_v12   ;;  %v615_v61 = vmul.f32 %v1072_v17, %v389_v51  ;;  %764 = vst [vmem:[#allocation4 + $0x38] sm:$0xff] %v756_v52  }
  0xf6   :  { %v731_v5 = vpack.c.bf16 %v501_v54, %v500_v32  ;;  %v751_v2 = vpack.c.bf16 %v509_v0, %v508_v38  ;;  %v623_v50 = vmul.f32 %v1072_v17, %v397_v63 }
  0xf8   :  { %759 = vst [vmem:[#allocation4 + $0x10] sm:$0xff] %v731_v5   ;;  %763 = vst [vmem:[#allocation4 + $0x30] sm:$0xff] %v751_v2  }
  0xf9   :  { %v601_v21 = vld [vmem:[%s1215_s3 + $0x48] sm:$0xff] }
  0xfa   :  { %645 = vst [vmem:[%s1219_s7 + $0x18] sm:$0xff] %v629_v16  ;;  %v635_v3 = vadd.f32 %v619_v27, %v601_v21 }
 0x101   :  { %v598_v14 = vld [vmem:[%s1215_s3 + $0x30] sm:$0xff] }
 0x102   :  { %653 = vst [vmem:[%s1219_s7 + $0x58] sm:$0xff] %v637_v19  ;;  %v632_v9 = vadd.f32 %v616_v11, %v598_v14 }
 0x109   :  { %v606_v30 = vld [vmem:[%s1215_s3 + $0x70] sm:$0xff] }
 0x10a   :  { %643 = vst [vmem:[%s1219_s7 + $0x8] sm:$0xff] %v627_v62  ;;  %v640_v1 = vadd.f32 %v624_v36, %v606_v30 }
 0x111   :  { %v596_v35 = vld [vmem:[%s1215_s3 + $0x20] sm:$0xff] }
 0x112   :  { %v604_v40 = vld [vmem:[%s1215_s3 + $0x60] sm:$0xff]  ;;  %v630_v60 = vadd.f32 %v614_v39, %v596_v35 }
 0x113   :  { %651 = vst [vmem:[%s1219_s7 + $0x48] sm:$0xff] %v635_v3  ;;  %v638_v4 = vadd.f32 %v622_v26, %v604_v40 }
 0x11a   :  { %v599_v44 = vld [vmem:[%s1215_s3 + $0x38] sm:$0xff] }
 0x11b   :  { %648 = vst [vmem:[%s1219_s7 + $0x30] sm:$0xff] %v632_v9  ;;  %v633_v58 = vadd.f32 %v617_v48, %v599_v44 }
 0x122   :  { %v607_v49 = vld [vmem:[%s1215_s3 + $0x78] sm:$0xff] }
 0x123   :  { %656 = vst [vmem:[%s1219_s7 + $0x70] sm:$0xff] %v640_v1  ;;  %v641_v10 = vadd.f32 %v625_v53, %v607_v49 }
 0x12a   :  { %v597_v56 = vld [vmem:[%s1215_s3 + $0x28] sm:$0xff] }
 0x12b   :  { %646 = vst [vmem:[%s1219_s7 + $0x20] sm:$0xff] %v630_v60  ;;  %654 = vst [vmem:[%s1219_s7 + $0x60] sm:$0xff] %v638_v4  ;;  %v631_v8 = vadd.f32 %v615_v61, %v597_v56 }
 0x132   :  { %v605_v7 = vld [vmem:[%s1215_s3 + $0x68] sm:$0xff]  ;;  %s843_s3 = scalar_lea.vmem %s664_s2, 1024 }
 0x133   :  { %649 = vst [vmem:[%s1219_s7 + $0x38] sm:$0xff] %v633_v58  ;;  %657 = vst [vmem:[%s1219_s7 + $0x78] sm:$0xff] %v641_v10  ;;  %v639_v13 = vadd.f32 %v623_v50, %v605_v7  ;;  %p844_p0 = scmp.ne.s32.totalorder %s664_s2, %s843_s3  ;;  %p849_p2 = scmp.lt.s32.totalorder %s843_s3, %s843_s3 }
 0x134   :  { %647 = vst [vmem:[%s1219_s7 + $0x28] sm:$0xff] %v631_v8 }
 0x135   :  { %p850_p3 = por %p849_p2, %p848_p1 }
 0x137   :  { %p851_p4 = pnand %p850_p3, %p844_p0 }
 0x139   :  { %854 = shalt.err (!%p851_p4)
}
 0x13a   :  { %s867_s22 = smov 64   ;;  %s868_s23 = smov 4   ;;  %655 = vst [vmem:[%s1219_s7 + $0x68] sm:$0xff] %v639_v13 }
 0x13b   :  { %669 = dma.vmem_to_hbm [thread:$0]  %s664_s2, 1024, %s1218_s6, [#allocation5], %s867_s22, %s867_s22, %s868_s23  }
 0x13c   :  { %863 = dma.done.wait [#allocation5], 1024  }
 0x13d   :  { %864 = vsyncadd [#allocation5], 4294966272 }
 0x13e   :  { %677 = vsyncpa [#allocation5], 1 }

// kernel: msgcn_forward.5
= control target key start
LH: loop header
LB: loop body
LE: loop exit
PB: predicated region body
PF: predicated region fallthrough
CT: control target
= control target key end

     0   :  { %s602_s1 = inlined_call_operand.vmem [shape: bf16[128,128], index: 1, kind: input, shape index: {}]   ;;  %s603_s0 = inlined_call_operand.vmem [shape: bf16[128,128], index: 0, kind: input, shape index: {}]   ;;  %s604_s2 = inlined_call_operand.vmem [shape: f32[1,128], index: 2, kind: input, shape index: {}]   ;;  %s605_s3 = inlined_call_operand.vmem [shape: f32[128,128], index: 3, kind: output, shape index: {}]  }
   0x1   :  { %v467_v0 = vld [vmem:[%s602_s1 + $0x38] sm:$0xff]   ;;  %v468_v1 = vld [vmem:[%s602_s1 + $0x30] sm:$0xff]   ;;  %v469_v2 = vld [vmem:[%s602_s1 + $0x28] sm:$0xff]  }
   0x2   :  { %419 = vmatprep.subr.bf16.mxu0 %v467_v0  ;;  %451 = vmatprep.subr.bf16.mxu1 %v467_v0  ;;  %v470_v3 = vld [vmem:[%s602_s1 + $0x20] sm:$0xff]   ;;  %v471_v6 = vld [vmem:[%s602_s1 + $0x18] sm:$0xff]   ;;  %v472_v7 = vld [vmem:[%s602_s1 + $0x10] sm:$0xff]  }
   0x3   :  { %420 = vmatpush3.bf16.msra.mxu0 %v467_v0  ;;  %459 = vmatpush3.bf16.msra.mxu1 %v467_v0  ;;  %v475_v4 = vld [vmem:[%s603_s0] sm:$0xff]   ;;  %v473_v8 = vld [vmem:[%s602_s1 + $0x8] sm:$0xff]   ;;  %v479_v12 = vld [vmem:[%s603_s0 + $0x10] sm:$0xff]  }
   0x4   :  { %421 = vmatprep.subr.bf16.mxu0 %v468_v1  ;;  %452 = vmatprep.subr.bf16.mxu1 %v468_v1  ;;  %v476_v5 = vld [vmem:[%s603_s0 + $0x20] sm:$0xff]   ;;  %v477_v10 = vld [vmem:[%s603_s0 + $0x8] sm:$0xff]   ;;  %v480_v13 = vld [vmem:[%s603_s0 + $0x30] sm:$0xff]  }
   0x5   :  { %435 = vmatprep.mubr.bf16.mxu0 %v475_v4  ;;  %443 = vmatprep.mubr.bf16.mxu1 %v476_v5  ;;  %v474_v9 = vld [vmem:[%s602_s1] sm:$0xff]   ;;  %v478_v11 = vld [vmem:[%s603_s0 + $0x28] sm:$0xff]   ;;  %v481_v14 = vld [vmem:[%s603_s0 + $0x18] sm:$0xff]  }
   0x6   :  { %v482_v15 = vld [vmem:[%s603_s0 + $0x38] sm:$0xff]   ;;  %v402_v16 = vld [vmem:[%s604_s2] ss:$0 sm:$0xff] }
   0x7   :  { %422 = vmatpush3.bf16.msra.mxu0 %v468_v1  ;;  %460 = vmatpush3.bf16.msra.mxu1 %v468_v1 }
   0x8   :  { %423 = vmatprep.subr.bf16.mxu0 %v469_v2  ;;  %453 = vmatprep.subr.bf16.mxu1 %v469_v2 }
   0xb   :  { %424 = vmatpush3.bf16.msra.mxu0 %v469_v2  ;;  %461 = vmatpush3.bf16.msra.mxu1 %v469_v2 }
   0xc   :  { %425 = vmatprep.subr.bf16.mxu0 %v470_v3  ;;  %454 = vmatprep.subr.bf16.mxu1 %v470_v3 }
   0xf   :  { %426 = vmatpush3.bf16.msra.mxu0 %v470_v3  ;;  %462 = vmatpush3.bf16.msra.mxu1 %v470_v3 }
  0x10   :  { %427 = vmatprep.subr.bf16.mxu0 %v471_v6  ;;  %455 = vmatprep.subr.bf16.mxu1 %v471_v6 }
  0x13   :  { %428 = vmatpush3.bf16.msra.mxu0 %v471_v6  ;;  %463 = vmatpush3.bf16.msra.mxu1 %v471_v6 }
  0x14   :  { %429 = vmatprep.subr.bf16.mxu0 %v472_v7  ;;  %456 = vmatprep.subr.bf16.mxu1 %v472_v7 }
  0x17   :  { %430 = vmatpush3.bf16.msra.mxu0 %v472_v7  ;;  %464 = vmatpush3.bf16.msra.mxu1 %v472_v7 }
  0x18   :  { %431 = vmatprep.subr.bf16.mxu0 %v473_v8  ;;  %457 = vmatprep.subr.bf16.mxu1 %v473_v8 }
  0x1b   :  { %432 = vmatpush3.bf16.msra.mxu0 %v473_v8  ;;  %465 = vmatpush3.bf16.msra.mxu1 %v473_v8 }
  0x1c   :  { %433 = vmatprep.subr.bf16.mxu0 %v474_v9  ;;  %458 = vmatprep.subr.bf16.mxu1 %v474_v9 }
  0x1f   :  { %434 = vmatpush3.bf16.msra.mxu0 %v474_v9  ;;  %466 = vmatpush3.bf16.msra.mxu1 %v474_v9 }
  0x22   :  { %436 = vmatmul.mubr.bf16.vlgmr.msra.gmra.mxu0 %v477_v10  ;;  %444 = vmatmul.mubr.bf16.vlgmr.msra.gmra.mxu1 %v478_v11 }
  0x23   :  { %439 = vmatprep.mubr.bf16.mxu0 %v479_v12  ;;  %447 = vmatprep.mubr.bf16.mxu1 %v480_v13 }
  0x2a   :  { %440 = vmatmul.mubr.bf16.gmra.mxu0 %v481_v14  ;;  %448 = vmatmul.mubr.bf16.gmra.mxu1 %v482_v15 }
  0xe2   :  { %v437_v17 = vpop.f32.mrf.mxu0  ;;  %v445_v18 = vpop.f32.mrf.mxu1 }
  0xe3   :  { %v336_v19 = vadd.f32 %v437_v17, %v402_v16  ;;  %v344_v20 = vadd.f32 %v445_v18, %v402_v16 }
  0xe4   :  { %v213_v21 = vpop.f32.mrf.mxu0  ;;  %v245_v22 = vpop.f32.mrf.mxu1 }
  0xe5   :  { %v352_v23 = vmax.f32 %v336_v19, 0.0  ;;  %v360_v24 = vmax.f32 %v344_v20, 0.0  ;;  %v334_v25 = vadd.f32 %v402_v16, %v213_v21  ;;  %v342_v26 = vadd.f32 %v402_v16, %v245_v22 }
  0xe6   :  { %v438_v27 = vpop.f32.mrf.mxu0  ;;  %v446_v28 = vpop.f32.mrf.mxu1 }
  0xe7   :  { %368 = vst [vmem:[%s605_s3 + $0x10] sm:$0xff] %v352_v23  ;;  %376 = vst [vmem:[%s605_s3 + $0x50] sm:$0xff] %v360_v24  ;;  %v350_v29 = vmax.f32 %v334_v25, 0.0  ;;  %v358_v30 = vmax.f32 %v342_v26, 0.0  ;;  %v337_v31 = vadd.f32 %v438_v27, %v402_v16  ;;  %v345_v32 = vadd.f32 %v446_v28, %v402_v16 }
  0xe8   :  { %v216_v33 = vpop.f32.mrf.mxu0  ;;  %v248_v34 = vpop.f32.mrf.mxu1 }
  0xe9   :  { %366 = vst [vmem:[%s605_s3] sm:$0xff] %v350_v29  ;;  %374 = vst [vmem:[%s605_s3 + $0x40] sm:$0xff] %v358_v30  ;;  %v353_v35 = vmax.f32 %v337_v31, 0.0  ;;  %v361_v36 = vmax.f32 %v345_v32, 0.0  ;;  %v335_v37 = vadd.f32 %v402_v16, %v216_v33  ;;  %v343_v38 = vadd.f32 %v402_v16, %v248_v34 }
  0xea   :  { %v441_v39 = vpop.f32.mrf.mxu0  ;;  %v449_v40 = vpop.f32.mrf.mxu1 }
  0xeb   :  { %369 = vst [vmem:[%s605_s3 + $0x18] sm:$0xff] %v353_v35  ;;  %377 = vst [vmem:[%s605_s3 + $0x58] sm:$0xff] %v361_v36  ;;  %v351_v41 = vmax.f32 %v335_v37, 0.0  ;;  %v359_v42 = vmax.f32 %v343_v38, 0.0  ;;  %v340_v43 = vadd.f32 %v441_v39, %v402_v16  ;;  %v348_v44 = vadd.f32 %v449_v40, %v402_v16 }
  0xec   :  { %v229_v45 = vpop.f32.mrf.mxu0  ;;  %v261_v46 = vpop.f32.mrf.mxu1 }
  0xed   :  { %367 = vst [vmem:[%s605_s3 + $0x8] sm:$0xff] %v351_v41  ;;  %375 = vst [vmem:[%s605_s3 + $0x48] sm:$0xff] %v359_v42  ;;  %v356_v47 = vmax.f32 %v340_v43, 0.0  ;;  %v364_v48 = vmax.f32 %v348_v44, 0.0  ;;  %v338_v49 = vadd.f32 %v402_v16, %v229_v45  ;;  %v346_v50 = vadd.f32 %v402_v16, %v261_v46 }
  0xee   :  { %v442_v51 = vpop.f32.mrf.mxu0  ;;  %v450_v52 = vpop.f32.mrf.mxu1 }
  0xef   :  { %372 = vst [vmem:[%s605_s3 + $0x30] sm:$0xff] %v356_v47  ;;  %380 = vst [vmem:[%s605_s3 + $0x70] sm:$0xff] %v364_v48  ;;  %v354_v53 = vmax.f32 %v338_v49, 0.0  ;;  %v362_v54 = vmax.f32 %v346_v50, 0.0  ;;  %v341_v55 = vadd.f32 %v442_v51, %v402_v16  ;;  %v349_v56 = vadd.f32 %v450_v52, %v402_v16 }
  0xf0   :  { %v232_v57 = vpop.f32.mrf.mxu0  ;;  %v264_v58 = vpop.f32.mrf.mxu1 }
  0xf1   :  { %370 = vst [vmem:[%s605_s3 + $0x20] sm:$0xff] %v354_v53  ;;  %378 = vst [vmem:[%s605_s3 + $0x60] sm:$0xff] %v362_v54  ;;  %v357_v59 = vmax.f32 %v341_v55, 0.0  ;;  %v365_v60 = vmax.f32 %v349_v56, 0.0  ;;  %v339_v61 = vadd.f32 %v402_v16, %v232_v57  ;;  %v347_v62 = vadd.f32 %v402_v16, %v264_v58 }
  0xf3   :  { %373 = vst [vmem:[%s605_s3 + $0x38] sm:$0xff] %v357_v59  ;;  %381 = vst [vmem:[%s605_s3 + $0x78] sm:$0xff] %v365_v60  ;;  %v355_v63 = vmax.f32 %v339_v61, 0.0  ;;  %v363_v0 = vmax.f32 %v347_v62, 0.0 }
  0xf5   :  { %371 = vst [vmem:[%s605_s3 + $0x28] sm:$0xff] %v355_v63  ;;  %379 = vst [vmem:[%s605_s3 + $0x68] sm:$0xff] %v363_v0 }

// kernel: msgcn_forward.7
= control target key start
LH: loop header
LB: loop body
LE: loop exit
PB: predicated region body
PF: predicated region fallthrough
CT: control target
= control target key end

     0   :  { %v827_v0 = vmov 0   ;;  %s1195_s4 = inlined_call_operand.vmem [shape: f32[128,1], index: 4, kind: input, shape index: {}]   ;;  %s1196_s2 = inlined_call_operand.vmem [shape: bf16[128,128], index: 2, kind: input, shape index: {}]   ;;  %s1197_s1 = inlined_call_operand.vmem [shape: s8[128,128], index: 1, kind: input, shape index: {}]   ;;  %s1198_s5 = inlined_call_operand.vmem [shape: f32[128,1], index: 5, kind: input, shape index: {}]   ;;  %s1199_s0 = inlined_call_operand.<no memory space> [shape: f32[1,1], index: 0, kind: input, shape index: {}]   ;;  %s1200_s3 = inlined_call_operand.vmem [shape: f32[128,128], index: 3, kind: input, shape index: {}, may-alias: {3,7}]   ;;  %s1201_s7 = inlined_call_operand.vmem [shape: f32[128,128], index: 7, kind: output, shape index: {1}, may-alias: {3,7}]   ;;  %s1202_s6 = inlined_call_operand.vmem [shape: bf16[128,128], index: 6, kind: output, shape index: {0}]  }
   0x1   :  { %818 = vset.pattern.permute.xlu1 %v827_v0  ;;  %817 = vset.pattern.permute.xlu0 %v827_v0  ;;  %v289_v1 = vld [vmem:[%s1195_s4 + $0x10] sm:$0xff]  ;;  %v287_v2 = vld [vmem:[%s1195_s4] sm:$0xff]  ;;  %v819_v3 = vld [vmem:[%s1196_s2 + $0x38] sm:$0xff]  }
   0x2   :  { %315 = vperm.xlu1 %818, %v289_v1   ;;  %305 = vperm.xlu0 %817, %v287_v2   ;;  %v290_v4 = vld [vmem:[%s1195_s4 + $0x18] sm:$0xff]  ;;  %v288_v5 = vld [vmem:[%s1195_s4 + $0x8] sm:$0xff]  ;;  %v820_v6 = vld [vmem:[%s1196_s2 + $0x30] sm:$0xff]  }
   0x3   :  { %768 = vmatprep.subr.bf16.mxu0 %v819_v3  ;;  %800 = vmatprep.subr.bf16.mxu1 %v819_v3  ;;  %v292_v7 = vld [vmem:[%s1195_s4 + $0x28] sm:$0xff]  ;;  %v291_v8 = vld [vmem:[%s1195_s4 + $0x20] sm:$0xff]  ;;  %v294_v10 = vld [vmem:[%s1195_s4 + $0x38] sm:$0xff] }
   0x4   :  { %769 = vmatpush3.bf16.msra.mxu0 %v819_v3  ;;  %808 = vmatpush3.bf16.msra.mxu1 %v819_v3  ;;  %v821_v9 = vld [vmem:[%s1196_s2 + $0x28] sm:$0xff]   ;;  %v293_v11 = vld [vmem:[%s1195_s4 + $0x30] sm:$0xff]  ;;  %v822_v12 = vld [vmem:[%s1196_s2 + $0x20] sm:$0xff]  }
   0x5   :  { %770 = vmatprep.subr.bf16.mxu0 %v820_v6  ;;  %801 = vmatprep.subr.bf16.mxu1 %v820_v6  ;;  %v296_v13 = vld [vmem:[%s1195_s4 + $0x48] sm:$0xff]  ;;  %v295_v14 = vld [vmem:[%s1195_s4 + $0x40] sm:$0xff]  ;;  %v823_v15 = vld [vmem:[%s1196_s2 + $0x18] sm:$0xff]  }
   0x6   :  { %320 = vperm.xlu1 %818, %v290_v4   ;;  %310 = vperm.xlu0 %817, %v288_v5   ;;  %v47_v16 = vld [vmem:[%s1197_s1] sm:$0xff]  ;;  %v49_v17 = vld [vmem:[%s1197_s1 + $0x10] sm:$0xff]  ;;  %v298_v20 = vld [vmem:[%s1195_s4 + $0x58] sm:$0xff] }
   0x7   :  { %v51_v18 = vunpack.c.l.s8.bf16 %v47_v16  ;;  %v55_v19 = vunpack.c.l.s8.bf16 %v49_v17  ;;  %v297_v21 = vld [vmem:[%s1195_s4 + $0x50] sm:$0xff]  ;;  %v300_v23 = vld [vmem:[%s1195_s4 + $0x68] sm:$0xff]  ;;  %v299_v24 = vld [vmem:[%s1195_s4 + $0x60] sm:$0xff]  ;;  %v52_v33 = vunpack.c.h.s8.bf16 %v47_v16  ;;  %v56_v34 = vunpack.c.h.s8.bf16 %v49_v17 }
   0x8   :  { %771 = vmatpush3.bf16.msra.mxu0 %v820_v6  ;;  %809 = vmatpush3.bf16.msra.mxu1 %v820_v6  ;;  %v824_v22 = vld [vmem:[%s1196_s2 + $0x10] sm:$0xff]   ;;  %v825_v25 = vld [vmem:[%s1196_s2 + $0x8] sm:$0xff]   ;;  %v302_v26 = vld [vmem:[%s1195_s4 + $0x78] sm:$0xff]  ;;  %v1033_v17 = vstv %s1199_s0 }
   0x9   :  { %772 = vmatprep.subr.bf16.mxu0 %v821_v9  ;;  %802 = vmatprep.subr.bf16.mxu1 %v821_v9  ;;  %v301_v27 = vld [vmem:[%s1195_s4 + $0x70] sm:$0xff]  ;;  %v826_v28 = vld [vmem:[%s1196_s2] sm:$0xff]   ;;  %v48_v29 = vld [vmem:[%s1197_s1 + $0x8] sm:$0xff] }
   0xa   :  { %330 = vperm.xlu1 %818, %v292_v7   ;;  %325 = vperm.xlu0 %817, %v291_v8   ;;  %v50_v30 = vld [vmem:[%s1197_s1 + $0x18] sm:$0xff]  ;;  %v400_v31 = vld [vmem:[%s1198_s5 + $0x8] sm:$0xff]  ;;  %v399_v32 = vld [vmem:[%s1198_s5] sm:$0xff]  ;;  %v53_v35 = vunpack.c.l.s8.bf16 %v48_v29  ;;  %v54_v41 = vunpack.c.h.s8.bf16 %v48_v29 }
   0xb   :  { %784 = vmatprep.mubr.bf16.mxu0 %v51_v18  ;;  %792 = vmatprep.mubr.bf16.mxu1 %v55_v19  ;;  %v57_v36 = vunpack.c.l.s8.bf16 %v50_v30  ;;  %v402_v37 = vld [vmem:[%s1198_s5 + $0x18] sm:$0xff]  ;;  %v401_v38 = vld [vmem:[%s1198_s5 + $0x10] sm:$0xff]  ;;  %v404_v39 = vld [vmem:[%s1198_s5 + $0x28] sm:$0xff]  ;;  %v58_v42 = vunpack.c.h.s8.bf16 %v50_v30 }
   0xc   :  { %773 = vmatpush3.bf16.msra.mxu0 %v821_v9  ;;  %810 = vmatpush3.bf16.msra.mxu1 %v821_v9  ;;  %v403_v40 = vld [vmem:[%s1198_s5 + $0x20] sm:$0xff]  ;;  %v406_v43 = vld [vmem:[%s1198_s5 + $0x38] sm:$0xff]  ;;  %v405_v44 = vld [vmem:[%s1198_s5 + $0x30] sm:$0xff] }
   0xd   :  { %774 = vmatprep.subr.bf16.mxu0 %v822_v12  ;;  %803 = vmatprep.subr.bf16.mxu1 %v822_v12  ;;  %v408_v45 = vld [vmem:[%s1198_s5 + $0x48] sm:$0xff]  ;;  %v407_v46 = vld [vmem:[%s1198_s5 + $0x40] sm:$0xff]  ;;  %v410_v47 = vld [vmem:[%s1198_s5 + $0x58] sm:$0xff] }
   0xe   :  { %340 = vperm.xlu1 %818, %v294_v10   ;;  %335 = vperm.xlu0 %817, %v293_v11   ;;  %v409_v48 = vld [vmem:[%s1198_s5 + $0x50] sm:$0xff]  ;;  %v412_v49 = vld [vmem:[%s1198_s5 + $0x68] sm:$0xff]  ;;  %v411_v50 = vld [vmem:[%s1198_s5 + $0x60] sm:$0xff] }
   0xf   :  { %v414_v51 = vld [vmem:[%s1198_s5 + $0x78] sm:$0xff]  ;;  %v413_v52 = vld [vmem:[%s1198_s5 + $0x70] sm:$0xff] }
  0x10   :  { %775 = vmatpush3.bf16.msra.mxu0 %v822_v12  ;;  %811 = vmatpush3.bf16.msra.mxu1 %v822_v12 }
  0x11   :  { %776 = vmatprep.subr.bf16.mxu0 %v823_v15  ;;  %804 = vmatprep.subr.bf16.mxu1 %v823_v15 }
  0x12   :  { %350 = vperm.xlu1 %818, %v296_v13   ;;  %345 = vperm.xlu0 %817, %v295_v14  }
  0x14   :  { %777 = vmatpush3.bf16.msra.mxu0 %v823_v15  ;;  %812 = vmatpush3.bf16.msra.mxu1 %v823_v15 }
  0x15   :  { %778 = vmatprep.subr.bf16.mxu0 %v824_v22  ;;  %805 = vmatprep.subr.bf16.mxu1 %v824_v22 }
  0x16   :  { %360 = vperm.xlu1 %818, %v298_v20   ;;  %355 = vperm.xlu0 %817, %v297_v21  }
  0x18   :  { %779 = vmatpush3.bf16.msra.mxu0 %v824_v22  ;;  %813 = vmatpush3.bf16.msra.mxu1 %v824_v22  ;;  %v593_v22 = vld [vmem:[%s1200_s3 + $0x10] sm:$0xff] }
  0x19   :  { %780 = vmatprep.subr.bf16.mxu0 %v825_v25  ;;  %806 = vmatprep.subr.bf16.mxu1 %v825_v25 }
  0x1a   :  { %370 = vperm.xlu1 %818, %v300_v23   ;;  %365 = vperm.xlu0 %817, %v299_v24   ;;  %v601_v23 = vld [vmem:[%s1200_s3 + $0x50] sm:$0xff] }
  0x1c   :  { %781 = vmatpush3.bf16.msra.mxu0 %v825_v25  ;;  %814 = vmatpush3.bf16.msra.mxu1 %v825_v25 }
  0x1d   :  { %782 = vmatprep.subr.bf16.mxu0 %v826_v28  ;;  %807 = vmatprep.subr.bf16.mxu1 %v826_v28 }
  0x1e   :  { %380 = vperm.xlu1 %818, %v302_v26   ;;  %375 = vperm.xlu0 %817, %v301_v27  }
  0x20   :  { %783 = vmatpush3.bf16.msra.mxu0 %v826_v28  ;;  %815 = vmatpush3.bf16.msra.mxu1 %v826_v28 }
  0x22   :  { %422 = vperm.xlu1 %818, %v400_v31   ;;  %417 = vperm.xlu0 %817, %v399_v32  }
  0x23   :  { %785 = vmatmul.mubr.bf16.vlgmr.msra.gmra.mxu0 %v52_v33  ;;  %793 = vmatmul.mubr.bf16.vlgmr.msra.gmra.mxu1 %v56_v34  ;;  %v591_v33 = vld [vmem:[%s1200_s3] sm:$0xff] }
  0x24   :  { %788 = vmatprep.mubr.bf16.mxu0 %v53_v35  ;;  %796 = vmatprep.mubr.bf16.mxu1 %v57_v36 }
  0x26   :  { %432 = vperm.xlu1 %818, %v402_v37   ;;  %427 = vperm.xlu0 %817, %v401_v38  }
  0x2a   :  { %442 = vperm.xlu1 %818, %v404_v39   ;;  %437 = vperm.xlu0 %817, %v403_v40  }
  0x2b   :  { %789 = vmatmul.mubr.bf16.gmra.mxu0 %v54_v41  ;;  %797 = vmatmul.mubr.bf16.gmra.mxu1 %v58_v42  ;;  %v599_v41 = vld [vmem:[%s1200_s3 + $0x40] sm:$0xff] }
  0x2e   :  { %452 = vperm.xlu1 %818, %v406_v43   ;;  %447 = vperm.xlu0 %817, %v405_v44  }
  0x32   :  { %462 = vperm.xlu1 %818, %v408_v45   ;;  %457 = vperm.xlu0 %817, %v407_v46   ;;  %v594_v45 = vld [vmem:[%s1200_s3 + $0x18] sm:$0xff] }
  0x36   :  { %472 = vperm.xlu1 %818, %v410_v47   ;;  %467 = vperm.xlu0 %817, %v409_v48  }
  0x3a   :  { %482 = vperm.xlu1 %818, %v412_v49   ;;  %477 = vperm.xlu0 %817, %v411_v50  }
  0x3e   :  { %492 = vperm.xlu1 %818, %v414_v51   ;;  %487 = vperm.xlu0 %817, %v413_v52  }
  0x7d   :  { %v306_v53 = vpop.permute.xlu0 %305  ;;  %v316_v54 = vpop.permute.xlu1 %315 }
  0x81   :  { %v1000_v55 = vpop.permute.xlu0 %310  ;;  %v321_v56 = vpop.permute.xlu1 %320 }
  0x85   :  { %v1002_v57 = vpop.permute.xlu0 %325  ;;  %v1004_v58 = vpop.permute.xlu1 %330 }
  0x89   :  { %v1006_v59 = vpop.permute.xlu0 %335  ;;  %v1008_v60 = vpop.permute.xlu1 %340 }
  0x8d   :  { %v346_v61 = vpop.permute.xlu0 %345  ;;  %v1010_v62 = vpop.permute.xlu1 %350 }
  0x91   :  { %v356_v63 = vpop.permute.xlu0 %355  ;;  %v361_v0 = vpop.permute.xlu1 %360 }
  0x95   :  { %v1012_v1 = vpop.permute.xlu0 %365  ;;  %v1014_v2 = vpop.permute.xlu1 %370 }
  0x99   :  { %v1016_v3 = vpop.permute.xlu0 %375  ;;  %v1018_v4 = vpop.permute.xlu1 %380 }
  0x9d   :  { %v418_v5 = vpop.permute.xlu0 %417  ;;  %v423_v6 = vpop.permute.xlu1 %422 }
  0xa1   :  { %v428_v7 = vpop.permute.xlu0 %427  ;;  %v433_v8 = vpop.permute.xlu1 %432 }
  0xa5   :  { %v1020_v9 = vpop.permute.xlu0 %437  ;;  %v1022_v10 = vpop.permute.xlu1 %442 }
  0xa9   :  { %v1024_v11 = vpop.permute.xlu0 %447  ;;  %v1026_v12 = vpop.permute.xlu1 %452 }
  0xad   :  { %v458_v13 = vpop.permute.xlu0 %457  ;;  %v1028_v14 = vpop.permute.xlu1 %462 }
  0xb1   :  { %v468_v15 = vpop.permute.xlu0 %467  ;;  %v473_v19 = vpop.permute.xlu1 %472 }
  0xb5   :  { %v1041_v26 = vpop.permute.xlu0 %477  ;;  %v1058_v50 = vpop.permute.xlu1 %482 }
  0xe3   :  { %v786_v16 = vpop.f32.mrf.mxu0  ;;  %v794_v18 = vpop.f32.mrf.mxu1 }
  0xe4   :  { %v385_v20 = vmul.f32 %v786_v16, %v316_v54  ;;  %v393_v21 = vmul.f32 %v794_v18, %v356_v63  ;;  %v497_v27 = vmul.f32 %v786_v16, %v428_v7  ;;  %v505_v31 = vmul.f32 %v794_v18, %v468_v15  ;;  %v488_v15 = vpop.permute.xlu0 %487 }
  0xe5   :  { %v173_v24 = vpop.f32.mrf.mxu0  ;;  %v205_v25 = vpop.f32.mrf.mxu1 }
  0xe6   :  { %v611_v28 = vmul.f32 %v1033_v17, %v385_v20  ;;  %v619_v29 = vmul.f32 %v1033_v17, %v393_v21  ;;  %v383_v30 = vmul.f32 %v306_v53, %v173_v24  ;;  %v495_v32 = vmul.f32 %v418_v5, %v173_v24 }
  0xe7   :  { %v391_v34 = vmul.f32 %v346_v61, %v205_v25  ;;  %v1048_v35 = vmul.f32 %v458_v13, %v205_v25  ;;  %v787_v36 = vpop.f32.mrf.mxu0  ;;  %v795_v37 = vpop.f32.mrf.mxu1 }
  0xe8   :  { %v627_v38 = vadd.f32 %v611_v28, %v593_v22  ;;  %v635_v39 = vadd.f32 %v619_v29, %v601_v23  ;;  %v609_v40 = vmul.f32 %v1033_v17, %v383_v30  ;;  %v386_v42 = vmul.f32 %v787_v36, %v321_v56 }
  0xe9   :  { %v617_v43 = vmul.f32 %v1033_v17, %v391_v34  ;;  %v498_v44 = vmul.f32 %v787_v36, %v433_v8  ;;  %v394_v46 = vmul.f32 %v795_v37, %v361_v0  ;;  %v506_v47 = vmul.f32 %v795_v37, %v473_v19  ;;  %v176_v48 = vpop.f32.mrf.mxu0  ;;  %v208_v49 = vpop.f32.mrf.mxu1 }
  0xea   :  { %643 = vst [vmem:[%s1201_s7 + $0x10] sm:$0xff] %v627_v38  ;;  %651 = vst [vmem:[%s1201_s7 + $0x50] sm:$0xff] %v635_v39  ;;  %v625_v51 = vadd.f32 %v609_v40, %v591_v33  ;;  %v612_v52 = vmul.f32 %v1033_v17, %v386_v42  ;;  %v384_v54 = vmul.f32 %v1000_v55, %v176_v48 }
  0xeb   :  { %v496_v56 = vmul.f32 %v423_v6, %v176_v48  ;;  %v633_v61 = vadd.f32 %v617_v43, %v599_v41  ;;  %v713_v63 = vpack.c.bf16 %v498_v44, %v497_v27  ;;  %v733_v0 = vpack.c.bf16 %v506_v47, %v505_v31  ;;  %v790_v8 = vpop.f32.mrf.mxu0  ;;  %v798_v13 = vpop.f32.mrf.mxu1 }
  0xec   :  { %v620_v5 = vmul.f32 %v1033_v17, %v394_v46  ;;  %v628_v16 = vadd.f32 %v612_v52, %v594_v45  ;;  %v610_v55 = vmul.f32 %v1033_v17, %v384_v54  ;;  %v392_v6 = vmul.f32 %v1010_v62, %v208_v49 }
  0xed   :  { %v708_v18 = vpack.c.bf16 %v496_v56, %v495_v32  ;;  %745 = vst [vmem:[%s1202_s6 + $0x8] sm:$0xff] %v713_v63   ;;  %749 = vst [vmem:[%s1202_s6 + $0x28] sm:$0xff] %v733_v0   ;;  %v504_v20 = vmul.f32 %v1028_v14, %v208_v49  ;;  %v389_v62 = vmul.f32 %v790_v8, %v1006_v59  ;;  %v189_v23 = vpop.f32.mrf.mxu0  ;;  %v221_v24 = vpop.f32.mrf.mxu1 }
  0xee   :  { %v501_v22 = vmul.f32 %v790_v8, %v1024_v11  ;;  %v618_v14 = vmul.f32 %v1033_v17, %v392_v6  ;;  %v397_v59 = vmul.f32 %v798_v13, %v1016_v3  ;;  %v509_v11 = vmul.f32 %v798_v13, %v488_v15 }
  0xef   :  { %709 = vst [vmem:[%s1202_s6] sm:$0xff] %v708_v18   ;;  %v728_v28 = vpack.c.bf16 %v504_v20, %v1048_v35  ;;  %v615_v29 = vmul.f32 %v1033_v17, %v389_v62  ;;  %v387_v31 = vmul.f32 %v1002_v57, %v189_v23  ;;  %v499_v32 = vmul.f32 %v1020_v9, %v189_v23  ;;  %v791_v33 = vpop.f32.mrf.mxu0  ;;  %v799_v34 = vpop.f32.mrf.mxu1 }
  0xf0   :  { %v623_v36 = vmul.f32 %v1033_v17, %v397_v59  ;;  %v395_v37 = vmul.f32 %v1012_v1, %v221_v24  ;;  %v507_v38 = vmul.f32 %v1041_v26, %v221_v24  ;;  %v493_v57 = vpop.permute.xlu1 %492  ;;  %v390_v41 = vmul.f32 %v791_v33, %v1008_v60 }
  0xf1   :  { %v602_v53 = vld [vmem:[%s1200_s3 + $0x58] sm:$0xff]  ;;  %v592_v7 = vld [vmem:[%s1200_s3 + $0x8] sm:$0xff]  ;;  %748 = vst [vmem:[%s1202_s6 + $0x20] sm:$0xff] %v728_v28   ;;  %v613_v39 = vmul.f32 %v1033_v17, %v387_v31  ;;  %v502_v42 = vmul.f32 %v791_v33, %v1026_v12  ;;  %v192_v43 = vpop.f32.mrf.mxu0  ;;  %v398_v45 = vmul.f32 %v799_v34, %v1018_v4  ;;  %v510_v46 = vmul.f32 %v799_v34, %v493_v57  ;;  %v224_v47 = vpop.f32.mrf.mxu1 }
  0xf2   :  { %641 = vst [vmem:[%s1201_s7] sm:$0xff] %v625_v51  ;;  %649 = vst [vmem:[%s1201_s7 + $0x40] sm:$0xff] %v633_v61  ;;  %v636_v19 = vadd.f32 %v620_v5, %v602_v53  ;;  %v626_v25 = vadd.f32 %v610_v55, %v592_v7  ;;  %v621_v26 = vmul.f32 %v1033_v17, %v395_v37 }
  0xf3   :  { %v723_v12 = vpack.c.bf16 %v502_v42, %v501_v22  ;;  %v616_v48 = vmul.f32 %v1033_v17, %v390_v41  ;;  %v388_v51 = vmul.f32 %v1004_v58, %v192_v43  ;;  %v743_v52 = vpack.c.bf16 %v510_v46, %v509_v11 }
  0xf4   :  { %v624_v53 = vmul.f32 %v1033_v17, %v398_v45  ;;  %v500_v54 = vmul.f32 %v1022_v10, %v192_v43  ;;  %v396_v63 = vmul.f32 %v1014_v2, %v224_v47  ;;  %v508_v0 = vmul.f32 %v1058_v50, %v224_v47 }
  0xf5   :  { %747 = vst [vmem:[%s1202_s6 + $0x18] sm:$0xff] %v723_v12   ;;  %v614_v61 = vmul.f32 %v1033_v17, %v388_v51  ;;  %751 = vst [vmem:[%s1202_s6 + $0x38] sm:$0xff] %v743_v52  }
  0xf6   :  { %v718_v5 = vpack.c.bf16 %v500_v54, %v499_v32  ;;  %v738_v50 = vpack.c.bf16 %v508_v0, %v507_v38  ;;  %v622_v8 = vmul.f32 %v1033_v17, %v396_v63 }
  0xf8   :  { %746 = vst [vmem:[%s1202_s6 + $0x10] sm:$0xff] %v718_v5   ;;  %750 = vst [vmem:[%s1202_s6 + $0x30] sm:$0xff] %v738_v50  }
  0xf9   :  { %v600_v21 = vld [vmem:[%s1200_s3 + $0x48] sm:$0xff] }
  0xfa   :  { %644 = vst [vmem:[%s1201_s7 + $0x18] sm:$0xff] %v628_v16  ;;  %v634_v3 = vadd.f32 %v618_v14, %v600_v21 }
 0x101   :  { %v597_v27 = vld [vmem:[%s1200_s3 + $0x30] sm:$0xff] }
 0x102   :  { %652 = vst [vmem:[%s1201_s7 + $0x58] sm:$0xff] %v636_v19  ;;  %v631_v9 = vadd.f32 %v615_v29, %v597_v27 }
 0x109   :  { %v605_v30 = vld [vmem:[%s1200_s3 + $0x70] sm:$0xff] }
 0x10a   :  { %642 = vst [vmem:[%s1201_s7 + $0x8] sm:$0xff] %v626_v25  ;;  %v639_v1 = vadd.f32 %v623_v36, %v605_v30 }
 0x111   :  { %v595_v35 = vld [vmem:[%s1200_s3 + $0x20] sm:$0xff] }
 0x112   :  { %v603_v40 = vld [vmem:[%s1200_s3 + $0x60] sm:$0xff]  ;;  %v629_v60 = vadd.f32 %v613_v39, %v595_v35 }
 0x113   :  { %650 = vst [vmem:[%s1201_s7 + $0x48] sm:$0xff] %v634_v3  ;;  %v637_v4 = vadd.f32 %v621_v26, %v603_v40 }
 0x11a   :  { %v598_v44 = vld [vmem:[%s1200_s3 + $0x38] sm:$0xff] }
 0x11b   :  { %647 = vst [vmem:[%s1201_s7 + $0x30] sm:$0xff] %v631_v9  ;;  %v632_v58 = vadd.f32 %v616_v48, %v598_v44 }
 0x122   :  { %v606_v49 = vld [vmem:[%s1200_s3 + $0x78] sm:$0xff] }
 0x123   :  { %655 = vst [vmem:[%s1201_s7 + $0x70] sm:$0xff] %v639_v1  ;;  %v640_v10 = vadd.f32 %v624_v53, %v606_v49 }
 0x12a   :  { %v596_v56 = vld [vmem:[%s1200_s3 + $0x28] sm:$0xff] }
 0x12b   :  { %645 = vst [vmem:[%s1201_s7 + $0x20] sm:$0xff] %v629_v60  ;;  %653 = vst [vmem:[%s1201_s7 + $0x60] sm:$0xff] %v637_v4  ;;  %v630_v2 = vadd.f32 %v614_v61, %v596_v56 }
 0x132   :  { %v604_v7 = vld [vmem:[%s1200_s3 + $0x68] sm:$0xff] }
 0x133   :  { %648 = vst [vmem:[%s1201_s7 + $0x38] sm:$0xff] %v632_v58  ;;  %656 = vst [vmem:[%s1201_s7 + $0x78] sm:$0xff] %v640_v10  ;;  %v638_v13 = vadd.f32 %v622_v8, %v604_v7 }
 0x134   :  { %646 = vst [vmem:[%s1201_s7 + $0x28] sm:$0xff] %v630_v2 }
 0x135   :  { %654 = vst [vmem:[%s1201_s7 + $0x68] sm:$0xff] %v638_v13 }

// kernel: msgcn_forward.9
= control target key start
LH: loop header
LB: loop body
LE: loop exit
PB: predicated region body
PF: predicated region fallthrough
CT: control target
= control target key end

     0   :  { %v1920_v1 = vmov 0   ;;  %s3259_s4 = inlined_call_operand.vmem [shape: bf16[128,128], index: 4, kind: input, shape index: {}]   ;;  %s3260_s3 = inlined_call_operand.vmem [shape: f32[128,128], index: 3, kind: input, shape index: {}]   ;;  %s3261_s0 = inlined_call_operand.vmem [shape: bf16[128,128], index: 0, kind: input, shape index: {}]   ;;  %s3262_s1 = inlined_call_operand.vmem [shape: bf16[128,128], index: 1, kind: input, shape index: {}]   ;;  %s3263_s2 = inlined_call_operand.vmem [shape: bf16[128,128], index: 2, kind: input, shape index: {}]   ;;  %s3264_s5 = inlined_call_operand.vmem [shape: f32[1,128], index: 5, kind: input, shape index: {}]   ;;  %s3265_s6 = inlined_call_operand.vmem [shape: f32[1,128], index: 6, kind: input, shape index: {}]   ;;  %s3266_s7 = inlined_call_operand.vmem [shape: f32[1,128], index: 7, kind: input, shape index: {}]   ;;  %s3267_s8 = inlined_call_operand.vmem [shape: f32[128,128], index: 8, kind: output, shape index: {}]  }
   0x1   :  { %v1766_v0 = vld [vmem:[%s3259_s4 + $0x38] sm:$0xff]   ;;  %1759 = vset.pattern.permute.xlu1 %v1920_v1  ;;  %1758 = vset.pattern.permute.xlu0 %v1920_v1  ;;  %v1975_v2 = vld [vmem:[%s3260_s3 + $0x10] sm:$0xff]  ;;  %v1768_v4 = vld [vmem:[%s3259_s4 + $0x28] sm:$0xff]  }
   0x2   :  { %1690 = vmatprep.subr.bf16.mxu0 %v1766_v0  ;;  %1722 = vmatprep.subr.bf16.mxu1 %v1766_v0  ;;  %v1767_v3 = vld [vmem:[%s3259_s4 + $0x30] sm:$0xff]   ;;  %v1987_v5 = vld [vmem:[%s3260_s3 + $0x18] sm:$0xff]  ;;  %v1769_v6 = vld [vmem:[%s3259_s4 + $0x20] sm:$0xff]  }
   0x3   :  { %1691 = vmatpush3.bf16.msra.mxu0 %v1766_v0  ;;  %1723 = vmatpush3.bf16.msra.mxu1 %v1766_v0  ;;  %v1996_v7 = vld [vmem:[%s3260_s3 + $0x28] sm:$0xff]  ;;  %v30_v8 = vld [vmem:[%s3261_s0] sm:$0xf]  ;;  %v31_v9 = vld [vmem:[%s3261_s0 + $0x4] sm:$0xf] }
   0x4   :  { %501 = vperm.xlu1 %1759, %v1975_v2   ;;  %1692 = vmatprep.subr.bf16.mxu0 %v1767_v3  ;;  %v81_v10 = vld [vmem:[%s3262_s1] sm:$0xf]  ;;  %v82_v11 = vld [vmem:[%s3262_s1 + $0x4] sm:$0xf]  ;;  %v1770_v12 = vld [vmem:[%s3259_s4 + $0x18] sm:$0xff]  }
   0x5   :  { %1724 = vmatprep.subr.bf16.mxu1 %v1767_v3  ;;  %v97_v13 = vmul.bf16 %v81_v10, %v30_v8  ;;  %v98_v14 = vmul.bf16 %v82_v11, %v31_v9  ;;  %v312_v15 = vld [vmem:[%s3263_s2] sm:$0xf]  ;;  %v313_v16 = vld [vmem:[%s3263_s2 + $0x4] sm:$0xf]  ;;  %v2023_v17 = vld [vmem:[%s3260_s3 + $0x38] sm:$0xff] }
   0x6   :  { %v328_v18 = vmul.bf16 %v312_v15, %v30_v8  ;;  %v329_v19 = vmul.bf16 %v313_v16, %v31_v9  ;;  %v1771_v22 = vld [vmem:[%s3259_s4 + $0x10] sm:$0xff]   ;;  %v2032_v23 = vld [vmem:[%s3260_s3 + $0x48] sm:$0xff]  ;;  %v2037_v24 = vld [vmem:[%s3260_s3] sm:$0xff]  ;;  %v1921_v15 = vmov 1  }
   0x7   :  { %1693 = vmatpush3.bf16.msra.mxu0 %v1767_v3  ;;  %1725 = vmatpush3.bf16.msra.mxu1 %v1767_v3  ;;  %v1568_v20 = vcombine.low %v97_v13, %v98_v14  ;;  %v2044_v25 = vld [vmem:[%s3260_s3 + $0x58] sm:$0xff]  ;;  %v1772_v26 = vld [vmem:[%s3259_s4 + $0x8] sm:$0xff]   ;;  %v1773_v30 = vld [vmem:[%s3259_s4] sm:$0xff]  }
   0x8   :  { %506 = vperm.xlu1 %1759, %v1987_v5   ;;  %1694 = vmatprep.subr.bf16.mxu0 %v1768_v4  ;;  %v1584_v21 = vcombine.low %v328_v18, %v329_v19  ;;  %v32_v27 = vld [vmem:[%s3261_s0 + $0x8] sm:$0xf]  ;;  %v33_v28 = vld [vmem:[%s3261_s0 + $0xc] sm:$0xf]  ;;  %v34_v34 = vld [vmem:[%s3261_s0 + $0x10] sm:$0xf] }
   0x9   :  { %1726 = vmatprep.subr.bf16.mxu1 %v1768_v4  ;;  %1706 = vmatprep.mubr.bf16.mxu0 %v1568_v20  ;;  %v83_v29 = vld [vmem:[%s3262_s1 + $0x8] sm:$0xf]  ;;  %v84_v31 = vld [vmem:[%s3262_s1 + $0xc] sm:$0xf]  ;;  %v35_v35 = vld [vmem:[%s3261_s0 + $0x14] sm:$0xf] }
   0xa   :  { %1738 = vmatprep.mubr.bf16.mxu1 %v1584_v21  ;;  %491 = vperm.xlu0 %1758, %v2037_v24   ;;  %v314_v32 = vld [vmem:[%s3263_s2 + $0x8] sm:$0xf]  ;;  %v315_v33 = vld [vmem:[%s3263_s2 + $0xc] sm:$0xf]  ;;  %v85_v36 = vld [vmem:[%s3262_s1 + $0x10] sm:$0xf]  ;;  %v99_v41 = vmul.bf16 %v83_v29, %v32_v27  ;;  %v100_v42 = vmul.bf16 %v84_v31, %v33_v28 }
   0xb   :  { %1695 = vmatpush3.bf16.msra.mxu0 %v1768_v4  ;;  %1727 = vmatpush3.bf16.msra.mxu1 %v1768_v4  ;;  %v86_v37 = vld [vmem:[%s3262_s1 + $0x14] sm:$0xf]  ;;  %v316_v38 = vld [vmem:[%s3263_s2 + $0x10] sm:$0xf]  ;;  %v2092_v40 = vld [vmem:[%s3260_s3 + $0x68] sm:$0xff]  ;;  %v330_v43 = vmul.bf16 %v314_v32, %v32_v27  ;;  %v331_v44 = vmul.bf16 %v315_v33, %v33_v28  ;;  %v101_v45 = vmul.bf16 %v85_v36, %v34_v34 }
   0xc   :  { %516 = vperm.xlu1 %1759, %v1996_v7   ;;  %1696 = vmatprep.subr.bf16.mxu0 %v1769_v6  ;;  %v317_v39 = vld [vmem:[%s3263_s2 + $0x14] sm:$0xf]  ;;  %v102_v46 = vmul.bf16 %v86_v37, %v35_v35  ;;  %v332_v47 = vmul.bf16 %v316_v38, %v34_v34  ;;  %v2097_v49 = vld [vmem:[%s3260_s3 + $0x8] sm:$0xff]  ;;  %v2103_v50 = vld [vmem:[%s3260_s3 + $0x78] sm:$0xff]  ;;  %v1569_v55 = vcombine.low %v99_v41, %v100_v42 }
   0xd   :  { %1728 = vmatprep.subr.bf16.mxu1 %v1769_v6  ;;  %v333_v48 = vmul.bf16 %v317_v39, %v35_v35  ;;  %v36_v51 = vld [vmem:[%s3261_s0 + $0x18] sm:$0xf]  ;;  %v37_v52 = vld [vmem:[%s3261_s0 + $0x1c] sm:$0xf]  ;;  %v1585_v56 = vcombine.low %v330_v43, %v331_v44  ;;  %v38_v59 = vld [vmem:[%s3261_s0 + $0x20] sm:$0xf] }
   0xe   :  { %v87_v53 = vld [vmem:[%s3262_s1 + $0x18] sm:$0xf]  ;;  %v88_v54 = vld [vmem:[%s3262_s1 + $0x1c] sm:$0xf]  ;;  %496 = vperm.xlu0 %1758, %v2097_v49   ;;  %v1570_v60 = vcombine.low %v101_v45, %v102_v46  ;;  %v39_v62 = vld [vmem:[%s3261_s0 + $0x24] sm:$0xf] }
   0xf   :  { %1697 = vmatpush3.bf16.msra.mxu0 %v1769_v6  ;;  %1729 = vmatpush3.bf16.msra.mxu1 %v1769_v6  ;;  %v318_v57 = vld [vmem:[%s3263_s2 + $0x18] sm:$0xf]  ;;  %v319_v58 = vld [vmem:[%s3263_s2 + $0x1c] sm:$0xf]  ;;  %v1586_v61 = vcombine.low %v332_v47, %v333_v48  ;;  %v89_v63 = vld [vmem:[%s3262_s1 + $0x20] sm:$0xf]  ;;  %v103_v6 = vmul.bf16 %v87_v53, %v36_v51  ;;  %v104_v8 = vmul.bf16 %v88_v54, %v37_v52 }
  0x10   :  { %526 = vperm.xlu1 %1759, %v2023_v17   ;;  %1698 = vmatprep.subr.bf16.mxu0 %v1770_v12  ;;  %v90_v0 = vld [vmem:[%s3262_s1 + $0x24] sm:$0xf]  ;;  %v320_v1 = vld [vmem:[%s3263_s2 + $0x20] sm:$0xf]  ;;  %v334_v9 = vmul.bf16 %v318_v57, %v36_v51  ;;  %v335_v10 = vmul.bf16 %v319_v58, %v37_v52  ;;  %v105_v11 = vmul.bf16 %v89_v63, %v38_v59  ;;  %v40_v16 = vld [vmem:[%s3261_s0 + $0x28] sm:$0xf] }
  0x11   :  { %1730 = vmatprep.subr.bf16.mxu1 %v1770_v12  ;;  %v321_v3 = vld [vmem:[%s3263_s2 + $0x24] sm:$0xf]  ;;  %v336_v13 = vmul.bf16 %v320_v1, %v38_v59  ;;  %v2156_v18 = vld [vmem:[%s3260_s3 + $0x30] sm:$0xff]  ;;  %v41_v19 = vld [vmem:[%s3261_s0 + $0x2c] sm:$0xf] }
  0x12   :  { %v2146_v4 = vld [vmem:[%s3260_s3 + $0x20] sm:$0xff]  ;;  %v337_v14 = vmul.bf16 %v321_v3, %v39_v62  ;;  %v91_v20 = vld [vmem:[%s3262_s1 + $0x28] sm:$0xf]  ;;  %v92_v21 = vld [vmem:[%s3262_s1 + $0x2c] sm:$0xf] }
  0x13   :  { %1699 = vmatpush3.bf16.msra.mxu0 %v1770_v12  ;;  %1731 = vmatpush3.bf16.msra.mxu1 %v1770_v12  ;;  %v106_v12 = vmul.bf16 %v90_v0, %v39_v62  ;;  %v322_v27 = vld [vmem:[%s3263_s2 + $0x28] sm:$0xf]  ;;  %v323_v28 = vld [vmem:[%s3263_s2 + $0x2c] sm:$0xf]  ;;  %v42_v29 = vld [vmem:[%s3261_s0 + $0x30] sm:$0xf]  ;;  %v107_v38 = vmul.bf16 %v91_v20, %v40_v16  ;;  %v108_v39 = vmul.bf16 %v92_v21, %v41_v19 }
  0x14   :  { %536 = vperm.xlu1 %1759, %v2032_v23   ;;  %1700 = vmatprep.subr.bf16.mxu0 %v1771_v22  ;;  %v1588_v31 = vcombine.low %v336_v13, %v337_v14  ;;  %v43_v32 = vld [vmem:[%s3261_s0 + $0x34] sm:$0xf]  ;;  %v93_v33 = vld [vmem:[%s3262_s1 + $0x30] sm:$0xf]  ;;  %v2196_v37 = vld [vmem:[%s3260_s3 + $0x40] sm:$0xff]  ;;  %v338_v41 = vmul.bf16 %v322_v27, %v40_v16  ;;  %v339_v42 = vmul.bf16 %v323_v28, %v41_v19  ;;  %v1923_v27 = vmov 3  }
  0x15   :  { %1732 = vmatprep.subr.bf16.mxu1 %v1771_v22  ;;  %511 = vperm.xlu0 %1758, %v2146_v4   ;;  %v94_v34 = vld [vmem:[%s3262_s1 + $0x34] sm:$0xf]  ;;  %v324_v35 = vld [vmem:[%s3263_s2 + $0x30] sm:$0xf]  ;;  %v109_v43 = vmul.bf16 %v93_v33, %v42_v29  ;;  %v44_v48 = vld [vmem:[%s3261_s0 + $0x38] sm:$0xf]  ;;  %v1573_v51 = vcombine.low %v107_v38, %v108_v39 }
  0x16   :  { %v325_v36 = vld [vmem:[%s3263_s2 + $0x34] sm:$0xf]  ;;  %v110_v45 = vmul.bf16 %v94_v34, %v43_v32  ;;  %v340_v46 = vmul.bf16 %v324_v35, %v42_v29  ;;  %v1589_v52 = vcombine.low %v338_v41, %v339_v42  ;;  %v45_v53 = vld [vmem:[%s3261_s0 + $0x3c] sm:$0xf]  ;;  %v95_v54 = vld [vmem:[%s3262_s1 + $0x38] sm:$0xf] }
  0x17   :  { %1701 = vmatpush3.bf16.msra.mxu0 %v1771_v22  ;;  %1733 = vmatpush3.bf16.msra.mxu1 %v1771_v22  ;;  %v1571_v22 = vcombine.low %v103_v6, %v104_v8  ;;  %v2203_v44 = vld [vmem:[%s3260_s3 + $0x50] sm:$0xff]  ;;  %v341_v47 = vmul.bf16 %v325_v36, %v43_v32  ;;  %v96_v58 = vld [vmem:[%s3262_s1 + $0x3c] sm:$0xf]  ;;  %v326_v59 = vld [vmem:[%s3263_s2 + $0x38] sm:$0xf]  ;;  %v1922_v8 = vmov 2  }
  0x18   :  { %546 = vperm.xlu1 %1759, %v2044_v25   ;;  %1702 = vmatprep.subr.bf16.mxu0 %v1772_v26  ;;  %v112_v62 = vmul.bf16 %v96_v58, %v45_v53  ;;  %v342_v63 = vmul.bf16 %v326_v59, %v44_v48  ;;  %v79_v1 = vld [vmem:[%s3260_s3 + $0x70] sm:$0xff]  ;;  %v2302_v33 = vld [vmem:[%s3264_s5] ss:$0 sm:$0xff] }
  0x19   :  { %1734 = vmatprep.subr.bf16.mxu1 %v1772_v26  ;;  %521 = vperm.xlu0 %1758, %v2156_v18   ;;  %v1590_v57 = vcombine.low %v340_v46, %v341_v47 }
  0x1b   :  { %1703 = vmatpush3.bf16.msra.mxu0 %v1772_v26  ;;  %1735 = vmatpush3.bf16.msra.mxu1 %v1772_v26  ;;  %v1587_v26 = vcombine.low %v334_v9, %v335_v10 }
  0x1c   :  { %556 = vperm.xlu1 %1759, %v2092_v40   ;;  %1704 = vmatprep.subr.bf16.mxu0 %v1773_v30 }
  0x1d   :  { %1736 = vmatprep.subr.bf16.mxu1 %v1773_v30  ;;  %531 = vperm.xlu0 %1758, %v2196_v37  }
  0x1f   :  { %1705 = vmatpush3.bf16.msra.mxu0 %v1773_v30  ;;  %1737 = vmatpush3.bf16.msra.mxu1 %v1773_v30  ;;  %v1572_v30 = vcombine.low %v105_v11, %v106_v12 }
  0x20   :  { %566 = vperm.xlu1 %1759, %v2103_v50  }
  0x21   :  { %541 = vperm.xlu0 %1758, %v2203_v44  }
  0x22   :  { %1707 = vmatmul.mubr.bf16.vlgmr.msra.gmra.mxu0 %v1569_v55  ;;  %1739 = vmatmul.mubr.bf16.vlgmr.msra.gmra.mxu1 %v1585_v56  ;;  %v77_v55 = vld [vmem:[%s3260_s3 + $0x60] sm:$0xff]  ;;  %v1574_v56 = vcombine.low %v109_v43, %v110_v45 }
  0x23   :  { %1710 = vmatprep.mubr.bf16.mxu0 %v1570_v60  ;;  %1742 = vmatprep.mubr.bf16.mxu1 %v1586_v61  ;;  %v327_v60 = vld [vmem:[%s3263_s2 + $0x3c] sm:$0xf]  ;;  %v111_v61 = vmul.bf16 %v95_v54, %v44_v48 }
  0x24   :  { %1760 = vset.pattern.permute.xlu1 %v1921_v15  ;;  %v343_v0 = vmul.bf16 %v327_v60, %v45_v53 }
  0x25   :  { %758 = vperm.xlu1 %1760, %v2037_v24   ;;  %551 = vperm.xlu0 %1758, %v77_v55   ;;  %v1575_v3 = vcombine.low %v111_v61, %v112_v62 }
  0x26   :  { %v1591_v6 = vcombine.low %v342_v63, %v343_v0 }
  0x29   :  { %766 = vperm.xlu1 %1760, %v1975_v2   ;;  %561 = vperm.xlu0 %1758, %v79_v1  }
  0x2a   :  { %1711 = vmatmul.mubr.bf16.gmra.mxu0 %v1571_v22  ;;  %1743 = vmatmul.mubr.bf16.gmra.mxu1 %v1587_v26 }
  0x2b   :  { %1714 = vmatprep.mubr.bf16.mxu0 %v1572_v30  ;;  %1746 = vmatprep.mubr.bf16.mxu1 %v1588_v31 }
  0x2d   :  { %770 = vperm.xlu1 %1760, %v1987_v5   ;;  %1761 = vset.pattern.permute.xlu0 %v1921_v15 }
  0x2e   :  { %762 = vperm.xlu0 %1761, %v2097_v49  }
  0x31   :  { %774 = vperm.xlu1 %1760, %v2146_v4  }
  0x32   :  { %1715 = vmatmul.mubr.bf16.gmra.mxu0 %v1573_v51  ;;  %1747 = vmatmul.mubr.bf16.gmra.mxu1 %v1589_v52 }
  0x33   :  { %1718 = vmatprep.mubr.bf16.mxu0 %v1574_v56  ;;  %1750 = vmatprep.mubr.bf16.mxu1 %v1590_v57 }
  0x34   :  { %798 = vperm.xlu0 %1761, %v2203_v44  }
  0x35   :  { %778 = vperm.xlu1 %1760, %v1996_v7  }
  0x38   :  { %806 = vperm.xlu0 %1761, %v77_v55  }
  0x39   :  { %782 = vperm.xlu1 %1760, %v2156_v18  }
  0x3a   :  { %1719 = vmatmul.mubr.bf16.gmra.mxu0 %v1575_v3  ;;  %1751 = vmatmul.mubr.bf16.gmra.mxu1 %v1591_v6 }
  0x3c   :  { %814 = vperm.xlu0 %1761, %v79_v1  }
  0x3d   :  { %786 = vperm.xlu1 %1760, %v2023_v17  }
  0x40   :  { %1763 = vset.pattern.permute.xlu0 %v1922_v8 }
  0x41   :  { %790 = vperm.xlu1 %1760, %v2196_v37   ;;  %1002 = vperm.xlu0 %1763, %v2097_v49  }
  0x45   :  { %794 = vperm.xlu1 %1760, %v2032_v23   ;;  %1034 = vperm.xlu0 %1763, %v2032_v23  }
  0x49   :  { %802 = vperm.xlu1 %1760, %v2044_v25   ;;  %1042 = vperm.xlu0 %1763, %v2044_v25  }
  0x4d   :  { %810 = vperm.xlu1 %1760, %v2092_v40   ;;  %1050 = vperm.xlu0 %1763, %v2092_v40  }
  0x51   :  { %818 = vperm.xlu1 %1760, %v2103_v50   ;;  %1058 = vperm.xlu0 %1763, %v2103_v50  }
  0x55   :  { %1762 = vset.pattern.permute.xlu1 %v1922_v8  ;;  %1764 = vset.pattern.permute.xlu0 %v1923_v27 }
  0x56   :  { %998 = vperm.xlu1 %1762, %v2037_v24  }
  0x5a   :  { %1006 = vperm.xlu1 %1762, %v1975_v2  }
  0x5e   :  { %1010 = vperm.xlu1 %1762, %v1987_v5  }
  0x62   :  { %1014 = vperm.xlu1 %1762, %v2146_v4  }
  0x66   :  { %1018 = vperm.xlu1 %1762, %v1996_v7  }
  0x6a   :  { %1022 = vperm.xlu1 %1762, %v2156_v18  }
  0x6e   :  { %1026 = vperm.xlu1 %1762, %v2023_v17  }
  0x72   :  { %1030 = vperm.xlu1 %1762, %v2196_v37   ;;  %v2308_v37 = vld [vmem:[%s3265_s6] ss:$0 sm:$0xff] }
  0x76   :  { %1038 = vperm.xlu1 %1762, %v2203_v44  }
  0x7a   :  { %1046 = vperm.xlu1 %1762, %v77_v55  }
  0x7e   :  { %1054 = vperm.xlu1 %1762, %v79_v1  }
  0x7f   :  { %v502_v23 = vpop.permute.xlu1 %501 }
  0x80   :  { %v577_v60 = vmul.f32 %v2302_v33, %v502_v23 }
  0x82   :  { %1765 = vset.pattern.permute.xlu1 %v1923_v27 }
  0x83   :  { %v2257_v2 = vpop.permute.xlu1 %506 }
  0x85   :  { %v492_v19 = vpop.permute.xlu0 %491 }
  0x86   :  { %v575_v3 = vmul.f32 %v2302_v33, %v492_v19 }
  0x87   :  { %v2259_v24 = vpop.permute.xlu1 %516 }
  0x89   :  { %v497_v21 = vpop.permute.xlu0 %496 }
  0x8a   :  { %v576_v8 = vmul.f32 %v2302_v33, %v497_v21 }
  0x8b   :  { %v2261_v5 = vpop.permute.xlu1 %526 }
  0x8f   :  { %v2263_v25 = vpop.permute.xlu1 %536 }
  0x90   :  { %v2297_v26 = vpop.permute.xlu0 %511 }
  0x93   :  { %v2265_v7 = vpop.permute.xlu1 %546 }
  0x94   :  { %v522_v29 = vpop.permute.xlu0 %521 }
  0x97   :  { %v2267_v40 = vpop.permute.xlu1 %556 }
  0x98   :  { %v532_v34 = vpop.permute.xlu0 %531 }
  0x9b   :  { %v2269_v17 = vpop.permute.xlu1 %566 }
  0x9c   :  { %v542_v43 = vpop.permute.xlu0 %541 }
  0xa0   :  { %v2271_v49 = vpop.permute.xlu1 %758  ;;  %v552_v53 = vpop.permute.xlu0 %551 }
  0xa1   :  { %v821_v19 = vmul.f32 %v2302_v33, %v2271_v49  ;;  %v582_v49 = vmul.f32 %v2302_v33, %v2261_v5  ;;  %v579_v5 = vmul.f32 %v2302_v33, %v2297_v26 }
  0xa4   :  { %v767_v50 = vpop.permute.xlu1 %766  ;;  %v2333_v61 = vpop.permute.xlu0 %561 }
  0xa5   :  { %v823_v63 = vmul.f32 %v2302_v33, %v767_v50 }
  0xa8   :  { %v2273_v4 = vpop.permute.xlu1 %770 }
  0xa9   :  { %v763_v50 = vpop.permute.xlu0 %762 }
  0xac   :  { %v2275_v9 = vpop.permute.xlu1 %774 }
  0xad   :  { %v825_v26 = vmul.f32 %v2302_v33, %v2275_v9 }
  0xb0   :  { %v2277_v10 = vpop.permute.xlu1 %778 }
  0xb4   :  { %v2279_v11 = vpop.permute.xlu1 %782 }
  0xb8   :  { %v2281_v12 = vpop.permute.xlu1 %786 }
  0xbc   :  { %v2283_v13 = vpop.permute.xlu1 %790 }
  0xc0   :  { %v2285_v14 = vpop.permute.xlu1 %794 }
  0xc4   :  { %v2287_v15 = vpop.permute.xlu1 %802 }
  0xc8   :  { %v2289_v16 = vpop.permute.xlu1 %810 }
  0xcc   :  { %v2291_v18 = vpop.permute.xlu1 %818 }
  0xd1   :  { %v2293_v20 = vpop.permute.xlu1 %998 }
  0xd5   :  { %v2295_v22 = vpop.permute.xlu1 %1006 }
  0xd9   :  { %v1011_v28 = vpop.permute.xlu1 %1010 }
  0xda   :  { %v1064_v36 = vmul.f32 %v2302_v33, %v1011_v28 }
  0xdd   :  { %v1015_v30 = vpop.permute.xlu1 %1014 }
  0xde   :  { %v1065_v54 = vmul.f32 %v2302_v33, %v1015_v30 }
  0xe1   :  { %v2310_v38 = vpop.permute.xlu1 %1018 }
  0xe2   :  { %v1708_v31 = vpop.f32.mrf.mxu0  ;;  %v1740_v44 = vpop.f32.mrf.mxu1 }
  0xe3   :  { %v2327_v58 = vadd.f32 %v1708_v31, %v2308_v37  ;;  %v2340_v1 = vadd.f32 %v1740_v44, %v2308_v37 }
  0xe4   :  { %v249_v32 = vpop.f32.mrf.mxu0  ;;  %v426_v48 = vpop.f32.mrf.mxu1 }
  0xe5   :  { %v1023_v46 = vpop.permute.xlu1 %1022  ;;  %v2337_v0 = vadd.f32 %v577_v60, %v2327_v58  ;;  %3288 = vst [vmem:[#allocation5_spill] sm:$0xff] %v2340_v1  ;;  %v2344_v6 = vadd.f32 %v2308_v37, %v249_v32  ;;  %v2351_v28 = vadd.f32 %v2308_v37, %v426_v48  ;;  %v2355_v31 = vadd.f32 %v823_v63, %v2340_v1 }
  0xe6   :  { %v1709_v35 = vpop.f32.mrf.mxu0  ;;  %v1067_v47 = vmul.f32 %v2302_v33, %v1023_v46  ;;  %v1741_v56 = vpop.f32.mrf.mxu1  ;;  %v822_v32 = vmul.f32 %v2302_v33, %v763_v50  ;;  %v581_v46 = vmul.f32 %v2302_v33, %v522_v29  ;;  %v2391_v29 = vmul.f32 %v2302_v33, %v532_v34 }
  0xe7   :  { %v2313_v39 = vadd.f32 %v1709_v35, %v2308_v37  ;;  %3290 = vst [vmem:[#allocation7_spill] sm:$0xff] %v2351_v28  ;;  %v625_v30 = vmin.f32 %v2337_v0, 0.0  ;;  %v2361_v21 = vadd.f32 %v575_v3, %v2344_v6  ;;  %v2408_v50 = vadd.f32 %v1741_v56, %v2308_v37 }
  0xe8   :  { %v252_v41 = vpop.f32.mrf.mxu0  ;;  %v429_v62 = vpop.f32.mrf.mxu1  ;;  %vm609_vm0 = vcmp.gt.f32.partialorder %v2337_v0, 0.0  ;;  %vm855_vm1 = vcmp.gt.f32.partialorder %v2355_v31, 0.0 }
  0xe9   :  { %v2316_v42 = vadd.f32 %v1064_v36, %v2313_v39  ;;  %v2348_v23 = vadd.f32 %v2308_v37, %v252_v41  ;;  %v2364_v35 = vadd.f32 %v2308_v37, %v429_v62  ;;  %v578_v36 = vmul.f32 %v2302_v33, %v2257_v2  ;;  %3293 = vst [vmem:[#allocation10_spill] sm:$0xff] %v2408_v50 }
  0xea   :  { %v1712_v45 = vpop.f32.mrf.mxu0  ;;  %v1744_v27 = vpop.f32.mrf.mxu1  ;;  %v2385_v2 = vmul.f32 %v2302_v33, %v2265_v7  ;;  %v623_v60 = vmin.f32 %v2361_v21, 0.0  ;;  %v585_v7 = vmul.f32 %v2302_v33, %v542_v43  ;;  %vm607_vm3 = vcmp.gt.f32.partialorder %v2361_v21, 0.0 }
  0xeb   :  { %3285 = vst [vmem:[#allocation2_spill] sm:$0xff] %v2316_v42  ;;  %v274_v51 = vadd.f32 %v1712_v45, %v2308_v37  ;;  %3289 = vst [vmem:[#allocation6_spill] sm:$0xff] %v2348_v23  ;;  %v2369_v41 = vadd.f32 %v576_v8, %v2348_v23  ;;  %v580_v45 = vmul.f32 %v2302_v33, %v2259_v24  ;;  %v871_v24 = vmin.f32 %v2355_v31, 0.0 }
  0xec   :  { %v265_v52 = vpop.f32.mrf.mxu0  ;;  %3291 = vst [vmem:[#allocation8_spill] sm:$0xff] %v2364_v35  ;;  %v442_v44 = vpop.f32.mrf.mxu1  ;;  %v2395_v62 = vadd.f32 %v822_v32, %v2364_v35  ;;  %v2402_v3 = vadd.f32 %v1744_v27, %v2308_v37  ;;  %v2415_v27 = vadd.f32 %v578_v36, %v2313_v39  ;;  %v2418_v32 = vmul.f32 %v2302_v33, %v552_v53 }
  0xed   :  { %v2321_v55 = vadd.f32 %v1067_v47, %v274_v51  ;;  %v2324_v57 = vadd.f32 %v2308_v37, %v265_v52  ;;  %v2377_v47 = vadd.f32 %v821_v19, %v2351_v28  ;;  %v2381_v52 = vmul.f32 %v2302_v33, %v2263_v25 }
  0xee   :  { %v1713_v48 = vpop.f32.mrf.mxu0  ;;  %v824_v25 = vmul.f32 %v2302_v33, %v2273_v4  ;;  %v624_v63 = vmin.f32 %v2369_v41, 0.0  ;;  %3292 = vst [vmem:[#allocation9_spill] sm:$0xff] %v2402_v3  ;;  %v1745_v8 = vpop.f32.mrf.mxu1  ;;  %v827_v4 = vmul.f32 %v2302_v33, %v2279_v11  ;;  %v889_v43 = vmul.f32 1.442695, %v871_v24 }
  0xef   :  { %3286 = vst [vmem:[#allocation3_spill] sm:$0xff] %v2321_v55  ;;  %v2330_v59 = vadd.f32 %v1065_v54, %v2324_v57  ;;  %v643_v54 = vmul.f32 1.442695, %v625_v30  ;;  %v869_v34 = vmin.f32 %v2377_v47, 0.0  ;;  %v2410_v30 = vadd.f32 %v581_v46, %v274_v51 }
  0xf0   :  { %v268_v19 = vpop.f32.mrf.mxu0  ;;  %v639_v9 = vmul.f32 1.442695, %v623_v60  ;;  %v870_v1 = vmin.f32 %v2395_v62, 0.0  ;;  %v2422_v56 = vadd.f32 %v2308_v37, %v442_v44  ;;  %v828_v51 = vmul.f32 %v2302_v33, %v2281_v12  ;;  %v445_v39 = vpop.f32.mrf.mxu1 }
  0xf1   :  { %3287 = vst [vmem:[#allocation4_spill] sm:$0xff] %v2330_v59  ;;  %1774 = vpow2.f32 %v643_v54  ;;  %v641_v46 = vmul.f32 1.442695, %v624_v63  ;;  %v2427_v11 = vadd.f32 %v827_v4, %v2402_v3  ;;  %v2430_v54 = vadd.f32 %v1713_v48, %v2308_v37 }
  0xf2   :  { %3294 = vst [vmem:[#allocation11_spill] sm:$0xff] %v2422_v56  ;;  %v885_v36 = vmul.f32 1.442695, %v869_v34  ;;  %v2433_v53 = vadd.f32 %v824_v25, %v2408_v50  ;;  %v629_v24 = vmin.f32 %v2410_v30, 0.0  ;;  %v2437_v44 = vadd.f32 %v1745_v8, %v2308_v37  ;;  %v1716_v60 = vpop.f32.mrf.mxu0 }
  0xf3   :  { %1776 = vpow2.f32 %v889_v43  ;;  %v626_v12 = vmin.f32 %v2415_v27, 0.0  ;;  %v2441_v63 = vadd.f32 %v579_v5, %v2324_v57  ;;  %v2444_v48 = vadd.f32 %v2308_v37, %v268_v19  ;;  %v799_v43 = vpop.permute.xlu0 %798 }
  0xf4   :  { %3295 = vst [vmem:[#allocation12_spill] sm:$0xff] %v2437_v44  ;;  %1778 = vpow2.f32 %v639_v9  ;;  %v887_v34 = vmul.f32 1.442695, %v870_v1  ;;  %v2447_v25 = vadd.f32 %v825_v26, %v2422_v56  ;;  %v2450_v4 = vadd.f32 %v2308_v37, %v445_v39  ;;  %v281_v9 = vpop.f32.mrf.mxu0 }
  0xf5   :  { %v826_v8 = vmul.f32 %v2302_v33, %v2277_v10  ;;  %1780 = vpow2.f32 %v641_v46  ;;  %v875_v3 = vmin.f32 %v2427_v11, 0.0  ;;  %v2456_v57 = vadd.f32 %v582_v49, %v2430_v54  ;;  %v1748_v49 = vpop.f32.mrf.mxu1 }
  0xf6   :  { %3296 = vst [vmem:[#allocation13_spill] sm:$0xff] %v2450_v4  ;;  %v872_v5 = vmin.f32 %v2433_v53, 0.0  ;;  %v651_v19 = vmul.f32 1.442695, %v629_v24  ;;  %v2460_v1 = vadd.f32 %v828_v51, %v2437_v44  ;;  %v2463_v26 = vadd.f32 %v1716_v60, %v2308_v37  ;;  %v1717_v35 = vpop.f32.mrf.mxu0 }
  0xf7   :  { %v831_v39 = vmul.f32 %v2302_v33, %v799_v43  ;;  %1782 = vpow2.f32 %v885_v36  ;;  %v627_v10 = vmin.f32 %v2441_v63, 0.0  ;;  %v2468_v46 = vadd.f32 %v580_v45, %v2444_v48 }
  0xf8   :  { %3297 = vst [vmem:[#allocation14_spill] sm:$0xff] %v2463_v26  ;;  %v645_v56 = vmul.f32 1.442695, %v626_v12  ;;  %1784 = vpow2.f32 %v887_v34  ;;  %v873_v24 = vmin.f32 %v2447_v25, 0.0  ;;  %v2472_v51 = vadd.f32 %v826_v8, %v2450_v4  ;;  %v807_v8 = vpop.permute.xlu0 %806 }
  0xf9   :  { %v897_v44 = vmul.f32 1.442695, %v875_v3  ;;  %v630_v60 = vmin.f32 %v2456_v57, 0.0  ;;  %v2476_v50 = vadd.f32 %v1748_v49, %v2308_v37  ;;  %v2479_v36 = vadd.f32 %v2308_v37, %v281_v9  ;;  %v458_v9 = vpop.f32.mrf.mxu1 }
  0xfa   :  { %v891_v43 = vmul.f32 1.442695, %v872_v5  ;;  %1786 = vpow2.f32 %v651_v19  ;;  %v876_v45 = vmin.f32 %v2460_v1, 0.0  ;;  %v2483_v12 = vadd.f32 %v585_v7, %v2463_v26 }
  0xfb   :  { %3298 = vst [vmem:[#allocation15_spill] sm:$0xff] %v2476_v50  ;;  %3299 = vst [vmem:[#allocation16_spill] sm:$0xff] %v2479_v36  ;;  %v829_v34 = vmul.f32 %v2302_v33, %v2283_v13  ;;  %v2489_v3 = vmul.f32 %v2302_v33, %v2333_v61  ;;  %v647_v49 = vmul.f32 1.442695, %v627_v10  ;;  %v628_v4 = vmin.f32 %v2468_v46, 0.0 }
  0xfc   :  { %v2493_v5 = vmul.f32 %v2302_v33, %v807_v8  ;;  %1788 = vpow2.f32 %v645_v56  ;;  %v893_v19 = vmul.f32 1.442695, %v873_v24  ;;  %v874_v7 = vmin.f32 %v2472_v51, 0.0 }
  0xfd   :  { %1790 = vpow2.f32 %v897_v44  ;;  %v653_v13 = vmul.f32 1.442695, %v630_v60  ;;  %v2497_v26 = vadd.f32 %v831_v39, %v2476_v50  ;;  %v2501_v61 = vadd.f32 %v2391_v29, %v2479_v36  ;;  %v2513_v44 = vld [vmem:[%s3266_s7] ss:$0 sm:$0xff] }
  0xfe   :  { %v1775_v28 = vpop.eup %1774  ;;  %1792 = vpow2.f32 %v891_v43  ;;  %v899_v10 = vmul.f32 1.442695, %v876_v45  ;;  %v633_v55 = vmin.f32 %v2483_v12, 0.0  ;;  %v2505_v8 = vadd.f32 %v2308_v37, %v458_v9 }
  0xff   :  { %1794 = vpow2.f32 %v647_v49  ;;  %v649_v56 = vmul.f32 1.442695, %v628_v4  ;;  %v2508_v24 = vadd.f32 %v1717_v35, %v2308_v37  ;;  %v1595_v39 = vadd.f32 -1.0, %v1775_v28  ;;  %v1749_v49 = vpop.f32.mrf.mxu1  ;;  %v815_v28 = vpop.permute.xlu0 %814 }
 0x100   :  { %3300 = vst [vmem:[#allocation17_spill] sm:$0xff] %v2505_v8  ;;  %v1777_v29 = vpop.eup %1776  ;;  %v2517_v60 = vmul.f32 %v2302_v33, %v2285_v14  ;;  %1796 = vpow2.f32 %v893_v19  ;;  %v895_v43 = vmul.f32 1.442695, %v874_v7  ;;  %v879_v35 = vmin.f32 %v2497_v26, 0.0  ;;  %v284_v19 = vpop.f32.mrf.mxu0 }
 0x101   :  { %v1779_v45 = vpop.eup %1778  ;;  %1798 = vpow2.f32 %v653_v13  ;;  %v631_v4 = vmin.f32 %v2501_v61, 0.0  ;;  %v689_v9 = vsel %vm609_vm0, %v2337_v0, %v1595_v39  ;;  %v659_v36 = vmul.f32 1.442695, %v633_v55 }
 0x102   :  { %v1781_v50 = vpop.eup %1780  ;;  %1800 = vpow2.f32 %v899_v10  ;;  %v2524_v14 = vadd.f32 %v829_v34, %v2505_v8  ;;  %v711_v7 = vmul.f32 %v2513_v44, %v689_v9  ;;  %v2528_v59 = vmul.f32 %v2302_v33, %v815_v28  ;;  %v1720_v8 = vpop.f32.mrf.mxu0 }
 0x103   :  { %1802 = vpow2.f32 %v649_v56  ;;  %v2532_v13 = vadd.f32 %v2385_v2, %v2508_v24  ;;  %v1612_v42 = vadd.f32 -1.0, %v1777_v29  ;;  %v832_v10 = vmul.f32 %v2302_v33, %v2287_v15  ;;  %v461_v29 = vpop.f32.mrf.mxu1 }
 0x104   :  { %v1783_v0 = vpop.eup %1782  ;;  %1804 = vpow2.f32 %v895_v43  ;;  %v2537_v55 = vadd.f32 %v1749_v49, %v2308_v37  ;;  %729 = vadd.xlane.f32.xlu0 %v711_v7  ;;  %v905_v39 = vmul.f32 1.442695, %v879_v35  ;;  %v655_v9 = vmul.f32 1.442695, %v631_v4 }
 0x105   :  { %v1785_v34 = vpop.eup %1784  ;;  %v935_v56 = vsel %vm855_vm1, %v2355_v31, %v1612_v42  ;;  %v1594_v28 = vadd.f32 -1.0, %v1781_v50  ;;  %1806 = vpow2.f32 %v659_v36  ;;  %v877_v2 = vmin.f32 %v2524_v14, 0.0 }
 0x106   :  { %v951_v15 = vmul.f32 %v2513_v44, %v935_v56  ;;  %vm608_vm2 = vcmp.gt.f32.partialorder %v2369_v41, 0.0  ;;  %v634_v49 = vmin.f32 %v2532_v13, 0.0  ;;  %v2546_v7 = vadd.f32 %v2308_v37, %v284_v19 }
 0x107   :  { %v1787_v43 = vpop.eup %1786  ;;  %v688_v35 = vsel %vm608_vm2, %v2369_v41, %v1594_v28  ;;  %v1593_v4 = vadd.f32 -1.0, %v1779_v45  ;;  %v2550_v42 = vadd.f32 %v832_v10, %v2537_v55  ;;  %v1611_v50 = vadd.f32 -1.0, %v1785_v34  ;;  %v1752_v45 = vpop.f32.mrf.mxu1 }
 0x108   :  { %969 = vadd.xlane.f32.xlu0 %v951_v15  ;;  %v710_v31 = vmul.f32 %v2513_v44, %v688_v35  ;;  %v2555_v56 = vadd.f32 %v1720_v8, %v2308_v37  ;;  %vm854_vm4 = vcmp.gt.f32.partialorder %v2395_v62, 0.0  ;;  %v1610_v19 = vadd.f32 -1.0, %v1783_v0 }
 0x109   :  { %v1789_v36 = vpop.eup %1788  ;;  %v687_v23 = vsel %vm607_vm3, %v2361_v21, %v1593_v4  ;;  %v934_v28 = vsel %vm854_vm4, %v2395_v62, %v1611_v50  ;;  %vm853_vm5 = vcmp.gt.f32.partialorder %v2377_v47, 0.0  ;;  %v1599_v15 = vadd.f32 -1.0, %v1787_v43 }
 0x10a   :  { %v1791_v41 = vpop.eup %1790  ;;  %727 = vadd.xlane.f32.xlu1 %v710_v31  ;;  %v709_v10 = vmul.f32 %v2513_v44, %v687_v23  ;;  %1808 = vpow2.f32 %v905_v39  ;;  %v2564_v8 = vadd.f32 %v2381_v52, %v2546_v7  ;;  %v2567_v21 = vadd.f32 %v1752_v45, %v2308_v37 }
 0x10b   :  { %v1793_v34 = vpop.eup %1792  ;;  %v933_v0 = vsel %vm853_vm5, %v2377_v47, %v1610_v19  ;;  %v661_v4 = vmul.f32 1.442695, %v634_v49  ;;  %v950_v23 = vmul.f32 %v2513_v44, %v934_v28  ;;  %vm613_vm6 = vcmp.gt.f32.partialorder %v2410_v30, 0.0  ;;  %v297_v19 = vpop.f32.mrf.mxu0 }
 0x10c   :  { %3301 = vst [vmem:[#allocation18_spill] sm:$0xff] %v2567_v21  ;;  %v1795_v35 = vpop.eup %1794  ;;  %725 = vadd.xlane.f32.xlu0 %v709_v10  ;;  %v1596_v62 = vadd.f32 -1.0, %v1789_v36  ;;  %v901_v31 = vmul.f32 1.442695, %v877_v2  ;;  %v2574_v39 = vadd.f32 %v2489_v3, %v2555_v56  ;;  %v693_v52 = vsel %vm613_vm6, %v2410_v30, %v1599_v15 }
 0x10d   :  { %v1797_v43 = vpop.eup %1796  ;;  %v1616_v50 = vadd.f32 -1.0, %v1791_v41  ;;  %v880_v47 = vmin.f32 %v2550_v42, 0.0  ;;  %v2579_v49 = vadd.f32 %v2308_v37, %v461_v29  ;;  %v949_v10 = vmul.f32 %v2513_v44, %v933_v0 }
 0x10e   :  { %v1799_v45 = vpop.eup %1798  ;;  %967 = vadd.xlane.f32.xlu1 %v950_v23  ;;  %vm610_vm7 = vcmp.gt.f32.partialorder %v2415_v27, 0.0  ;;  %1810 = vpow2.f32 %v655_v9  ;;  %v2585_v3 = vadd.f32 %v2528_v59, %v2567_v21  ;;  %v1613_v36 = vadd.f32 -1.0, %v1793_v34  ;;  %v474_v23 = vpop.f32.mrf.mxu1 }
 0x10f   :  { %v1801_v2 = vpop.eup %1800  ;;  %v690_v30 = vsel %vm610_vm7, %v2415_v27, %v1596_v62  ;;  %1812 = vpow2.f32 %v661_v4  ;;  %v632_v29 = vmin.f32 %v2564_v8, 0.0  ;;  %v715_v28 = vmul.f32 %v2513_v44, %v693_v52 }
 0x110   :  { %v1803_v41 = vpop.eup %1802  ;;  %965 = vadd.xlane.f32.xlu0 %v949_v10  ;;  %vm859_vm8 = vcmp.gt.f32.partialorder %v2427_v11, 0.0  ;;  %v637_v9 = vmin.f32 %v2574_v39, 0.0  ;;  %v2595_v0 = vadd.f32 %v2308_v37, %v297_v19  ;;  %v1597_v27 = vadd.f32 -1.0, %v1795_v35 }
 0x111   :  { %v2591_v15 = vpop.eup %1804  ;;  %v939_v59 = vsel %vm859_vm8, %v2427_v11, %v1616_v50  ;;  %v907_v34 = vmul.f32 1.442695, %v880_v47  ;;  %v2600_v4 = vadd.f32 %v2517_v60, %v2579_v49  ;;  %v712_v62 = vmul.f32 %v2513_v44, %v690_v30 }
 0x112   :  { %737 = vadd.xlane.f32.xlu1 %v715_v28  ;;  %vm856_vm9 = vcmp.gt.f32.partialorder %v2433_v53, 0.0  ;;  %v1807_v52 = vpop.eup %1806  ;;  %v883_v10 = vmin.f32 %v2585_v3, 0.0  ;;  %v2606_v19 = vadd.f32 %v2308_v37, %v474_v23  ;;  %v1600_v35 = vadd.f32 -1.0, %v1799_v45 }
 0x113   :  { %v936_v11 = vsel %vm856_vm9, %v2433_v53, %v1613_v36  ;;  %1814 = vpow2.f32 %v901_v31  ;;  %v657_v50 = vmul.f32 1.442695, %v632_v29  ;;  %v955_v60 = vmul.f32 %v2513_v44, %v939_v59 }
 0x114   :  { %731 = vadd.xlane.f32.xlu0 %v712_v62  ;;  %vm611_vm10 = vcmp.gt.f32.partialorder %v2441_v63, 0.0  ;;  %v667_v47 = vmul.f32 1.442695, %v637_v9  ;;  %v2613_v30 = vadd.f32 %v2418_v32, %v2595_v0  ;;  %v1614_v21 = vadd.f32 -1.0, %v1797_v43 }
 0x115   :  { %v691_v28 = vsel %vm611_vm10, %v2441_v63, %v1597_v27  ;;  %1816 = vpow2.f32 %v907_v34  ;;  %v878_v23 = vmin.f32 %v2600_v4, 0.0  ;;  %v952_v53 = vmul.f32 %v2513_v44, %v936_v11 }
 0x116   :  { %977 = vadd.xlane.f32.xlu1 %v955_v60  ;;  %vm614_vm11 = vcmp.gt.f32.partialorder %v2456_v57, 0.0  ;;  %v913_v31 = vmul.f32 1.442695, %v883_v10  ;;  %v2621_v45 = vadd.f32 %v2493_v5, %v2606_v19  ;;  %v1617_v32 = vadd.f32 -1.0, %v1801_v2 }
 0x117   :  { %v694_v36 = vsel %vm614_vm11, %v2456_v57, %v1600_v35  ;;  %v1809_v29 = vpop.eup %1808  ;;  %v1061_v63 = vmul.f32 %v2302_v33, %v2293_v20  ;;  %v713_v43 = vmul.f32 %v2513_v44, %v691_v28  ;;  %vm857_vm12 = vcmp.gt.f32.partialorder %v2447_v25, 0.0 }
 0x118   :  { %971 = vadd.xlane.f32.xlu0 %v952_v53  ;;  %1818 = vpow2.f32 %v667_v47  ;;  %v635_v9 = vmin.f32 %v2613_v30, 0.0  ;;  %v937_v59 = vsel %vm857_vm12, %v2447_v25, %v1614_v21  ;;  %v1603_v27 = vadd.f32 -1.0, %v1807_v52 }
 0x119   :  { %1820 = vpow2.f32 %v657_v50  ;;  %v903_v5 = vmul.f32 1.442695, %v878_v23  ;;  %v716_v57 = vmul.f32 %v2513_v44, %v694_v36  ;;  %vm860_vm13 = vcmp.gt.f32.partialorder %v2460_v1, 0.0 }
 0x11a   :  { %733 = vadd.xlane.f32.xlu1 %v713_v43  ;;  %1822 = vpow2.f32 %v913_v31  ;;  %v881_v20 = vmin.f32 %v2621_v45, 0.0  ;;  %v940_v2 = vsel %vm860_vm13, %v2460_v1, %v1617_v32  ;;  %v1598_v34 = vadd.f32 -1.0, %v1803_v41 }
 0x11b   :  { %v1811_v62 = vpop.eup %1810  ;;  %v953_v10 = vmul.f32 %v2513_v44, %v937_v59  ;;  %vm617_vm14 = vcmp.gt.f32.partialorder %v2483_v12, 0.0  ;;  %v2637_v21 = vadd.f32 %v1061_v63, %v2344_v6  ;;  %v663_v52 = vmul.f32 1.442695, %v635_v9 }
 0x11c   :  { %739 = vadd.xlane.f32.xlu0 %v716_v57  ;;  %v1813_v25 = vpop.eup %1812  ;;  %v697_v11 = vsel %vm617_vm14, %v2483_v12, %v1603_v27  ;;  %v1620_v35 = vadd.f32 -1.0, %v1809_v29  ;;  %v956_v50 = vmul.f32 %v2513_v44, %v940_v2  ;;  %vm612_vm15 = vcmp.gt.f32.partialorder %v2468_v46, 0.0 }
 0x11d   :  { %vm863_vm0 = vcmp.gt.f32.partialorder %v2497_v26, 0.0  ;;  %1824 = vpow2.f32 %v903_v5  ;;  %v909_v1 = vmul.f32 1.442695, %v881_v20  ;;  %v692_v41 = vsel %vm612_vm15, %v2468_v46, %v1598_v34 }
 0x11e   :  { %973 = vadd.xlane.f32.xlu1 %v953_v10  ;;  %v1615_v60 = vadd.f32 -1.0, %v2591_v15  ;;  %v719_v6 = vmul.f32 %v2513_v44, %v697_v11  ;;  %v1109_v12 = vmin.f32 %v2637_v21, 0.0  ;;  %1826 = vpow2.f32 %v663_v52 }
 0x11f   :  { %v943_v28 = vsel %vm863_vm0, %v2497_v26, %v1620_v35  ;;  %v1601_v23 = vadd.f32 -1.0, %v1811_v62  ;;  %v714_v53 = vmul.f32 %v2513_v44, %v692_v41  ;;  %vm858_vm1 = vcmp.gt.f32.partialorder %v2472_v51, 0.0 }
 0x120   :  { %979 = vadd.xlane.f32.xlu0 %v956_v50  ;;  %v1815_v47 = vpop.eup %1814  ;;  %1828 = vpow2.f32 %v909_v1  ;;  %v938_v46 = vsel %vm858_vm1, %v2472_v51, %v1615_v60  ;;  %v1604_v15 = vadd.f32 -1.0, %v1813_v25  ;;  %v959_v36 = vmul.f32 %v2513_v44, %v943_v28 }
 0x121   :  { %vm615_vm2 = vcmp.gt.f32.partialorder %v2501_v61, 0.0  ;;  %v1125_v32 = vmul.f32 1.442695, %v1109_v12  ;;  %v1618_v26 = vadd.f32 -1.0, %v1815_v47  ;;  %v954_v43 = vmul.f32 %v2513_v44, %v938_v46  ;;  %v1721_v46 = vpop.f32.mrf.mxu0 }
 0x122   :  { %745 = vadd.xlane.f32.xlu1 %v719_v6  ;;  %v1817_v31 = vpop.eup %1816  ;;  %v695_v29 = vsel %vm615_vm2, %v2501_v61, %v1601_v23  ;;  %vm618_vm3 = vcmp.gt.f32.partialorder %v2532_v13, 0.0  ;;  %vm861_vm4 = vcmp.gt.f32.partialorder %v2524_v14, 0.0  ;;  %vm864_vm5 = vcmp.gt.f32.partialorder %v2550_v42, 0.0 }
 0x123   :  { %v698_v59 = vsel %vm618_vm3, %v2532_v13, %v1604_v15  ;;  %v1621_v51 = vadd.f32 -1.0, %v1817_v31  ;;  %v717_v5 = vmul.f32 %v2513_v44, %v695_v29  ;;  %1830 = vpow2.f32 %v1125_v32  ;;  %v1902_v32 = vld [vmem:[%s3260_s3] sm:$0xff] }
 0x124   :  { %735 = vadd.xlane.f32.xlu0 %v714_v53  ;;  %v941_v61 = vsel %vm861_vm4, %v2524_v14, %v1618_v26  ;;  %v720_v20 = vmul.f32 %v2513_v44, %v698_v59  ;;  %vm621_vm6 = vcmp.gt.f32.partialorder %v2574_v39, 0.0  ;;  %vm867_vm7 = vcmp.gt.f32.partialorder %v2585_v3, 0.0  ;;  %v300_v26 = vpop.f32.mrf.mxu0 }
 0x125   :  { %v1819_v63 = vpop.eup %1818  ;;  %v944_v2 = vsel %vm864_vm5, %v2550_v42, %v1621_v51  ;;  %v957_v10 = vmul.f32 %v2513_v44, %v941_v61  ;;  %vm616_vm8 = vcmp.gt.f32.partialorder %v2564_v8, 0.0  ;;  %vm862_vm9 = vcmp.gt.f32.partialorder %v2600_v4, 0.0  ;;  %v2717_v61 = vpop.permute.xlu0 %1002 }
 0x126   :  { %985 = vadd.xlane.f32.xlu1 %v959_v36  ;;  %v1821_v9 = vpop.eup %1820  ;;  %v1607_v57 = vadd.f32 -1.0, %v1819_v63  ;;  %v960_v52 = vmul.f32 %v2513_v44, %v944_v2  ;;  %vm619_vm10 = vcmp.gt.f32.partialorder %v2613_v30, 0.0  ;;  %vm865_vm11 = vcmp.gt.f32.partialorder %v2621_v45, 0.0 }
 0x127   :  { %v1823_v27 = vpop.eup %1822  ;;  %v1602_v34 = vadd.f32 -1.0, %v1821_v9  ;;  %vm1093_vm12 = vcmp.gt.f32.partialorder %v2637_v21, 0.0  ;;  %v2687_v15 = vadd.f32 %v1721_v46, %v2308_v37  ;;  %v590_v36 = vmul.f32 %v2302_v33, %v2269_v17  ;;  %v1904_v17 = vld [vmem:[%s3260_s3 + $0x40] sm:$0xff] }
 0x128   :  { %975 = vadd.xlane.f32.xlu0 %v954_v43  ;;  %v1624_v13 = vadd.f32 -1.0, %v1823_v27  ;;  %v701_v14 = vsel %vm621_vm6, %v2574_v39, %v1607_v57  ;;  %v836_v63 = vmul.f32 %v2302_v33, %v2291_v18  ;;  %v1903_v43 = vld [vmem:[%s3260_s3 + $0x8] sm:$0xff]  ;;  %v301_v51 = vadd.f32 %v2308_v37, %v300_v26  ;;  %v1905_v57 = vld [vmem:[%s3260_s3 + $0x10] sm:$0xff] }
 0x129   :  { %v696_v42 = vsel %vm616_vm8, %v2564_v8, %v1602_v34  ;;  %v723_v1 = vmul.f32 %v2513_v44, %v701_v14  ;;  %v588_v18 = vmul.f32 %v2302_v33, %v2267_v40  ;;  %v1035_v14 = vpop.permute.xlu0 %1034 }
 0x12a   :  { %741 = vadd.xlane.f32.xlu1 %v717_v5  ;;  %v1825_v62 = vpop.eup %1824  ;;  %v947_v11 = vsel %vm867_vm7, %v2585_v3, %v1624_v13  ;;  %v718_v60 = vmul.f32 %v2513_v44, %v696_v42  ;;  %v1063_v5 = vmul.f32 %v2302_v33, %v2295_v22  ;;  %v834_v22 = vmul.f32 %v2302_v33, %v2289_v16  ;;  %v1027_v16 = vpop.permute.xlu1 %1026 }
 0x12b   :  { %v1827_v25 = vpop.eup %1826  ;;  %v1619_v35 = vadd.f32 -1.0, %v1825_v62  ;;  %v963_v39 = vmul.f32 %v2513_v44, %v947_v11  ;;  %v2726_v13 = vadd.f32 %v588_v18, %v301_v51  ;;  %v1066_v62 = vmul.f32 %v2302_v33, %v2310_v38 }
 0x12c   :  { %747 = vadd.xlane.f32.xlu0 %v720_v20  ;;  %v1605_v41 = vadd.f32 -1.0, %v1827_v25  ;;  %v1906_v20 = vld [vmem:[%s3260_s3 + $0x68] sm:$0xff]  ;;  %v1907_v25 = vld [vmem:[%s3260_s3 + $0x78] sm:$0xff]  ;;  %v1068_v38 = vmul.f32 %v2302_v33, %v1027_v16 }
 0x12d   :  { %v1829_v50 = vpop.eup %1828  ;;  %v942_v6 = vsel %vm862_vm9, %v2600_v4, %v1619_v35  ;;  %v1043_v35 = vpop.permute.xlu0 %1042  ;;  %vm620_vm15 = vcmp.gt.f32.partialorder %v2726_v13, 0.0 }
 0x12e   :  { %981 = vadd.xlane.f32.xlu1 %v957_v10  ;;  %v1622_v47 = vadd.f32 -1.0, %v1829_v50  ;;  %v699_v8 = vsel %vm619_vm10, %v2613_v30, %v1605_v41  ;;  %v958_v12 = vmul.f32 %v2513_v44, %v942_v6  ;;  %v2736_v10 = vadd.f32 %v1063_v5, %v2327_v58 }
 0x12f   :  { %v721_v23 = vmul.f32 %v2513_v44, %v699_v8  ;;  %v2748_v58 = vadd.f32 %v1066_v62, %v2444_v48  ;;  %v1070_v6 = vmul.f32 %v2302_v33, %v1035_v14 }
 0x130   :  { %987 = vadd.xlane.f32.xlu0 %v960_v52  ;;  %v1831_v3 = vpop.eup %1830  ;;  %v945_v28 = vsel %vm865_vm11, %v2621_v45, %v1622_v47  ;;  %v1753_v45 = vpop.f32.mrf.mxu1  ;;  %v1111_v11 = vmin.f32 %v2736_v10, 0.0  ;;  %vm1095_vm0 = vcmp.gt.f32.partialorder %v2736_v10, 0.0 }
 0x131   :  { %v1626_v53 = vadd.f32 -1.0, %v1831_v3  ;;  %v961_v4 = vmul.f32 %v2513_v44, %v945_v28  ;;  %v2695_v29 = vadd.f32 %v1753_v45, %v2308_v37  ;;  %v1051_v8 = vpop.permute.xlu0 %1050  ;;  %v1072_v3 = vmul.f32 %v2302_v33, %v1043_v35 }
 0x132   :  { %753 = vadd.xlane.f32.xlu1 %v723_v1  ;;  %v477_v27 = vpop.f32.mrf.mxu1  ;;  %v1129_v41 = vmul.f32 1.442695, %v1111_v11  ;;  %v2759_v28 = vadd.f32 %v1070_v6, %v2546_v7  ;;  %vm1098_vm2 = vcmp.gt.f32.partialorder %v2748_v58, 0.0 }
 0x133   :  { %v1173_v31 = vsel %vm1093_vm12, %v2637_v21, %v1626_v53  ;;  %v2698_v21 = vadd.f32 %v590_v36, %v2687_v15  ;;  %v2709_v9 = vadd.f32 %v836_v63, %v2695_v29  ;;  %v2729_v40 = vadd.f32 %v2308_v37, %v477_v27 }
 0x134   :  { %743 = vadd.xlane.f32.xlu0 %v718_v60  ;;  %v1189_v30 = vmul.f32 %v2513_v44, %v1173_v31  ;;  %v636_v37 = vmin.f32 %v2726_v13, 0.0  ;;  %v2752_v60 = vadd.f32 %v1068_v38, %v2430_v54  ;;  %v1074_v54 = vmul.f32 %v2302_v33, %v1051_v8 }
 0x135   :  { %v638_v59 = vmin.f32 %v2698_v21, 0.0  ;;  %v884_v2 = vmin.f32 %v2709_v9, 0.0  ;;  %v2743_v42 = vadd.f32 %v834_v22, %v2729_v40  ;;  %v1118_v31 = vmin.f32 %v2759_v28, 0.0 }
 0x136   :  { %993 = vadd.xlane.f32.xlu1 %v963_v39  ;;  %v665_v50 = vmul.f32 1.442695, %v636_v37  ;;  %v1114_v39 = vmin.f32 %v2748_v58, 0.0  ;;  %v1116_v48 = vmin.f32 %v2752_v60, 0.0  ;;  %v2768_v26 = vadd.f32 %v1074_v54, %v301_v51 }
 0x137   :  { %v669_v34 = vmul.f32 1.442695, %v638_v59  ;;  %v915_v52 = vmul.f32 1.442695, %v884_v2  ;;  %v882_v1 = vmin.f32 %v2743_v42, 0.0  ;;  %vm622_vm13 = vcmp.gt.f32.partialorder %v2698_v21, 0.0 }
 0x138   :  { %983 = vadd.xlane.f32.xlu0 %v958_v12  ;;  %v1135_v12 = vmul.f32 1.442695, %v1114_v39  ;;  %v1139_v53 = vmul.f32 1.442695, %v1116_v48  ;;  %v1122_v59 = vmin.f32 %v2768_v26, 0.0  ;;  %vm868_vm14 = vcmp.gt.f32.partialorder %v2709_v9, 0.0 }
 0x139   :  { %1832 = vpow2.f32 %v669_v34  ;;  %v911_v47 = vmul.f32 1.442695, %v882_v1  ;;  %vm866_vm1 = vcmp.gt.f32.partialorder %v2743_v42, 0.0  ;;  %vm1100_vm3 = vcmp.gt.f32.partialorder %v2752_v60, 0.0 }
 0x13a   :  { %749 = vadd.xlane.f32.xlu1 %v721_v23  ;;  %1834 = vpow2.f32 %v915_v52  ;;  %vm1102_vm4 = vcmp.gt.f32.partialorder %v2759_v28, 0.0  ;;  %v1477_v8 = vlaneseq  ;;  %vm1106_vm6 = vcmp.gt.f32.partialorder %v2768_v26, 0.0 }
 0x13b   :  { %1836 = vpow2.f32 %v665_v50  ;;  %v2791_v50 = vpop.permute.xlu1 %1030 }
 0x13c   :  { %1838 = vpow2.f32 %v1129_v41 }
 0x13d   :  { %1840 = vpow2.f32 %v911_v47 }
 0x13e   :  { %989 = vadd.xlane.f32.xlu1 %v961_v4  ;;  %1842 = vpow2.f32 %v1135_v12  ;;  %v2763_v4 = vadd.f32 %v1072_v3, %v2508_v24 }
 0x13f   :  { %1844 = vpow2.f32 %v1139_v53  ;;  %v2797_v6 = vpop.permute.xlu1 %1038 }
 0x140   :  { %v1120_v7 = vmin.f32 %v2763_v4, 0.0  ;;  %vm1104_vm5 = vcmp.gt.f32.partialorder %v2763_v4, 0.0 }
 0x142   :  { %1205 = vadd.xlane.f32.xlu1 %v1189_v30  ;;  %v1059_v30 = vpop.permute.xlu0 %1058 }
 0x143   :  { %v1076_v36 = vmul.f32 %v2302_v33, %v1059_v30  ;;  %v2803_v12 = vpop.permute.xlu1 %1046 }
 0x145   :  { %v2774_v27 = vadd.f32 %v1076_v36, %v2687_v15 }
 0x146   :  { %v1833_v23 = vpop.eup %1832 }
 0x147   :  { %v1608_v46 = vadd.f32 -1.0, %v1833_v23  ;;  %v1835_v45 = vpop.eup %1834  ;;  %v2806_v23 = vand.u32 127, %v1477_v8  ;;  %vm1108_vm8 = vcmp.gt.f32.partialorder %v2774_v27, 0.0  ;;  %v2814_v36 = vpop.permute.xlu1 %1054  ;;  %v1914_v8 = vld [vmem:[%s3260_s3 + $0x50] sm:$0xff] }
 0x148   :  { %v1837_v24 = vpop.eup %1836 }
 0x149   :  { %v702_v63 = vsel %vm622_vm13, %v2698_v21, %v1608_v46  ;;  %v1839_v33 = vpop.eup %1838  ;;  %v1606_v5 = vadd.f32 -1.0, %v1837_v24  ;;  %v1151_v21 = vmul.f32 1.442695, %v1122_v59  ;;  %vm1479_vm7 = vcmp.eq.s32.totalorder %v2806_v23, 0 }
 0x14a   :  { %v724_v18 = vmul.f32 %v2513_v44, %v702_v63  ;;  %v1628_v2 = vadd.f32 -1.0, %v1839_v33  ;;  %vm1496_vm9 = vcmp.eq.s32.totalorder %v2806_v23, 1  ;;  %vm1513_vm10 = vcmp.eq.s32.totalorder %v2806_v23, 2 }
 0x14b   :  { %v700_v15 = vsel %vm620_vm15, %v2726_v13, %v1606_v5 }
 0x14c   :  { %v1175_v14 = vsel %vm1095_vm0, %v2736_v10, %v1628_v2  ;;  %v722_v37 = vmul.f32 %v2513_v44, %v700_v15 }
 0x14d   :  { %v1191_v13 = vmul.f32 %v2513_v44, %v1175_v14 }
 0x14e   :  { %1238 = vperm.xlu0 %1764, %v1902_v32   ;;  %v1143_v32 = vmul.f32 1.442695, %v1118_v31 }
 0x150   :  { %1846 = vpow2.f32 %v1143_v32 }
 0x152   :  { %1242 = vperm.xlu0 %1764, %v1903_v43   ;;  %v1625_v43 = vadd.f32 -1.0, %v1835_v45 }
 0x153   :  { %1270 = vperm.xlu1 %1765, %v1904_v17   ;;  %v1147_v17 = vmul.f32 1.442695, %v1120_v7 }
 0x154   :  { %v948_v51 = vsel %vm868_vm14, %v2709_v9, %v1625_v43 }
 0x155   :  { %1848 = vpow2.f32 %v1147_v17  ;;  %v964_v22 = vmul.f32 %v2513_v44, %v948_v51 }
 0x156   :  { %1246 = vperm.xlu0 %1764, %v1905_v57   ;;  %v1841_v57 = vpop.eup %1840  ;;  %1850 = vpow2.f32 %v1151_v21  ;;  %v1909_v21 = vld [vmem:[%s3260_s3 + $0x20] sm:$0xff] }
 0x157   :  { %1290 = vperm.xlu1 %1765, %v1906_v20   ;;  %v1124_v20 = vmin.f32 %v2774_v27, 0.0  ;;  %v1843_v34 = vpop.eup %1842  ;;  %v1623_v62 = vadd.f32 -1.0, %v1841_v57 }
 0x158   :  { %v1845_v52 = vpop.eup %1844 }
 0x159   :  { %v1155_v9 = vmul.f32 1.442695, %v1124_v20  ;;  %v946_v16 = vsel %vm866_vm1, %v2743_v42, %v1623_v62  ;;  %v1633_v38 = vadd.f32 -1.0, %v1845_v52  ;;  %v1911_v52 = vld [vmem:[%s3260_s3 + $0x30] sm:$0xff] }
 0x15a   :  { %v962_v10 = vmul.f32 %v2513_v44, %v946_v16 }
 0x15b   :  { %1298 = vperm.xlu1 %1765, %v1907_v25   ;;  %v1631_v25 = vadd.f32 -1.0, %v1843_v34  ;;  %1852 = vpow2.f32 %v1155_v9  ;;  %v1180_v1 = vsel %vm1100_vm3, %v2752_v60, %v1633_v38 }
 0x15d   :  { %v1178_v11 = vsel %vm1098_vm2, %v2748_v58, %v1631_v25  ;;  %v1847_v35 = vpop.eup %1846  ;;  %v1196_v58 = vmul.f32 %v2513_v44, %v1180_v1 }
 0x15e   :  { %v1194_v42 = vmul.f32 %v2513_v44, %v1178_v11  ;;  %v1635_v41 = vadd.f32 -1.0, %v1847_v35  ;;  %v1912_v11 = vld [vmem:[%s3260_s3 + $0x38] sm:$0xff] }
 0x160   :  { %v1182_v47 = vsel %vm1102_vm4, %v2759_v28, %v1635_v41  ;;  %v1913_v41 = vld [vmem:[%s3260_s3 + $0x48] sm:$0xff] }
 0x161   :  { %v1198_v60 = vmul.f32 %v2513_v44, %v1182_v47 }
 0x162   :  { %v1849_v39 = vpop.eup %1848 }
 0x163   :  { %v1637_v3 = vadd.f32 -1.0, %v1849_v39  ;;  %v1851_v48 = vpop.eup %1850 }
 0x164   :  { %v1639_v53 = vadd.f32 -1.0, %v1851_v48  ;;  %v2892_v48 = vld [vmem:[%s3264_s5] ss:$0 sm:$0xff] }
 0x165   :  { %v1184_v54 = vsel %vm1104_vm5, %v2763_v4, %v1637_v3 }
 0x166   :  { %v1200_v30 = vmul.f32 %v2513_v44, %v1184_v54  ;;  %v1186_v46 = vsel %vm1106_vm6, %v2768_v26, %v1639_v53 }
 0x167   :  { %v1202_v32 = vmul.f32 %v2513_v44, %v1186_v46  ;;  %v3302_v46 = vld [vmem:[#allocation6_spill] sm:$0xff] }
 0x168   :  { %v1853_v31 = vpop.eup %1852 }
 0x169   :  { %v1641_v45 = vadd.f32 -1.0, %v1853_v31 }
 0x16b   :  { %v1188_v26 = vsel %vm1108_vm8, %v2774_v27, %v1641_v45 }
 0x16c   :  { %v1204_v17 = vmul.f32 %v2513_v44, %v1188_v26 }
 0x175   :  { %755 = vadd.xlane.f32.xlu0 %v724_v18  ;;  %v1908_v18 = vld [vmem:[%s3260_s3 + $0x18] sm:$0xff] }
 0x179   :  { %995 = vadd.xlane.f32.xlu0 %v964_v22  ;;  %v1910_v22 = vld [vmem:[%s3260_s3 + $0x28] sm:$0xff] }
 0x17d   :  { %751 = vadd.xlane.f32.xlu0 %v722_v37 }
 0x17f   :  { %1209 = vadd.xlane.f32.xlu1 %v1191_v13 }
 0x181   :  { %991 = vadd.xlane.f32.xlu0 %v962_v10 }
 0x183   :  { %1215 = vadd.xlane.f32.xlu1 %v1194_v42 }
 0x187   :  { %1219 = vadd.xlane.f32.xlu1 %v1196_v58 }
 0x18b   :  { %1223 = vadd.xlane.f32.xlu1 %v1198_v60  ;;  %v1062_v60 = vmul.f32 %v2892_v48, %v2717_v61 }
 0x18d   :  { %v730_v28 = vpop.xlane.xlu0 %729  ;;  %v2906_v45 = vadd.f32 %v1062_v60, %v3302_v46  ;;  %v1073_v60 = vmul.f32 %v2892_v48, %v2803_v12  ;;  %v1075_v12 = vmul.f32 %v2892_v48, %v2814_v36 }
 0x18e   :  { %v1482_v4 = vsel %vm1479_vm7, %v730_v28, 0.0 }
 0x18f   :  { %1227 = vadd.xlane.f32.xlu1 %v1200_v30  ;;  %v1916_v30 = vld [vmem:[%s3260_s3 + $0x58] sm:$0xff]  ;;  %vm1094_vm11 = vcmp.gt.f32.partialorder %v2906_v45, 0.0 }
 0x191   :  { %v970_v7 = vpop.xlane.xlu0 %969 }
 0x192   :  { %v2822_v63 = vsel %vm1496_vm9, %v970_v7, %v1482_v4 }
 0x193   :  { %v728_v43 = vpop.xlane.xlu1 %727  ;;  %1231 = vadd.xlane.f32.xlu1 %v1202_v32  ;;  %v1917_v32 = vld [vmem:[%s3260_s3 + $0x60] sm:$0xff] }
 0x194   :  { %v1481_v59 = vsel %vm1479_vm7, %v728_v43, 0.0  ;;  %v1110_v43 = vmin.f32 %v2906_v45, 0.0 }
 0x195   :  { %v726_v24 = vpop.xlane.xlu0 %725 }
 0x196   :  { %v1480_v27 = vsel %vm1479_vm7, %v726_v24, 0.0 }
 0x197   :  { %v968_v33 = vpop.xlane.xlu1 %967  ;;  %1235 = vadd.xlane.f32.xlu1 %v1204_v17  ;;  %1250 = vperm.xlu0 %1764, %v1908_v18   ;;  %v1918_v18 = vld [vmem:[%s3260_s3 + $0x70] sm:$0xff] }
 0x198   :  { %v2833_v51 = vsel %vm1496_vm9, %v968_v33, %v1481_v59 }
 0x199   :  { %v966_v5 = vpop.xlane.xlu0 %965 }
 0x19a   :  { %v2839_v44 = vsel %vm1496_vm9, %v966_v5, %v1480_v27  ;;  %v3303_v27 = vld [vmem:[#allocation2_spill] sm:$0xff] }
 0x19b   :  { %v738_v57 = vpop.xlane.xlu1 %737  ;;  %1254 = vperm.xlu0 %1764, %v1909_v21   ;;  %v1112_v5 = vmin.f32 %v3303_v27, 0.0  ;;  %vm1096_vm12 = vcmp.gt.f32.partialorder %v3303_v27, 0.0 }
 0x19c   :  { %v1486_v2 = vsel %vm1479_vm7, %v738_v57, 0.0  ;;  %v1127_v57 = vmul.f32 1.442695, %v1110_v43 }
 0x19d   :  { %v732_v20 = vpop.xlane.xlu0 %731 }
 0x19e   :  { %v1483_v62 = vsel %vm1479_vm7, %v732_v20, 0.0  ;;  %1854 = vpow2.f32 %v1127_v57 }
 0x19f   :  { %v978_v34 = vpop.xlane.xlu1 %977  ;;  %1258 = vperm.xlu0 %1764, %v1910_v22  }
 0x1a0   :  { %v2851_v15 = vsel %vm1496_vm9, %v978_v34, %v1486_v2  ;;  %v1131_v34 = vmul.f32 1.442695, %v1112_v5 }
 0x1a1   :  { %v972_v9 = vpop.xlane.xlu0 %971 }
 0x1a2   :  { %v2857_v14 = vsel %vm1496_vm9, %v972_v9, %v1483_v62  ;;  %v3304_v62 = vld [vmem:[#allocation4_spill] sm:$0xff]  ;;  %1856 = vpow2.f32 %v1131_v34 }
 0x1a3   :  { %v734_v25 = vpop.xlane.xlu1 %733  ;;  %1262 = vperm.xlu0 %1764, %v1911_v52   ;;  %v1113_v9 = vmin.f32 %v3304_v62, 0.0  ;;  %vm1097_vm13 = vcmp.gt.f32.partialorder %v3304_v62, 0.0 }
 0x1a4   :  { %v1484_v16 = vsel %vm1479_vm7, %v734_v25, 0.0  ;;  %v1069_v25 = vmul.f32 %v2892_v48, %v2791_v50  ;;  %v3307_v50 = vld [vmem:[#allocation14_spill] sm:$0xff] }
 0x1a5   :  { %v740_v37 = vpop.xlane.xlu0 %739 }
 0x1a6   :  { %v1487_v35 = vsel %vm1479_vm7, %v740_v37, 0.0 }
 0x1a7   :  { %v974_v13 = vpop.xlane.xlu1 %973  ;;  %1266 = vperm.xlu0 %1764, %v1912_v11  }
 0x1a8   :  { %v2869_v38 = vsel %vm1496_vm9, %v974_v13, %v1484_v16  ;;  %v1071_v13 = vmul.f32 %v2892_v48, %v2797_v6 }
 0x1a9   :  { %v980_v10 = vpop.xlane.xlu0 %979 }
 0x1aa   :  { %v2875_v42 = vsel %vm1496_vm9, %v980_v10, %v1487_v35  ;;  %v3305_v35 = vld [vmem:[#allocation3_spill] sm:$0xff] }
 0x1ab   :  { %v746_v1 = vpop.xlane.xlu1 %745  ;;  %1274 = vperm.xlu0 %1764, %v1913_v41   ;;  %v1115_v10 = vmin.f32 %v3305_v35, 0.0  ;;  %v3306_v41 = vld [vmem:[#allocation16_spill] sm:$0xff]  ;;  %v1855_v43 = vpop.eup %1854  ;;  %vm1099_vm14 = vcmp.gt.f32.partialorder %v3305_v35, 0.0 }
 0x1ac   :  { %v1490_v58 = vsel %vm1479_vm7, %v746_v1, 0.0  ;;  %v1133_v1 = vmul.f32 1.442695, %v1113_v9  ;;  %v1627_v57 = vadd.f32 -1.0, %v1855_v43 }
 0x1ad   :  { %v736_v39 = vpop.xlane.xlu0 %735 }
 0x1ae   :  { %v1485_v54 = vsel %vm1479_vm7, %v736_v39, 0.0  ;;  %v2947_v39 = vadd.f32 %v1069_v25, %v3306_v41  ;;  %1858 = vpow2.f32 %v1133_v1  ;;  %v3309_v25 = vld [vmem:[#allocation7_spill] sm:$0xff]  ;;  %v2991_v1 = vld [vmem:[%s3266_s7] ss:$0 sm:$0xff] }
 0x1af   :  { %v986_v47 = vpop.xlane.xlu1 %985  ;;  %1278 = vperm.xlu0 %1764, %v1914_v8  }
 0x1b0   :  { %v2887_v3 = vsel %vm1496_vm9, %v986_v47, %v1490_v58  ;;  %v2950_v58 = vadd.f32 %v1071_v13, %v3307_v50  ;;  %vm1101_vm15 = vcmp.gt.f32.partialorder %v2947_v39, 0.0 }
 0x1b1   :  { %v976_v53 = vpop.xlane.xlu0 %975 }
 0x1b2   :  { %v2900_v31 = vsel %vm1496_vm9, %v976_v53, %v1485_v54  ;;  %v1137_v54 = vmul.f32 1.442695, %v1115_v10  ;;  %v1117_v53 = vmin.f32 %v2947_v39, 0.0  ;;  %vm1103_vm1 = vcmp.gt.f32.partialorder %v2950_v58, 0.0 }
 0x1b3   :  { %v742_v28 = vpop.xlane.xlu1 %741  ;;  %1282 = vperm.xlu0 %1764, %v1916_v30   ;;  %v1119_v30 = vmin.f32 %v2950_v58, 0.0 }
 0x1b4   :  { %v1488_v61 = vsel %vm1479_vm7, %v742_v28, 0.0  ;;  %1860 = vpow2.f32 %v1137_v54 }
 0x1b5   :  { %v748_v4 = vpop.xlane.xlu0 %747 }
 0x1b6   :  { %v1491_v24 = vsel %vm1479_vm7, %v748_v4, 0.0  ;;  %v2964_v4 = vadd.f32 %v1073_v60, %v2595_v0  ;;  %v2976_v0 = vadd.f32 %v1075_v12, %v2555_v56 }
 0x1b7   :  { %v982_v7 = vpop.xlane.xlu1 %981  ;;  %1286 = vperm.xlu0 %1764, %v1917_v32  }
 0x1b8   :  { %v2915_v26 = vsel %vm1496_vm9, %v982_v7, %v1488_v61  ;;  %v1141_v7 = vmul.f32 1.442695, %v1117_v53  ;;  %v1123_v34 = vmin.f32 %v2976_v0, 0.0  ;;  %vm1105_vm2 = vcmp.gt.f32.partialorder %v2964_v4, 0.0 }
 0x1b9   :  { %v988_v17 = vpop.xlane.xlu0 %987  ;;  %vm1107_vm3 = vcmp.gt.f32.partialorder %v2976_v0, 0.0 }
 0x1ba   :  { %v2922_v59 = vsel %vm1496_vm9, %v988_v17, %v1491_v24  ;;  %v1145_v17 = vmul.f32 1.442695, %v1119_v30  ;;  %1862 = vpow2.f32 %v1141_v7  ;;  %v1153_v10 = vmul.f32 1.442695, %v1123_v34 }
 0x1bb   :  { %v754_v33 = vpop.xlane.xlu1 %753  ;;  %1294 = vperm.xlu0 %1764, %v1918_v18   ;;  %v3308_v18 = vld [vmem:[#allocation8_spill] sm:$0xff] }
 0x1bc   :  { %v1494_v20 = vsel %vm1479_vm7, %v754_v33, 0.0  ;;  %v1121_v33 = vmin.f32 %v2964_v4, 0.0  ;;  %1864 = vpow2.f32 %v1145_v17 }
 0x1bd   :  { %v744_v21 = vpop.xlane.xlu0 %743 }
 0x1be   :  { %v1489_v52 = vsel %vm1479_vm7, %v744_v21, 0.0 }
 0x1bf   :  { %v994_v2 = vpop.xlane.xlu1 %993 }
 0x1c0   :  { %v2932_v22 = vsel %vm1496_vm9, %v994_v2, %v1494_v20  ;;  %v1149_v2 = vmul.f32 1.442695, %v1121_v33 }
 0x1c1   :  { %v984_v37 = vpop.xlane.xlu0 %983 }
 0x1c2   :  { %v2941_v16 = vsel %vm1496_vm9, %v984_v37, %v1489_v52  ;;  %v1174_v37 = vsel %vm1094_vm11, %v2906_v45, %v1627_v57 }
 0x1c3   :  { %v750_v11 = vpop.xlane.xlu1 %749  ;;  %v1190_v41 = vmul.f32 %v2991_v1, %v1174_v37 }
 0x1c4   :  { %v1492_v47 = vsel %vm1479_vm7, %v750_v11, 0.0 }
 0x1c7   :  { %v990_v8 = vpop.xlane.xlu1 %989 }
 0x1c8   :  { %v2958_v6 = vsel %vm1496_vm9, %v990_v8, %v1492_v47  ;;  %v3310_v47 = vld [vmem:[#allocation5_spill] sm:$0xff] }
 0x1c9   :  { %v1239_v28 = vpop.permute.xlu0 %1238 }
 0x1ca   :  { %v1301_v36 = vmul.f32 %v2892_v48, %v1239_v28 }
 0x1cb   :  { %v1206_v46 = vpop.xlane.xlu1 %1205 }
 0x1cc   :  { %v2971_v61 = vsel %vm1513_vm10, %v1206_v46, %v2839_v44  ;;  %v1857_v44 = vpop.eup %1856  ;;  %v2983_v52 = vadd.f32 %v1301_v36, %v3309_v25 }
 0x1cd   :  { %v1243_v32 = vpop.permute.xlu0 %1242  ;;  %v1629_v13 = vadd.f32 -1.0, %v1857_v44  ;;  %v1859_v11 = vpop.eup %1858 }
 0x1ce   :  { %v1302_v24 = vmul.f32 %v2892_v48, %v1243_v32  ;;  %v1349_v50 = vmin.f32 %v2983_v52, 0.0  ;;  %v1630_v60 = vadd.f32 -1.0, %v1859_v11  ;;  %v1861_v54 = vpop.eup %1860  ;;  %vm1333_vm4 = vcmp.gt.f32.partialorder %v2983_v52, 0.0 }
 0x1cf   :  { %v1176_v45 = vsel %vm1096_vm12, %v3303_v27, %v1629_v13  ;;  %v1632_v12 = vadd.f32 -1.0, %v1861_v54  ;;  %v1863_v7 = vpop.eup %1862 }
 0x1d0   :  { %v1318_v5 = vadd.f32 %v1302_v24, %v3308_v18  ;;  %v1192_v53 = vmul.f32 %v2991_v1, %v1176_v45  ;;  %v1365_v28 = vmul.f32 1.442695, %v1349_v50  ;;  %v1177_v46 = vsel %vm1097_vm13, %v3304_v62, %v1630_v60  ;;  %v1865_v32 = vpop.eup %1864 }
 0x1d1   :  { %v1247_v20 = vpop.permute.xlu0 %1246  ;;  %v1193_v27 = vmul.f32 %v2991_v1, %v1177_v46  ;;  %v1179_v24 = vsel %vm1099_vm14, %v3305_v35, %v1632_v12  ;;  %v1634_v17 = vadd.f32 -1.0, %v1863_v7  ;;  %v1636_v44 = vadd.f32 -1.0, %v1865_v32 }
 0x1d2   :  { %v1350_v21 = vmin.f32 %v1318_v5, 0.0  ;;  %v1303_v56 = vmul.f32 %v2892_v48, %v1247_v20  ;;  %v1195_v18 = vmul.f32 %v2991_v1, %v1179_v24  ;;  %vm1334_vm0 = vcmp.gt.f32.partialorder %v1318_v5, 0.0 }
 0x1d3   :  { %v1181_v57 = vsel %vm1101_vm15, %v2947_v39, %v1634_v17  ;;  %v1183_v34 = vsel %vm1103_vm1, %v2950_v58, %v1636_v44 }
 0x1d4   :  { %v1367_v9 = vmul.f32 1.442695, %v1350_v21  ;;  %v1319_v8 = vadd.f32 %v1303_v56, %v3310_v47  ;;  %v1197_v20 = vmul.f32 %v2991_v1, %v1181_v57  ;;  %v1199_v25 = vmul.f32 %v2991_v1, %v1183_v34  ;;  %v3312_v34 = vld [vmem:[#allocation11_spill] sm:$0xff] }
 0x1d6   :  { %1866 = vpow2.f32 %v1367_v9  ;;  %v1351_v30 = vmin.f32 %v1319_v8, 0.0  ;;  %vm1335_vm5 = vcmp.gt.f32.partialorder %v1319_v8, 0.0 }
 0x1d7   :  { %1868 = vpow2.f32 %v1149_v2 }
 0x1d8   :  { %1870 = vpow2.f32 %v1153_v10  ;;  %v1369_v43 = vmul.f32 1.442695, %v1351_v30 }
 0x1d9   :  { %1872 = vpow2.f32 %v1365_v28 }
 0x1da   :  { %1207 = vadd.xlane.f32.xlu0 %v1190_v41  ;;  %1874 = vpow2.f32 %v1369_v43 }
 0x1de   :  { %1211 = vadd.xlane.f32.xlu0 %v1192_v53 }
 0x1e2   :  { %1213 = vadd.xlane.f32.xlu0 %v1193_v27 }
 0x1e3   :  { %v1867_v33 = vpop.eup %1866 }
 0x1e4   :  { %v1643_v62 = vadd.f32 -1.0, %v1867_v33  ;;  %v1869_v36 = vpop.eup %1868 }
 0x1e5   :  { %v1871_v2 = vpop.eup %1870  ;;  %v1638_v9 = vadd.f32 -1.0, %v1869_v36  ;;  %v3311_v36 = vld [vmem:[#allocation10_spill] sm:$0xff] }
 0x1e6   :  { %1217 = vadd.xlane.f32.xlu0 %v1195_v18  ;;  %v1414_v21 = vsel %vm1334_vm0, %v1318_v5, %v1643_v62  ;;  %v1640_v56 = vadd.f32 -1.0, %v1871_v2  ;;  %v1873_v37 = vpop.eup %1872 }
 0x1e7   :  { %v1430_v35 = vmul.f32 %v2991_v1, %v1414_v21  ;;  %v1185_v39 = vsel %vm1105_vm2, %v2964_v4, %v1638_v9  ;;  %v1642_v11 = vadd.f32 -1.0, %v1873_v37  ;;  %v1875_v10 = vpop.eup %1874  ;;  %v1271_v4 = vpop.permute.xlu1 %1270 }
 0x1e8   :  { %v1201_v5 = vmul.f32 %v2991_v1, %v1185_v39  ;;  %v1187_v13 = vsel %vm1107_vm3, %v2976_v0, %v1640_v56  ;;  %v1644_v50 = vadd.f32 -1.0, %v1875_v10  ;;  %v3313_v39 = vld [vmem:[#allocation17_spill] sm:$0xff] }
 0x1e9   :  { %1447 = vadd.xlane.f32.xlu1 %v1430_v35  ;;  %v1203_v58 = vmul.f32 %v2991_v1, %v1187_v13  ;;  %v1413_v41 = vsel %vm1333_vm4, %v2983_v52, %v1642_v11  ;;  %v3314_v10 = vld [vmem:[#allocation13_spill] sm:$0xff]  ;;  %vm1530_vm4 = vcmp.eq.s32.totalorder %v2806_v23, 3 }
 0x1ea   :  { %1221 = vadd.xlane.f32.xlu0 %v1197_v20  ;;  %v1429_v47 = vmul.f32 %v2991_v1, %v1413_v41  ;;  %v1415_v45 = vsel %vm1335_vm5, %v1319_v8, %v1644_v50 }
 0x1eb   :  { %v1431_v60 = vmul.f32 %v2991_v1, %v1415_v45  ;;  %v1291_v0 = vpop.permute.xlu1 %1290 }
 0x1ee   :  { %1225 = vadd.xlane.f32.xlu0 %v1199_v25 }
 0x1ef   :  { %v1299_v30 = vpop.permute.xlu1 %1298 }
 0x1f2   :  { %1229 = vadd.xlane.f32.xlu0 %v1201_v5 }
 0x1f6   :  { %1233 = vadd.xlane.f32.xlu0 %v1203_v58 }
 0x1fa   :  { %1445 = vadd.xlane.f32.xlu0 %v1429_v47 }
 0x1fe   :  { %1449 = vadd.xlane.f32.xlu0 %v1431_v60  ;;  %v756_v54 = vpop.xlane.xlu0 %755  ;;  %v3315_v60 = vld [vmem:[#allocation9_spill] sm:$0xff] }
 0x1ff   :  { %v1495_v53 = vsel %vm1479_vm7, %v756_v54, 0.0 }
 0x202   :  { %v996_v28 = vpop.xlane.xlu0 %995 }
 0x203   :  { %v3025_v52 = vsel %vm1496_vm9, %v996_v28, %v1495_v53 }
 0x206   :  { %v752_v46 = vpop.xlane.xlu0 %751 }
 0x207   :  { %v1493_v8 = vsel %vm1479_vm7, %v752_v46, 0.0 }
 0x208   :  { %v3027_v12 = vpop.xlane.xlu1 %1209 }
 0x20a   :  { %v992_v7 = vpop.xlane.xlu0 %991 }
 0x20b   :  { %v1510_v32 = vsel %vm1496_vm9, %v992_v7, %v1493_v8  ;;  %v1314_v7 = vmul.f32 %v2892_v48, %v1291_v0 }
 0x20c   :  { %v1216_v27 = vpop.xlane.xlu1 %1215 }
 0x20d   :  { %v3036_v43 = vsel %vm1513_vm10, %v1216_v27, %v2900_v31  ;;  %v1309_v31 = vmul.f32 %v2892_v48, %v1271_v4  ;;  %v3316_v27 = vld [vmem:[#allocation12_spill] sm:$0xff] }
 0x20f   :  { %v3059_v56 = vadd.f32 %v1309_v31, %v3313_v39  ;;  %v3084_v31 = vadd.f32 %v1314_v7, %v2729_v40 }
 0x210   :  { %v1220_v24 = vpop.xlane.xlu1 %1219 }
 0x211   :  { %v3041_v17 = vsel %vm1513_vm10, %v1220_v24, %v2875_v42  ;;  %vm1341_vm11 = vcmp.gt.f32.partialorder %v3059_v56, 0.0  ;;  %vm1346_vm0 = vcmp.gt.f32.partialorder %v3084_v31, 0.0 }
 0x212   :  { %v1251_v33 = vpop.permute.xlu0 %1250 }
 0x213   :  { %v1304_v18 = vmul.f32 %v2892_v48, %v1251_v33 }
 0x214   :  { %v1224_v62 = vpop.xlane.xlu1 %1223 }
 0x215   :  { %v1320_v57 = vadd.f32 %v1304_v18, %v3311_v36  ;;  %v3048_v44 = vsel %vm1513_vm10, %v1224_v62, %v2941_v16 }
 0x216   :  { %v1255_v21 = vpop.permute.xlu0 %1254 }
 0x217   :  { %v1352_v35 = vmin.f32 %v1320_v57, 0.0  ;;  %v1305_v20 = vmul.f32 %v2892_v48, %v1255_v21  ;;  %v1316_v21 = vmul.f32 %v2892_v48, %v1299_v30  ;;  %vm1336_vm6 = vcmp.gt.f32.partialorder %v1320_v57, 0.0 }
 0x218   :  { %v1228_v2 = vpop.xlane.xlu1 %1227 }
 0x219   :  { %v1371_v42 = vmul.f32 1.442695, %v1352_v35  ;;  %v1321_v9 = vadd.f32 %v1305_v20, %v3312_v34  ;;  %v3056_v25 = vsel %vm1513_vm10, %v1228_v2, %v2922_v59  ;;  %v1357_v59 = vmin.f32 %v3059_v56, 0.0 }
 0x21a   :  { %v1259_v16 = vpop.permute.xlu0 %1258  ;;  %v3094_v40 = vadd.f32 %v1316_v21, %v2695_v29 }
 0x21b   :  { %1876 = vpow2.f32 %v1371_v42  ;;  %v1353_v37 = vmin.f32 %v1321_v9, 0.0  ;;  %v1306_v5 = vmul.f32 %v2892_v48, %v1259_v16  ;;  %v1381_v53 = vmul.f32 1.442695, %v1357_v59 }
 0x21c   :  { %v1232_v13 = vpop.xlane.xlu1 %1231  ;;  %v1362_v16 = vmin.f32 %v3084_v31, 0.0  ;;  %vm1337_vm7 = vcmp.gt.f32.partialorder %v1321_v9, 0.0  ;;  %v1364_v29 = vmin.f32 %v3094_v40, 0.0  ;;  %vm1348_vm2 = vcmp.gt.f32.partialorder %v3094_v40, 0.0 }
 0x21d   :  { %v1373_v11 = vmul.f32 1.442695, %v1353_v37  ;;  %v3063_v58 = vadd.f32 %v1306_v5, %v3314_v10  ;;  %v3067_v41 = vsel %vm1513_vm10, %v1232_v13, %v1510_v32  ;;  %v3317_v5 = vld [vmem:[#allocation15_spill] sm:$0xff] }
 0x21e   :  { %v1263_v50 = vpop.permute.xlu0 %1262 }
 0x21f   :  { %1878 = vpow2.f32 %v1373_v11  ;;  %v1354_v4 = vmin.f32 %v3063_v58, 0.0  ;;  %v1307_v47 = vmul.f32 %v2892_v48, %v1263_v50  ;;  %vm1338_vm8 = vcmp.gt.f32.partialorder %v3063_v58, 0.0 }
 0x221   :  { %v1375_v45 = vmul.f32 1.442695, %v1354_v4  ;;  %v3073_v54 = vadd.f32 %v1307_v47, %v3315_v60  ;;  %v1391_v47 = vmul.f32 1.442695, %v1362_v16 }
 0x222   :  { %v1267_v28 = vpop.permute.xlu0 %1266 }
 0x223   :  { %1880 = vpow2.f32 %v1375_v45  ;;  %v1355_v46 = vmin.f32 %v3073_v54, 0.0  ;;  %v1308_v8 = vmul.f32 %v2892_v48, %v1267_v28  ;;  %vm1339_vm9 = vcmp.gt.f32.partialorder %v3073_v54, 0.0 }
 0x224   :  { %1882 = vpow2.f32 %v1381_v53 }
 0x225   :  { %v1377_v32 = vmul.f32 1.442695, %v1355_v46  ;;  %v3079_v24 = vadd.f32 %v1308_v8, %v3316_v27 }
 0x226   :  { %v1275_v33 = vpop.permute.xlu0 %1274 }
 0x227   :  { %1884 = vpow2.f32 %v1377_v32  ;;  %v1356_v18 = vmin.f32 %v3079_v24, 0.0  ;;  %v1310_v62 = vmul.f32 %v2892_v48, %v1275_v33  ;;  %vm1340_vm12 = vcmp.gt.f32.partialorder %v3079_v24, 0.0 }
 0x228   :  { %v1877_v36 = vpop.eup %1876 }
 0x229   :  { %v1379_v35 = vmul.f32 1.442695, %v1356_v18  ;;  %v3088_v0 = vadd.f32 %v1310_v62, %v2579_v49  ;;  %v1645_v20 = vadd.f32 -1.0, %v1877_v36 }
 0x22a   :  { %v1279_v2 = vpop.permute.xlu0 %1278 }
 0x22b   :  { %1886 = vpow2.f32 %v1379_v35  ;;  %v1358_v42 = vmin.f32 %v3088_v0, 0.0  ;;  %v1311_v34 = vmul.f32 %v2892_v48, %v1279_v2  ;;  %v1416_v37 = vsel %vm1336_vm6, %v1320_v57, %v1645_v20 }
 0x22c   :  { %v1879_v39 = vpop.eup %1878  ;;  %v1432_v49 = vmul.f32 %v2991_v1, %v1416_v37  ;;  %vm1342_vm13 = vcmp.gt.f32.partialorder %v3088_v0, 0.0 }
 0x22d   :  { %v1383_v30 = vmul.f32 1.442695, %v1358_v42  ;;  %v3097_v13 = vadd.f32 %v1311_v34, %v3317_v5  ;;  %v1646_v11 = vadd.f32 -1.0, %v1879_v39 }
 0x22e   :  { %v1283_v10 = vpop.permute.xlu0 %1282  ;;  %1451 = vadd.xlane.f32.xlu1 %v1432_v49 }
 0x22f   :  { %1888 = vpow2.f32 %v1383_v30  ;;  %v1359_v59 = vmin.f32 %v3097_v13, 0.0  ;;  %v1312_v50 = vmul.f32 %v2892_v48, %v1283_v10  ;;  %v1417_v57 = vsel %vm1337_vm7, %v1321_v9, %v1646_v11 }
 0x230   :  { %v1881_v4 = vpop.eup %1880  ;;  %v1433_v53 = vmul.f32 %v2991_v1, %v1417_v57  ;;  %v1395_v9 = vmul.f32 1.442695, %v1364_v29  ;;  %vm1343_vm14 = vcmp.gt.f32.partialorder %v3097_v13, 0.0 }
 0x231   :  { %v1385_v45 = vmul.f32 1.442695, %v1359_v59  ;;  %v3104_v60 = vadd.f32 %v1312_v50, %v2537_v55  ;;  %v1647_v28 = vadd.f32 -1.0, %v1881_v4  ;;  %v1883_v8 = vpop.eup %1882 }
 0x232   :  { %v1287_v46 = vpop.permute.xlu0 %1286  ;;  %1453 = vadd.xlane.f32.xlu0 %v1433_v53  ;;  %v1650_v35 = vadd.f32 -1.0, %v1883_v8 }
 0x233   :  { %1890 = vpow2.f32 %v1385_v45  ;;  %v1360_v7 = vmin.f32 %v3104_v60, 0.0  ;;  %v1313_v32 = vmul.f32 %v2892_v48, %v1287_v46  ;;  %v1418_v33 = vsel %vm1338_vm8, %v3063_v58, %v1647_v28 }
 0x234   :  { %v1885_v27 = vpop.eup %1884  ;;  %1892 = vpow2.f32 %v1391_v47  ;;  %v1434_v62 = vmul.f32 %v2991_v1, %v1418_v33  ;;  %v1421_v30 = vsel %vm1341_vm11, %v3059_v56, %v1650_v35  ;;  %vm1344_vm15 = vcmp.gt.f32.partialorder %v3104_v60, 0.0 }
 0x235   :  { %v1387_v55 = vmul.f32 1.442695, %v1360_v7  ;;  %v1329_v18 = vadd.f32 %v1313_v32, %v2606_v19  ;;  %v1648_v36 = vadd.f32 -1.0, %v1885_v27  ;;  %v3318_v19 = vld [vmem:[#allocation18_spill] sm:$0xff] }
 0x236   :  { %v1295_v21 = vpop.permute.xlu0 %1294  ;;  %1455 = vadd.xlane.f32.xlu1 %v1434_v62 }
 0x237   :  { %1894 = vpow2.f32 %v1387_v55  ;;  %v1361_v20 = vmin.f32 %v1329_v18, 0.0  ;;  %v1315_v2 = vmul.f32 %v2892_v48, %v1295_v21  ;;  %v1419_v58 = vsel %vm1339_vm9, %v3073_v54, %v1648_v36 }
 0x238   :  { %v1887_v42 = vpop.eup %1886  ;;  %1896 = vpow2.f32 %v1395_v9  ;;  %v1435_v16 = vmul.f32 %v2991_v1, %v1419_v58  ;;  %v1437_v54 = vmul.f32 %v2991_v1, %v1421_v30  ;;  %vm1345_vm1 = vcmp.gt.f32.partialorder %v1329_v18, 0.0  ;;  %v1236_v58 = vpop.xlane.xlu1 %1235 }
 0x239   :  { %v1389_v34 = vmul.f32 1.442695, %v1361_v20  ;;  %v1331_v39 = vadd.f32 %v1315_v2, %v3318_v19  ;;  %v1649_v37 = vadd.f32 -1.0, %v1887_v42 }
 0x23a   :  { %1457 = vadd.xlane.f32.xlu0 %v1435_v16 }
 0x23b   :  { %1898 = vpow2.f32 %v1389_v34  ;;  %v1363_v5 = vmin.f32 %v1331_v39, 0.0  ;;  %v1420_v48 = vsel %vm1340_vm12, %v3079_v24, %v1649_v37  ;;  %vm1347_vm3 = vcmp.gt.f32.partialorder %v1331_v39, 0.0 }
 0x23c   :  { %v1889_v49 = vpop.eup %1888  ;;  %v1436_v11 = vmul.f32 %v2991_v1, %v1420_v48 }
 0x23d   :  { %v1393_v10 = vmul.f32 1.442695, %v1363_v5  ;;  %v1651_v59 = vadd.f32 -1.0, %v1889_v49 }
 0x23e   :  { %1459 = vadd.xlane.f32.xlu1 %v1436_v11  ;;  %1461 = vadd.xlane.f32.xlu0 %v1437_v54 }
 0x23f   :  { %1900 = vpow2.f32 %v1393_v10  ;;  %v1422_v50 = vsel %vm1342_vm13, %v3088_v0, %v1651_v59 }
 0x240   :  { %v1891_v56 = vpop.eup %1890  ;;  %v1438_v4 = vmul.f32 %v2991_v1, %v1422_v50 }
 0x241   :  { %v1893_v47 = vpop.eup %1892  ;;  %v1652_v29 = vadd.f32 -1.0, %v1891_v56 }
 0x242   :  { %1463 = vadd.xlane.f32.xlu1 %v1438_v4  ;;  %v1655_v46 = vadd.f32 -1.0, %v1893_v47 }
 0x243   :  { %v1423_v24 = vsel %vm1343_vm14, %v3097_v13, %v1652_v29 }
 0x244   :  { %v1895_v57 = vpop.eup %1894  ;;  %v1439_v45 = vmul.f32 %v2991_v1, %v1423_v24  ;;  %v1426_v32 = vsel %vm1346_vm0, %v3084_v31, %v1655_v46 }
 0x245   :  { %v1897_v53 = vpop.eup %1896  ;;  %v1653_v28 = vadd.f32 -1.0, %v1895_v57  ;;  %v1442_v55 = vmul.f32 %v2991_v1, %v1426_v32 }
 0x246   :  { %1465 = vadd.xlane.f32.xlu0 %v1439_v45  ;;  %v1657_v13 = vadd.f32 -1.0, %v1897_v53 }
 0x247   :  { %v1424_v0 = vsel %vm1344_vm15, %v3104_v60, %v1653_v28 }
 0x248   :  { %v1899_v8 = vpop.eup %1898  ;;  %v1440_v7 = vmul.f32 %v2991_v1, %v1424_v0  ;;  %v1428_v60 = vsel %vm1348_vm2, %v3094_v40, %v1657_v13 }
 0x249   :  { %v1654_v27 = vadd.f32 -1.0, %v1899_v8  ;;  %v1444_v31 = vmul.f32 %v2991_v1, %v1428_v60 }
 0x24a   :  { %1467 = vadd.xlane.f32.xlu1 %v1440_v7 }
 0x24b   :  { %v1425_v9 = vsel %vm1345_vm1, %v1329_v18, %v1654_v27 }
 0x24c   :  { %v1901_v33 = vpop.eup %1900  ;;  %v1441_v62 = vmul.f32 %v2991_v1, %v1425_v9 }
 0x24d   :  { %v1656_v36 = vadd.f32 -1.0, %v1901_v33 }
 0x24e   :  { %1471 = vadd.xlane.f32.xlu1 %v1442_v55  ;;  %1469 = vadd.xlane.f32.xlu0 %v1441_v62 }
 0x24f   :  { %v1427_v21 = vsel %vm1347_vm3, %v1331_v39, %v1656_v36 }
 0x250   :  { %v1443_v35 = vmul.f32 %v2991_v1, %v1427_v21 }
 0x252   :  { %1475 = vadd.xlane.f32.xlu1 %v1444_v31  ;;  %1473 = vadd.xlane.f32.xlu0 %v1443_v35 }
 0x263   :  { %v1208_v18 = vpop.xlane.xlu0 %1207 }
 0x264   :  { %v1515_v1 = vsel %vm1513_vm10, %v1208_v18, %v2833_v51 }
 0x267   :  { %v1212_v20 = vpop.xlane.xlu0 %1211 }
 0x268   :  { %v1517_v2 = vsel %vm1513_vm10, %v1212_v20, %v2857_v14 }
 0x26b   :  { %v1214_v42 = vpop.xlane.xlu0 %1213 }
 0x26c   :  { %v1518_v40 = vsel %vm1513_vm10, %v1214_v42, %v2869_v38 }
 0x26f   :  { %v1218_v34 = vpop.xlane.xlu0 %1217 }
 0x270   :  { %v1520_v19 = vsel %vm1513_vm10, %v1218_v34, %v2851_v15 }
 0x272   :  { %v1448_v39 = vpop.xlane.xlu1 %1447 }
 0x273   :  { %v1532_v14 = vsel %vm1530_vm4, %v1448_v39, %v1515_v1  ;;  %v1222_v16 = vpop.xlane.xlu0 %1221 }
 0x274   :  { %1548 = vst [vmem:[%s3267_s8 + $0x8] sm:$0xff] %v1532_v14  ;;  %v1522_v38 = vsel %vm1513_vm10, %v1222_v16, %v2915_v26 }
 0x277   :  { %v1226_v15 = vpop.xlane.xlu0 %1225 }
 0x278   :  { %v1524_v37 = vsel %vm1513_vm10, %v1226_v15, %v2887_v3  ;;  %v1516_v3 = vsel %vm1513_vm10, %v3027_v12, %v2822_v63 }
 0x27b   :  { %v1230_v30 = vpop.xlane.xlu0 %1229 }
 0x27c   :  { %v1526_v51 = vsel %vm1513_vm10, %v1230_v30, %v2958_v6 }
 0x27f   :  { %v1234_v5 = vpop.xlane.xlu0 %1233 }
 0x280   :  { %v1528_v48 = vsel %vm1513_vm10, %v1234_v5, %v2932_v22 }
 0x283   :  { %v1446_v49 = vpop.xlane.xlu0 %1445 }
 0x284   :  { %v1531_v26 = vsel %vm1530_vm4, %v1446_v49, %v2971_v61 }
 0x285   :  { %1547 = vst [vmem:[%s3267_s8] sm:$0xff] %v1531_v26 }
 0x287   :  { %v1450_v6 = vpop.xlane.xlu0 %1449 }
 0x288   :  { %v1533_v11 = vsel %vm1530_vm4, %v1450_v6, %v1516_v3 }
 0x289   :  { %1549 = vst [vmem:[%s3267_s8 + $0x10] sm:$0xff] %v1533_v11 }
 0x2b7   :  { %v1452_v22 = vpop.xlane.xlu1 %1451 }
 0x2b8   :  { %v1534_v61 = vsel %vm1530_vm4, %v1452_v22, %v1517_v2 }
 0x2b9   :  { %1550 = vst [vmem:[%s3267_s8 + $0x18] sm:$0xff] %v1534_v61 }
 0x2bb   :  { %v1454_v10 = vpop.xlane.xlu0 %1453 }
 0x2bc   :  { %v1535_v63 = vsel %vm1530_vm4, %v1454_v10, %v1518_v40 }
 0x2bd   :  { %1551 = vst [vmem:[%s3267_s8 + $0x20] sm:$0xff] %v1535_v63 }
 0x2bf   :  { %v1456_v12 = vpop.xlane.xlu1 %1455 }
 0x2c0   :  { %v1536_v54 = vsel %vm1530_vm4, %v1456_v12, %v3036_v43 }
 0x2c1   :  { %1552 = vst [vmem:[%s3267_s8 + $0x28] sm:$0xff] %v1536_v54 }
 0x2c3   :  { %v1458_v59 = vpop.xlane.xlu0 %1457 }
 0x2c4   :  { %v1537_v50 = vsel %vm1530_vm4, %v1458_v59, %v1520_v19 }
 0x2c5   :  { %1553 = vst [vmem:[%s3267_s8 + $0x30] sm:$0xff] %v1537_v50 }
 0x2c7   :  { %v1460_v56 = vpop.xlane.xlu1 %1459  ;;  %v1462_v47 = vpop.xlane.xlu0 %1461 }
 0x2c8   :  { %v1538_v4 = vsel %vm1530_vm4, %v1460_v56, %v3041_v17  ;;  %v1539_v43 = vsel %vm1530_vm4, %v1462_v47, %v1522_v38 }
 0x2c9   :  { %1554 = vst [vmem:[%s3267_s8 + $0x38] sm:$0xff] %v1538_v4  ;;  %1555 = vst [vmem:[%s3267_s8 + $0x40] sm:$0xff] %v1539_v43 }
 0x2cb   :  { %v1464_v29 = vpop.xlane.xlu1 %1463 }
 0x2cc   :  { %v1540_v24 = vsel %vm1530_vm4, %v1464_v29, %v3048_v44 }
 0x2cd   :  { %1556 = vst [vmem:[%s3267_s8 + $0x48] sm:$0xff] %v1540_v24 }
 0x2cf   :  { %v1466_v17 = vpop.xlane.xlu0 %1465 }
 0x2d0   :  { %v1541_v57 = vsel %vm1530_vm4, %v1466_v17, %v1524_v37 }
 0x2d1   :  { %1557 = vst [vmem:[%s3267_s8 + $0x50] sm:$0xff] %v1541_v57 }
 0x2d3   :  { %v1468_v45 = vpop.xlane.xlu1 %1467 }
 0x2d4   :  { %v1542_v53 = vsel %vm1530_vm4, %v1468_v45, %v3056_v25  ;;  %v1529_v25 = vsel %vm1513_vm10, %v1236_v58, %v3025_v52 }
 0x2d5   :  { %1558 = vst [vmem:[%s3267_s8 + $0x58] sm:$0xff] %v1542_v53 }
 0x2d7   :  { %v1472_v44 = vpop.xlane.xlu1 %1471  ;;  %v1470_v28 = vpop.xlane.xlu0 %1469 }
 0x2d8   :  { %v1544_v46 = vsel %vm1530_vm4, %v1472_v44, %v3067_v41  ;;  %v1543_v0 = vsel %vm1530_vm4, %v1470_v28, %v1526_v51 }
 0x2d9   :  { %1560 = vst [vmem:[%s3267_s8 + $0x68] sm:$0xff] %v1544_v46  ;;  %1559 = vst [vmem:[%s3267_s8 + $0x60] sm:$0xff] %v1543_v0 }
 0x2db   :  { %v1476_v8 = vpop.xlane.xlu1 %1475  ;;  %v1474_v7 = vpop.xlane.xlu0 %1473 }
 0x2dc   :  { %v1546_v41 = vsel %vm1530_vm4, %v1476_v8, %v1529_v25  ;;  %v1545_v32 = vsel %vm1530_vm4, %v1474_v7, %v1528_v48 }
 0x2dd   :  { %1562 = vst [vmem:[%s3267_s8 + $0x78] sm:$0xff] %v1546_v41  ;;  %1561 = vst [vmem:[%s3267_s8 + $0x70] sm:$0xff] %v1545_v32 }

</bundles_post_ra>
